<compile_context>
chip_gen: v7x
topology: tpu7x:2x2x1
jax: 0.10.0
libtpu: 0.0.40
codegen_flags: <defaults>
</compile_context>

<pallas_src>
import functools
import numpy as np
import jax
import jax.numpy as jnp
from jax import lax
from jax.experimental import pallas as pl
from jax.experimental.pallas import tpu as pltpu

# ----- module config (no_downsample branch) -----
INPUT_CHANNELS = 4
FEATURE_SIZE = 32
SEQ_LEN = 20            # -> lengths 17, 14, 12; final_conv_size = 200 * 12
END_WITH_RELU = False

K1, C1 = 4, 64
K2, C2 = 4, 128
K3, C3 = 3, 200
C3P = 256               # lane-padded layer-3 width (200 -> 2*128); pad is zeros
K4, C4 = 3, 128
L1 = SEQ_LEN - K1 + 1   # 17
L2 = L1 - K2 + 1        # 14
L3 = L2 - K3 + 1        # 12  (matches final_conv_size = 200 * 12)
L4 = L3 - K4 + 1        # 10


def _conv_relu(h, w_ref, b_ref, k):
    """Batched 'valid' Conv1d + ReLU as ONE im2col matmul.

    h:     (TB, L, Cin) channels-last activations (whole batch block)
    w_ref: (k*Cin, Cout) weights, tap-major / channel-minor rows
    b_ref: (1, Cout)
    Returns ((TB, lo, Cout) view for the next layer, stacked (TB*lo, Cout) result).
    """
    TB, L, Cin = h.shape
    lo = L - k + 1
    cols = jnp.concatenate([h[:, dk:dk + lo, :] for dk in range(k)], axis=-1)
    cols = cols.reshape(TB * lo, k * Cin)
    y = jnp.dot(cols, w_ref[...], preferred_element_type=jnp.float32) + b_ref[...]
    y = jnp.maximum(y, 0.0)
    return y.reshape(TB, lo, -1), y


def nature_one_cnn_kernel(x_ref, w1_ref, b1_ref, w2_ref, b2_ref,
                          w3_ref, b3_ref, wl_ref, bl_ref, w4_ref, b4_ref,
                          out_ref, f5_ref, *, pack_out):
    """One batch-block forward, fully resident in VMEM.

    x_ref:  (TB, SEQ_LEN*Cin)    lane-packed channels-last input block
    wN_ref: (kN*CinN, CoutN)     conv weights pre-reshaped to 2-D matmul operands
    wl_ref: (L3*C3P, FEATURE)    linear weight pre-permuted/zero-padded to match the
                                 kernel's (t, c) flatten order
    bN/bl:  (1, Cout)            biases (zeros, per constant_(0) init)
    out_ref:(TB, F) or (TB*F/128, 128)   main[6:8] output (optionally lane-packed)
    f5_ref: (TB*L4, 128)         main[8:] output, stacked channels-last (== permute(0,2,1))
    """
    TB = x_ref.shape[0]
    x = x_ref[...].reshape(TB, SEQ_LEN, INPUT_CHANNELS)

    h, _ = _conv_relu(x, w1_ref, b1_ref, K1)                # (TB, 17, 64)
    h, _ = _conv_relu(h, w2_ref, b2_ref, K2)                # (TB, 14, 128)
    f5_3d, f5_2d = _conv_relu(h, w3_ref, b3_ref, K3)        # (TB, 12, 256) / (TB*12, 256)

    # main[6:8]: Flatten + Linear.  f5_2d rows are already (b-major, t-minor) with lane
    # order c, exactly the (t*C3P + c) ordering wl was built for -> flatten is a reshape.
    flat = f5_2d.reshape(TB, L3 * C3P)
    out = jnp.dot(flat, wl_ref[...], preferred_element_type=jnp.float32) + bl_ref[...]
    if END_WITH_RELU:
        out = jnp.maximum(out, 0.0)
    if pack_out:
        out_ref[...] = out.reshape(out_ref.shape)           # lane-dense (TB*F/128, 128)
    else:
        out_ref[...] = out

    # main[8:]: Conv1d(200->128, 3) + ReLU; stacked channels-last == permute(0, 2, 1)
    _, y4 = _conv_relu(f5_3d, w4_ref, b4_ref, K4)           # (TB*10, 128)
    f5_ref[...] = y4                                        # single 128-lane-dense store


def _pick_tb(B, batch_block):
    """Largest batch block <= batch_block that divides B and satisfies the (8,128) rule."""
    if B <= batch_block:
        return B
    for tb in range(batch_block, 7, -1):
        if B % tb == 0 and tb % 8 == 0:
            return tb
    return B  # graceful fallback: single grid step


def nature_one_cnn_forward(x_ncw, kernel_params, batch_block=128):
    # batch_block: ~128 on v7x/v5e, ~256 on v6e (raise vmem_limit_bytes accordingly).
    (w1, b1, w2, b2, w3, b3, wl, bl, w4, b4) = kernel_params
    B = x_ncw.shape[0]
    # NCW -> channels-last -> lane-packed (B, SEQ_LEN*Cin): avoids the (20, 4) vreg padding.
    x_flat = jnp.transpose(x_ncw, (0, 2, 1)).astype(jnp.float32).reshape(
        B, SEQ_LEN * INPUT_CHANNELS)

    tb = _pick_tb(B, batch_block)
    grid = (B // tb,)
    pack_out = (tb * FEATURE_SIZE) % 128 == 0 and (
        tb == B or (tb * FEATURE_SIZE // 128) % 8 == 0)

    def full_spec(a):  # whole (small) parameter resident every grid step
        nd = a.ndim
        return pl.BlockSpec(a.shape, lambda i, _nd=nd: (0,) * _nd)

    weight_specs = [full_spec(a) for a in (w1, b1, w2, b2, w3, b3, wl, bl, w4, b4)]

    if pack_out:
        out_rows = tb * FEATURE_SIZE // 128
        out_shape0 = jax.ShapeDtypeStruct((B * FEATURE_SIZE // 128, 128), jnp.float32)
        out_spec0 = pl.BlockSpec((out_rows, 128), lambda i: (i, 0))
    else:
        out_shape0 = jax.ShapeDtypeStruct((B, FEATURE_SIZE), jnp.float32)
        out_spec0 = pl.BlockSpec((tb, FEATURE_SIZE), lambda i: (i, 0))

    flops = 2 * B * (L1 * K1 * INPUT_CHANNELS * C1
                     + L2 * K2 * C1 * C2
                     + L3 * K3 * C2 * C3P
                     + L3 * C3P * FEATURE_SIZE
                     + L4 * K4 * C3P * C4)
    param_bytes = 4 * sum(int(np.prod(a.shape)) for a in
                          (w1, b1, w2, b2, w3, b3, wl, bl, w4, b4))
    act_bytes = 4 * B * (SEQ_LEN * INPUT_CHANNELS + FEATURE_SIZE + L4 * C4)
    cost = pl.CostEstimate(flops=flops, transcendentals=0,
                           bytes_accessed=param_bytes + act_bytes)

    kernel = functools.partial(nature_one_cnn_kernel, pack_out=pack_out)
    out, f5_stacked = pl.pallas_call(
        kernel,
        out_shape=(out_shape0,
                   jax.ShapeDtypeStruct((B * L4, C4), jnp.float32)),
        grid=grid,
        in_specs=[pl.BlockSpec((tb, SEQ_LEN * INPUT_CHANNELS), lambda i: (i, 0))]
                 + weight_specs,
        out_specs=(out_spec0,
                   pl.BlockSpec((tb * L4, C4), lambda i: (i, 0))),
        compiler_params=pltpu.CompilerParams(
            dimension_semantics=("parallel",),
            vmem_limit_bytes=64 << 20),
        cost_estimate=cost,
    )(x_flat, w1, b1, w2, b2, w3, b3, wl, bl, w4, b4)

    out = out.reshape(B, FEATURE_SIZE)
    return out, f5_stacked.reshape(B, L4, C4)


# ----- deterministic parameter init (orthogonal * gain('relu'), zero bias) -----
def orthogonal_init(key, shape, gain):
    rows = shape[0]
    cols = int(np.prod(shape[1:]))
    n, m = max(rows, cols), min(rows, cols)
    a = jax.random.normal(key, (n, m), jnp.float32)
    q, r = jnp.linalg.qr(a)
    q = q * jnp.sign(jnp.diag(r))[None, :]
    if rows < cols:
        q = q.T
    return (gain * q[:rows, :cols]).reshape(shape)


def make_params(key):
    gain = float(np.sqrt(2.0))  # nn.init.calculate_gain('relu')
    ks = jax.random.split(key, 5)
    # PyTorch-layout weights: conv (O, C, K), linear (out_features, in_features)
    W1 = orthogonal_init(ks[0], (C1, INPUT_CHANNELS, K1), gain)
    W2 = orthogonal_init(ks[1], (C2, C1, K2), gain)
    W3 = orthogonal_init(ks[2], (C3, C2, K3), gain)
    WL = orthogonal_init(ks[3], (FEATURE_SIZE, C3 * L3), gain)
    W4 = orthogonal_init(ks[4], (C4, C3, K4), gain)
    torch_params = (W1, W2, W3, WL, W4)

    def conv_w2d(W, pad_in=0, pad_out=0):
        # (O, Cin, K) -> (K, Cin, O); optional zero-pad of Cin / O; -> (K*Cin', O').
        # Row index dk*Cin' + c matches the kernel's lane-concat im2col ordering.
        w = jnp.transpose(W, (2, 1, 0))
        if pad_in or pad_out:
            w = jnp.pad(w, ((0, 0), (0, pad_in), (0, pad_out)))
        return w.reshape(w.shape[0] * w.shape[1], w.shape[2])

    w1 = conv_w2d(W1)                               # (16, 64)
    w2 = conv_w2d(W2)                               # (256, 128)
    w3 = conv_w2d(W3, pad_out=C3P - C3)             # (384, 256): zero-padded out channels
    w4 = conv_w2d(W4, pad_in=C3P - C3)              # (768, 128): zero rows for padded chans

    # torch flattens f5 as (B, 200, 12) -> flat index c*L3 + t; kernel flat index is
    # t*C3P + c, so permute the linear weight to (t, c, F), zero-pad c, and flatten.
    wl = jnp.transpose(WL.reshape(FEATURE_SIZE, C3, L3), (2, 1, 0))
    wl = jnp.pad(wl, ((0, 0), (0, C3P - C3), (0, 0))).reshape(L3 * C3P, FEATURE_SIZE)

    kernel_params = (w1, jnp.zeros((1, C1), jnp.float32),
                     w2, jnp.zeros((1, C2), jnp.float32),
                     w3, jnp.zeros((1, C3P), jnp.float32),
                     wl, jnp.zeros((1, FEATURE_SIZE), jnp.float32),
                     w4, jnp.zeros((1, C4), jnp.float32))
    return torch_params, kernel_params


# ----- pure-JAX reference of the PyTorch forward (NCW), for correctness check -----
def ref_forward(x_ncw, torch_params):
    W1, W2, W3, WL, W4 = torch_params

    def conv1d(h, w):
        return lax.conv_general_dilated(h, w, window_strides=(1,), padding='VALID',
                                        dimension_numbers=('NCH', 'OIH', 'NCH'))

    h = jax.nn.relu(conv1d(x_ncw, W1))
    h = jax.nn.relu(conv1d(h, W2))
    f5 = jax.nn.relu(conv1d(h, W3))                     # (B, 200, 12)
    out = f5.reshape(f5.shape[0], -1) @ WL.T            # biases are zero
    if END_WITH_RELU:
        out = jax.nn.relu(out)
    f5b = jax.nn.relu(conv1d(f5, W4))                   # (B, 128, 10)
    return out, jnp.transpose(f5b, (0, 2, 1))           # permute(0, 2, 1)


if __name__ == "__main__":
    key = jax.random.PRNGKey(0)
    k_x, k_p = jax.random.split(key)
    B = 2
    x = jax.random.normal(k_x, (B, INPUT_CHANNELS, SEQ_LEN), jnp.float32)  # NCW, like PyTorch

    torch_params, kernel_params = make_params(k_p)

    out, f5p = nature_one_cnn_forward(x, kernel_params)
    out = jax.block_until_ready(out)
    f5p = jax.block_until_ready(f5p)

    out_ref, f5p_ref = ref_forward(x, torch_params)
    assert out.shape == (B, FEATURE_SIZE) and f5p.shape == (B, L4, C4)
    np.testing.assert_allclose(np.asarray(out), np.asarray(out_ref), rtol=1e-4, atol=1e-4)
    np.testing.assert_allclose(np.asarray(f5p), np.asarray(f5p_ref), rtol=1e-4, atol=1e-4)

    print("KERNEL_OK")
</pallas_src>

<mosaic_0001>
module attributes {stable_mosaic.version = 11 : i64} {
  func.func @nature_one_cnn_kernel(%arg0: i32, %arg1: memref<2x80xf32, #tpu.memory_space<vmem>>, %arg2: memref<16x64xf32, #tpu.memory_space<vmem>>, %arg3: memref<1x64xf32, #tpu.memory_space<vmem>>, %arg4: memref<256x128xf32, #tpu.memory_space<vmem>>, %arg5: memref<1x128xf32, #tpu.memory_space<vmem>>, %arg6: memref<384x256xf32, #tpu.memory_space<vmem>>, %arg7: memref<1x256xf32, #tpu.memory_space<vmem>>, %arg8: memref<3072x32xf32, #tpu.memory_space<vmem>>, %arg9: memref<1x32xf32, #tpu.memory_space<vmem>>, %arg10: memref<768x128xf32, #tpu.memory_space<vmem>>, %arg11: memref<1x128xf32, #tpu.memory_space<vmem>>, %arg12: memref<2x32xf32, #tpu.memory_space<vmem>>, %arg13: memref<20x128xf32, #tpu.memory_space<vmem>>) attributes {dimension_semantics = [#tpu.dimension_semantics<parallel>], iteration_bounds = array<i64: 1>, scalar_prefetch = 0 : i64, scratch_operands = 0 : i64, tpu.core_type = #tpu.core_type<tc>, window_params = [{transform_indices = @transform_0, window_bounds = array<i64: 2, 80>}, {pipeline_mode = #tpu.pipeline_mode<synchronous>, transform_indices = @transform_1, window_bounds = array<i64: 16, 64>}, {pipeline_mode = #tpu.pipeline_mode<synchronous>, transform_indices = @transform_2, window_bounds = array<i64: 1, 64>}, {pipeline_mode = #tpu.pipeline_mode<synchronous>, transform_indices = @transform_3, window_bounds = array<i64: 256, 128>}, {pipeline_mode = #tpu.pipeline_mode<synchronous>, transform_indices = @transform_4, window_bounds = array<i64: 1, 128>}, {pipeline_mode = #tpu.pipeline_mode<synchronous>, transform_indices = @transform_5, window_bounds = array<i64: 384, 256>}, {pipeline_mode = #tpu.pipeline_mode<synchronous>, transform_indices = @transform_6, window_bounds = array<i64: 1, 256>}, {pipeline_mode = #tpu.pipeline_mode<synchronous>, transform_indices = @transform_7, window_bounds = array<i64: 3072, 32>}, {pipeline_mode = #tpu.pipeline_mode<synchronous>, transform_indices = @transform_8, window_bounds = array<i64: 1, 32>}, {pipeline_mode = #tpu.pipeline_mode<synchronous>, transform_indices = @transform_9, window_bounds = array<i64: 768, 128>}, {pipeline_mode = #tpu.pipeline_mode<synchronous>, transform_indices = @transform_10, window_bounds = array<i64: 1, 128>}, {transform_indices = @transform_11, window_bounds = array<i64: 2, 32>}, {transform_indices = @transform_12, window_bounds = array<i64: 20, 128>}]} {
    %c0 = arith.constant 0 : index
    %c0_0 = arith.constant 0 : index
    %0 = vector.load %arg1[%c0, %c0_0] : memref<2x80xf32, #tpu.memory_space<vmem>>, vector<2x80xf32>
    %1 = vector.shape_cast %0 : vector<2x80xf32> to vector<2x20x4xf32>
    %2 = vector.extract_strided_slice %1 {offsets = [0, 0, 0], sizes = [2, 17, 4], strides = [1, 1, 1]} : vector<2x20x4xf32> to vector<2x17x4xf32>
    %3 = vector.extract_strided_slice %1 {offsets = [0, 1, 0], sizes = [2, 17, 4], strides = [1, 1, 1]} : vector<2x20x4xf32> to vector<2x17x4xf32>
    %4 = vector.extract_strided_slice %1 {offsets = [0, 2, 0], sizes = [2, 17, 4], strides = [1, 1, 1]} : vector<2x20x4xf32> to vector<2x17x4xf32>
    %5 = vector.extract_strided_slice %1 {offsets = [0, 3, 0], sizes = [2, 17, 4], strides = [1, 1, 1]} : vector<2x20x4xf32> to vector<2x17x4xf32>
    %6 = tpu.concatenate %2, %3, %4, %5 in 2 : vector<2x17x4xf32>, vector<2x17x4xf32>, vector<2x17x4xf32>, vector<2x17x4xf32> -> vector<2x17x16xf32>
    %7 = vector.shape_cast %6 : vector<2x17x16xf32> to vector<34x16xf32>
    %c0_1 = arith.constant 0 : index
    %c0_2 = arith.constant 0 : index
    %8 = vector.load %arg2[%c0_1, %c0_2] : memref<16x64xf32, #tpu.memory_space<vmem>>, vector<16x64xf32>
    %cst = arith.constant dense<0.000000e+00> : vector<34x64xf32>
    %9 = tpu.matmul %7, %8, %cst {dimension_numbers = #tpu.dot_dimension_numbers<[1], [0], [0], [1], [0, 0, 1, 1], [], []>} : vector<34x16xf32>, vector<16x64xf32>, vector<34x64xf32> -> vector<34x64xf32>
    %c0_3 = arith.constant 0 : index
    %c0_4 = arith.constant 0 : index
    %10 = vector.load %arg3[%c0_3, %c0_4] : memref<1x64xf32, #tpu.memory_space<vmem>>, vector<1x64xf32>
    %11 = vector.broadcast %10 : vector<1x64xf32> to vector<34x64xf32>
    %12 = arith.addf %9, %11 : vector<34x64xf32>
    %cst_5 = arith.constant 0.000000e+00 : f32
    %13 = vector.broadcast %cst_5 : f32 to vector<34x64xf32>
    %14 = arith.maximumf %12, %13 : vector<34x64xf32>
    %15 = vector.shape_cast %14 : vector<34x64xf32> to vector<2x17x64xf32>
    %16 = vector.extract_strided_slice %15 {offsets = [0, 0, 0], sizes = [2, 14, 64], strides = [1, 1, 1]} : vector<2x17x64xf32> to vector<2x14x64xf32>
    %17 = vector.extract_strided_slice %15 {offsets = [0, 1, 0], sizes = [2, 14, 64], strides = [1, 1, 1]} : vector<2x17x64xf32> to vector<2x14x64xf32>
    %18 = vector.extract_strided_slice %15 {offsets = [0, 2, 0], sizes = [2, 14, 64], strides = [1, 1, 1]} : vector<2x17x64xf32> to vector<2x14x64xf32>
    %19 = vector.extract_strided_slice %15 {offsets = [0, 3, 0], sizes = [2, 14, 64], strides = [1, 1, 1]} : vector<2x17x64xf32> to vector<2x14x64xf32>
    %20 = tpu.concatenate %16, %17, %18, %19 in 2 : vector<2x14x64xf32>, vector<2x14x64xf32>, vector<2x14x64xf32>, vector<2x14x64xf32> -> vector<2x14x256xf32>
    %21 = vector.shape_cast %20 : vector<2x14x256xf32> to vector<28x256xf32>
    %c0_6 = arith.constant 0 : index
    %c0_7 = arith.constant 0 : index
    %22 = vector.load %arg4[%c0_6, %c0_7] : memref<256x128xf32, #tpu.memory_space<vmem>>, vector<256x128xf32>
    %cst_8 = arith.constant dense<0.000000e+00> : vector<28x128xf32>
    %23 = tpu.matmul %21, %22, %cst_8 {dimension_numbers = #tpu.dot_dimension_numbers<[1], [0], [0], [1], [0, 0, 1, 1], [], []>} : vector<28x256xf32>, vector<256x128xf32>, vector<28x128xf32> -> vector<28x128xf32>
    %c0_9 = arith.constant 0 : index
    %c0_10 = arith.constant 0 : index
    %24 = vector.load %arg5[%c0_9, %c0_10] : memref<1x128xf32, #tpu.memory_space<vmem>>, vector<1x128xf32>
    %25 = vector.broadcast %24 : vector<1x128xf32> to vector<28x128xf32>
    %26 = arith.addf %23, %25 : vector<28x128xf32>
    %cst_11 = arith.constant 0.000000e+00 : f32
    %27 = vector.broadcast %cst_11 : f32 to vector<28x128xf32>
    %28 = arith.maximumf %26, %27 : vector<28x128xf32>
    %29 = vector.shape_cast %28 : vector<28x128xf32> to vector<2x14x128xf32>
    %30 = vector.extract_strided_slice %29 {offsets = [0, 0, 0], sizes = [2, 12, 128], strides = [1, 1, 1]} : vector<2x14x128xf32> to vector<2x12x128xf32>
    %31 = vector.extract_strided_slice %29 {offsets = [0, 1, 0], sizes = [2, 12, 128], strides = [1, 1, 1]} : vector<2x14x128xf32> to vector<2x12x128xf32>
    %32 = vector.extract_strided_slice %29 {offsets = [0, 2, 0], sizes = [2, 12, 128], strides = [1, 1, 1]} : vector<2x14x128xf32> to vector<2x12x128xf32>
    %33 = tpu.concatenate %30, %31, %32 in 2 : vector<2x12x128xf32>, vector<2x12x128xf32>, vector<2x12x128xf32> -> vector<2x12x384xf32>
    %34 = vector.shape_cast %33 : vector<2x12x384xf32> to vector<24x384xf32>
    %c0_12 = arith.constant 0 : index
    %c0_13 = arith.constant 0 : index
    %35 = vector.load %arg6[%c0_12, %c0_13] : memref<384x256xf32, #tpu.memory_space<vmem>>, vector<384x256xf32>
    %cst_14 = arith.constant dense<0.000000e+00> : vector<24x256xf32>
    %36 = tpu.matmul %34, %35, %cst_14 {dimension_numbers = #tpu.dot_dimension_numbers<[1], [0], [0], [1], [0, 0, 1, 1], [], []>} : vector<24x384xf32>, vector<384x256xf32>, vector<24x256xf32> -> vector<24x256xf32>
    %c0_15 = arith.constant 0 : index
    %c0_16 = arith.constant 0 : index
    %37 = vector.load %arg7[%c0_15, %c0_16] : memref<1x256xf32, #tpu.memory_space<vmem>>, vector<1x256xf32>
    %38 = vector.broadcast %37 : vector<1x256xf32> to vector<24x256xf32>
    %39 = arith.addf %36, %38 : vector<24x256xf32>
    %cst_17 = arith.constant 0.000000e+00 : f32
    %40 = vector.broadcast %cst_17 : f32 to vector<24x256xf32>
    %41 = arith.maximumf %39, %40 : vector<24x256xf32>
    %42 = vector.shape_cast %41 : vector<24x256xf32> to vector<2x12x256xf32>
    %43 = vector.shape_cast %41 : vector<24x256xf32> to vector<2x3072xf32>
    %c0_18 = arith.constant 0 : index
    %c0_19 = arith.constant 0 : index
    %44 = vector.load %arg8[%c0_18, %c0_19] : memref<3072x32xf32, #tpu.memory_space<vmem>>, vector<3072x32xf32>
    %cst_20 = arith.constant dense<0.000000e+00> : vector<2x32xf32>
    %45 = tpu.matmul %43, %44, %cst_20 {dimension_numbers = #tpu.dot_dimension_numbers<[1], [0], [0], [1], [0, 0, 1, 1], [], []>} : vector<2x3072xf32>, vector<3072x32xf32>, vector<2x32xf32> -> vector<2x32xf32>
    %c0_21 = arith.constant 0 : index
    %c0_22 = arith.constant 0 : index
    %46 = vector.load %arg9[%c0_21, %c0_22] : memref<1x32xf32, #tpu.memory_space<vmem>>, vector<1x32xf32>
    %47 = vector.broadcast %46 : vector<1x32xf32> to vector<2x32xf32>
    %48 = arith.addf %45, %47 : vector<2x32xf32>
    %c0_23 = arith.constant 0 : index
    %c0_24 = arith.constant 0 : index
    %49 = vector.load %arg12[%c0_23, %c0_24] : memref<2x32xf32, #tpu.memory_space<vmem>>, vector<2x32xf32>
    tpu.vector_store %arg12[%c0_23, %c0_24], %48 {strides = array<i32>} : memref<2x32xf32, #tpu.memory_space<vmem>>, vector<2x32xf32>,
    %50 = vector.extract_strided_slice %42 {offsets = [0, 0, 0], sizes = [2, 10, 256], strides = [1, 1, 1]} : vector<2x12x256xf32> to vector<2x10x256xf32>
    %51 = vector.extract_strided_slice %42 {offsets = [0, 1, 0], sizes = [2, 10, 256], strides = [1, 1, 1]} : vector<2x12x256xf32> to vector<2x10x256xf32>
    %52 = vector.extract_strided_slice %42 {offsets = [0, 2, 0], sizes = [2, 10, 256], strides = [1, 1, 1]} : vector<2x12x256xf32> to vector<2x10x256xf32>
    %53 = tpu.concatenate %50, %51, %52 in 2 : vector<2x10x256xf32>, vector<2x10x256xf32>, vector<2x10x256xf32> -> vector<2x10x768xf32>
    %54 = vector.shape_cast %53 : vector<2x10x768xf32> to vector<20x768xf32>
    %c0_25 = arith.constant 0 : index
    %c0_26 = arith.constant 0 : index
    %55 = vector.load %arg10[%c0_25, %c0_26] : memref<768x128xf32, #tpu.memory_space<vmem>>, vector<768x128xf32>
    %cst_27 = arith.constant dense<0.000000e+00> : vector<20x128xf32>
    %56 = tpu.matmul %54, %55, %cst_27 {dimension_numbers = #tpu.dot_dimension_numbers<[1], [0], [0], [1], [0, 0, 1, 1], [], []>} : vector<20x768xf32>, vector<768x128xf32>, vector<20x128xf32> -> vector<20x128xf32>
    %c0_28 = arith.constant 0 : index
    %c0_29 = arith.constant 0 : index
    %57 = vector.load %arg11[%c0_28, %c0_29] : memref<1x128xf32, #tpu.memory_space<vmem>>, vector<1x128xf32>
    %58 = vector.broadcast %57 : vector<1x128xf32> to vector<20x128xf32>
    %59 = arith.addf %56, %58 : vector<20x128xf32>
    %cst_30 = arith.constant 0.000000e+00 : f32
    %60 = vector.broadcast %cst_30 : f32 to vector<20x128xf32>
    %61 = arith.maximumf %59, %60 : vector<20x128xf32>
    %c0_31 = arith.constant 0 : index
    %c0_32 = arith.constant 0 : index
    %62 = vector.load %arg13[%c0_31, %c0_32] : memref<20x128xf32, #tpu.memory_space<vmem>>, vector<20x128xf32>
    tpu.vector_store %arg13[%c0_31, %c0_32], %61 {strides = array<i32>} : memref<20x128xf32, #tpu.memory_space<vmem>>, vector<20x128xf32>,
    return
  }
  func.func @transform_0(%arg0: i32) -> (i32, i32) {
    %c0_i32 = arith.constant 0 : i32
    %c0_i32_0 = arith.constant 0 : i32
    return %arg0, %c0_i32 : i32, i32
  }
  func.func @transform_1(%arg0: i32) -> (i32, i32) {
    %c0_i32 = arith.constant 0 : i32
    %c0_i32_0 = arith.constant 0 : i32
    %c0_i32_1 = arith.constant 0 : i32
    return %c0_i32, %c0_i32_0 : i32, i32
  }
  func.func @transform_2(%arg0: i32) -> (i32, i32) {
    %c0_i32 = arith.constant 0 : i32
    %c0_i32_0 = arith.constant 0 : i32
    %c0_i32_1 = arith.constant 0 : i32
    return %c0_i32, %c0_i32_0 : i32, i32
  }
  func.func @transform_3(%arg0: i32) -> (i32, i32) {
    %c0_i32 = arith.constant 0 : i32
    %c0_i32_0 = arith.constant 0 : i32
    %c0_i32_1 = arith.constant 0 : i32
    return %c0_i32, %c0_i32_0 : i32, i32
  }
  func.func @transform_4(%arg0: i32) -> (i32, i32) {
    %c0_i32 = arith.constant 0 : i32
    %c0_i32_0 = arith.constant 0 : i32
    %c0_i32_1 = arith.constant 0 : i32
    return %c0_i32, %c0_i32_0 : i32, i32
  }
  func.func @transform_5(%arg0: i32) -> (i32, i32) {
    %c0_i32 = arith.constant 0 : i32
    %c0_i32_0 = arith.constant 0 : i32
    %c0_i32_1 = arith.constant 0 : i32
    return %c0_i32, %c0_i32_0 : i32, i32
  }
  func.func @transform_6(%arg0: i32) -> (i32, i32) {
    %c0_i32 = arith.constant 0 : i32
    %c0_i32_0 = arith.constant 0 : i32
    %c0_i32_1 = arith.constant 0 : i32
    return %c0_i32, %c0_i32_0 : i32, i32
  }
  func.func @transform_7(%arg0: i32) -> (i32, i32) {
    %c0_i32 = arith.constant 0 : i32
    %c0_i32_0 = arith.constant 0 : i32
    %c0_i32_1 = arith.constant 0 : i32
    return %c0_i32, %c0_i32_0 : i32, i32
  }
  func.func @transform_8(%arg0: i32) -> (i32, i32) {
    %c0_i32 = arith.constant 0 : i32
    %c0_i32_0 = arith.constant 0 : i32
    %c0_i32_1 = arith.constant 0 : i32
    return %c0_i32, %c0_i32_0 : i32, i32
  }
  func.func @transform_9(%arg0: i32) -> (i32, i32) {
    %c0_i32 = arith.constant 0 : i32
    %c0_i32_0 = arith.constant 0 : i32
    %c0_i32_1 = arith.constant 0 : i32
    return %c0_i32, %c0_i32_0 : i32, i32
  }
  func.func @transform_10(%arg0: i32) -> (i32, i32) {
    %c0_i32 = arith.constant 0 : i32
    %c0_i32_0 = arith.constant 0 : i32
    %c0_i32_1 = arith.constant 0 : i32
    return %c0_i32, %c0_i32_0 : i32, i32
  }
  func.func @transform_11(%arg0: i32) -> (i32, i32) {
    %c0_i32 = arith.constant 0 : i32
    %c0_i32_0 = arith.constant 0 : i32
    return %arg0, %c0_i32 : i32, i32
  }
  func.func @transform_12(%arg0: i32) -> (i32, i32) {
    %c0_i32 = arith.constant 0 : i32
    %c0_i32_0 = arith.constant 0 : i32
    return %arg0, %c0_i32 : i32, i32
  }
}

</mosaic_0001>

<bundles_post_ra>
// kernel: tpu_custom_call.1
= control target key start
LH: loop header
LB: loop body
LE: loop exit
PB: predicated region body
PF: predicated region fallthrough
CT: control target
= control target key end

     0   :  { %18 = vsyncpa [#allocation3], 0  ;;  %s7871_s0 = inlined_call_operand.hbm [shape: f32[2,80], index: 0, kind: input, shape index: {}]   ;;  %s7872_s1 = inlined_call_operand.hbm [shape: f32[16,64], index: 1, kind: input, shape index: {}]   ;;  %s7873_s2 = inlined_call_operand.hbm [shape: f32[1,64], index: 2, kind: input, shape index: {}]   ;;  %s7874_s3 = inlined_call_operand.hbm [shape: f32[256,128], index: 3, kind: input, shape index: {}]   ;;  %s7875_s4 = inlined_call_operand.hbm [shape: f32[1,128], index: 4, kind: input, shape index: {}]   ;;  %s7876_s5 = inlined_call_operand.hbm [shape: f32[384,256], index: 5, kind: input, shape index: {}]   ;;  %s7877_s6 = inlined_call_operand.hbm [shape: f32[1,256], index: 6, kind: input, shape index: {}]   ;;  %s7878_s7 = inlined_call_operand.hbm [shape: f32[3072,32], index: 7, kind: input, shape index: {}]   ;;  %s7879_s8 = inlined_call_operand.hbm [shape: f32[1,32], index: 8, kind: input, shape index: {}]   ;;  %s7880_s9 = inlined_call_operand.hbm [shape: f32[768,128], index: 9, kind: input, shape index: {}]   ;;  %s7881_s10 = inlined_call_operand.hbm [shape: f32[1,128], index: 10, kind: input, shape index: {}]   ;;  %s7882_s11 = inlined_call_operand.hbm [shape: f32[2,32], index: 11, kind: output, shape index: {0}]   ;;  %s7883_s12 = inlined_call_operand.hbm [shape: f32[20,128], index: 12, kind: output, shape index: {1}]  }
   0x1   :  { %19 = vsyncpa [#allocation6], 0 }
   0x2   :  { %20 = vsyncpa [#allocation9], 0 }
   0x3   :  { %21 = vsyncpa [#allocation12], 0 }
   0x4   :  { %22 = vsyncpa [#allocation15], 0 }
   0x5   :  { %23 = vsyncpa [#allocation18], 0 }
   0x6   :  { %24 = vsyncpa [#allocation4], 0 }
   0x7   :  { %25 = vsyncpa [#allocation22], 0  ;;  %s6430_s21 = smov [#allocation5]   ;;  %s6128_s25 = scalar_lea.hbm %s7872_s1, 256 }
   0x8   :  { %s41_s22 = sshll.u32 %s6430_s21, 4  ;;  %p6129_p0 = scmp.ne.s32.totalorder %s7872_s1, %s6128_s25  ;;  %s42_s22 = int_to_ptr.vmem [resolvable:$true] %s41_s22 }
   0x9   :  { %p6132_p1 = scmp.lt.u32.totalorder %s6128_s25, %s7872_s1 }
   0xb   :  { %p6134_p2 = pnand %p6132_p1, %p6129_p0 }
   0xd   :  { %6137 = shalt.err (!%p6134_p2)
}
   0xe   :  { %s6138_s30 = scalar_lea.vmem %s42_s22, 256  ;;  %p6143_p4 = scmp.lt.s32.totalorder %s42_s22, %s42_s22 }
   0xf   :  { %p6139_p3 = scmp.ne.s32.totalorder %s42_s22, %s6138_s30  ;;  %p6144_p5 = scmp.lt.s32.totalorder %s6138_s30, %s6138_s30 }
  0x11   :  { %p6145_p6 = por %p6144_p5, %p6143_p4 }
  0x13   :  { %p6146_p7 = pnand %p6145_p6, %p6139_p3 }
  0x15   :  { %6149 = shalt.err (!%p6146_p7)
}
  0x16   :  { %s6431_s13 = smov 128   ;;  %s6432_s14 = smov 8  }
  0x17   :  { %47 = dma.hbm_to_vmem [thread:$0]  %s7872_s1, 256, %s42_s22, [#allocation6], %s6431_s13, %s6431_s13, %s6432_s14  }
  0x18   :  { %s6433_s17 = smov [#allocation8]   ;;  %s6434_s19 = smov [#allocation11]  }
  0x19   :  { %s63_s18 = sshll.u32 %s6433_s17, 4  ;;  %s85_s20 = sshll.u32 %s6434_s19, 4  ;;  %s64_s18 = int_to_ptr.vmem [resolvable:$true] %s63_s18  ;;  %s86_s20 = int_to_ptr.vmem [resolvable:$true] %s85_s20 }
  0x1a   :  { %s6150_s24 = scalar_lea.hbm %s7874_s3, 4096 }
  0x1b   :  { %p6151_p8 = scmp.ne.s32.totalorder %s7874_s3, %s6150_s24  ;;  %p6154_p9 = scmp.lt.u32.totalorder %s6150_s24, %s7874_s3 }
  0x1d   :  { %p6156_p10 = pnand %p6154_p9, %p6151_p8 }
  0x1f   :  { %6159 = shalt.err (!%p6156_p10)
}
  0x20   :  { %s6160_s1 = scalar_lea.vmem %s64_s18, 4096  ;;  %p6165_p12 = scmp.lt.s32.totalorder %s64_s18, %s64_s18 }
  0x21   :  { %p6161_p11 = scmp.ne.s32.totalorder %s64_s18, %s6160_s1  ;;  %p6166_p13 = scmp.lt.s32.totalorder %s6160_s1, %s6160_s1 }
  0x23   :  { %p6167_p0 = por %p6166_p13, %p6165_p12 }
  0x25   :  { %p6168_p1 = pnand %p6167_p0, %p6161_p11 }
  0x27   :  { %6171 = shalt.err (!%p6168_p1)
}
  0x28   :  { %69 = dma.hbm_to_vmem [thread:$0]  %s7874_s3, 4096, %s64_s18, [#allocation9], %s6431_s13, %s6431_s13, %s6432_s14  }
  0x29   :  { %s6172_s16 = scalar_lea.hbm %s7876_s5, 12288 }
  0x2a   :  { %p6173_p2 = scmp.ne.s32.totalorder %s7876_s5, %s6172_s16  ;;  %p6176_p3 = scmp.lt.u32.totalorder %s6172_s16, %s7876_s5 }
  0x2c   :  { %p6178_p4 = pnand %p6176_p3, %p6173_p2 }
  0x2e   :  { %6181 = shalt.err (!%p6178_p4)
}
  0x2f   :  { %s6182_s24 = scalar_lea.vmem %s86_s20, 12288  ;;  %p6187_p6 = scmp.lt.s32.totalorder %s86_s20, %s86_s20 }
  0x30   :  { %p6183_p5 = scmp.ne.s32.totalorder %s86_s20, %s6182_s24  ;;  %p6188_p7 = scmp.lt.s32.totalorder %s6182_s24, %s6182_s24 }
  0x32   :  { %p6189_p8 = por %p6188_p7, %p6187_p6 }
  0x34   :  { %p6190_p9 = pnand %p6189_p8, %p6183_p5 }
  0x36   :  { %6193 = shalt.err (!%p6190_p9)
}
  0x37   :  { %s6435_s3 = smov 256   ;;  %s6436_s18 = smov 16  }
  0x38   :  { %91 = dma.hbm_to_vmem [thread:$0]  %s7876_s5, 12288, %s86_s20, [#allocation12], %s6435_s3, %s6435_s3, %s6436_s18  }
  0x39   :  { %s6437_s27 = smov [#allocation14]   ;;  %s6438_s1 = smov [#allocation17]  }
  0x3a   :  { %s107_s28 = sshll.u32 %s6437_s27, 4  ;;  %s129_s22 = sshll.u32 %s6438_s1, 4  ;;  %s108_s28 = int_to_ptr.vmem [resolvable:$true] %s107_s28  ;;  %s130_s22 = int_to_ptr.vmem [resolvable:$true] %s129_s22 }
  0x3b   :  { %s6194_s15 = scalar_lea.hbm %s7878_s7, 49152 }
  0x3c   :  { %p6195_p10 = scmp.ne.s32.totalorder %s7878_s7, %s6194_s15  ;;  %p6198_p11 = scmp.lt.u32.totalorder %s6194_s15, %s7878_s7 }
  0x3e   :  { %p6200_p12 = pnand %p6198_p11, %p6195_p10 }
  0x40   :  { %6203 = shalt.err (!%p6200_p12)
}
  0x41   :  { %s6204_s5 = scalar_lea.vmem %s108_s28, 49152  ;;  %p6209_p0 = scmp.lt.s32.totalorder %s108_s28, %s108_s28 }
  0x42   :  { %p6205_p13 = scmp.ne.s32.totalorder %s108_s28, %s6204_s5  ;;  %p6210_p1 = scmp.lt.s32.totalorder %s6204_s5, %s6204_s5 }
  0x44   :  { %p6211_p2 = por %p6210_p1, %p6209_p0 }
  0x46   :  { %p6212_p3 = pnand %p6211_p2, %p6205_p13 }
  0x48   :  { %6215 = shalt.err (!%p6212_p3)
}
  0x49   :  { %113 = dma.hbm_to_vmem [thread:$0]  %s7878_s7, 49152, %s108_s28, [#allocation15], %s6431_s13, %s6431_s13, %s6432_s14  }
  0x4a   :  { %s6216_s18 = scalar_lea.hbm %s7880_s9, 12288 }
  0x4b   :  { %p6217_p4 = scmp.ne.s32.totalorder %s7880_s9, %s6216_s18  ;;  %p6220_p5 = scmp.lt.u32.totalorder %s6216_s18, %s7880_s9 }
  0x4d   :  { %p6222_p6 = pnand %p6220_p5, %p6217_p4 }
  0x4f   :  { %6225 = shalt.err (!%p6222_p6)
}
  0x50   :  { %s6226_s29 = scalar_lea.vmem %s130_s22, 12288  ;;  %p6231_p8 = scmp.lt.s32.totalorder %s130_s22, %s130_s22 }
  0x51   :  { %p6227_p7 = scmp.ne.s32.totalorder %s130_s22, %s6226_s29  ;;  %p6232_p9 = scmp.lt.s32.totalorder %s6226_s29, %s6226_s29 }
  0x53   :  { %p6233_p10 = por %p6232_p9, %p6231_p8 }
  0x55   :  { %p6234_p11 = pnand %p6233_p10, %p6227_p7 }
  0x57   :  { %6237 = shalt.err (!%p6234_p11)
}
  0x58   :  { %135 = dma.hbm_to_vmem [thread:$0]  %s7880_s9, 12288, %s130_s22, [#allocation18], %s6431_s13, %s6431_s13, %s6432_s14  }
  0x59   :  { %s6439_s30 = smov [#allocation2]   ;;  %s6440_s16 = smov [#allocation7]  }
  0x5a   :  { %s32_s15 = sshll.u32 %s6439_s30, 4  ;;  %s54_s17 = sshll.u32 %s6440_s16, 4  ;;  %s33_s15 = int_to_ptr.vmem [resolvable:$true] %s32_s15  ;;  %s55_s17 = int_to_ptr.vmem [resolvable:$true] %s54_s17 }
  0x5b   :  { %s6238_s5 = scalar_lea.hbm %s7871_s0, 32 }
  0x5c   :  { %p6239_p12 = scmp.ne.s32.totalorder %s7871_s0, %s6238_s5  ;;  %p6242_p13 = scmp.lt.u32.totalorder %s6238_s5, %s7871_s0 }
  0x5e   :  { %p6244_p0 = pnand %p6242_p13, %p6239_p12 }
  0x60   :  { %6247 = shalt.err (!%p6244_p0)
}
  0x61   :  { %s6248_s9 = scalar_lea.vmem %s33_s15, 32  ;;  %p6253_p2 = scmp.lt.s32.totalorder %s33_s15, %s33_s15 }
  0x62   :  { %p6249_p1 = scmp.ne.s32.totalorder %s33_s15, %s6248_s9  ;;  %p6254_p3 = scmp.lt.s32.totalorder %s6248_s9, %s6248_s9 }
  0x64   :  { %p6255_p4 = por %p6254_p3, %p6253_p2 }
  0x66   :  { %p6256_p5 = pnand %p6255_p4, %p6249_p1 }
  0x68   :  { %6259 = shalt.err (!%p6256_p5)
}
  0x69   :  { %35 = dma.hbm_to_vmem [thread:$0]  %s7871_s0, 32, %s33_s15, [#allocation3]  }
  0x6a   :  { %s6260_s27 = scalar_lea.hbm %s7873_s2, 16 }
  0x6b   :  { %p6261_p6 = scmp.ne.s32.totalorder %s7873_s2, %s6260_s27  ;;  %p6264_p7 = scmp.lt.u32.totalorder %s6260_s27, %s7873_s2 }
  0x6d   :  { %p6266_p8 = pnand %p6264_p7, %p6261_p6 }
  0x6f   :  { %6269 = shalt.err (!%p6266_p8)
}
  0x70   :  { %s6270_s30 = scalar_lea.vmem %s55_s17, 16  ;;  %s6274_s16 = scalar_lea.vmem %s55_s17, 32 }
  0x71   :  { %p6271_p9 = scmp.ne.s32.totalorder %s55_s17, %s6270_s30  ;;  %p6275_p10 = scmp.lt.s32.totalorder %s55_s17, %s55_s17 }
  0x72   :  { %p6276_p11 = scmp.lt.s32.totalorder %s6274_s16, %s6270_s30 }
  0x74   :  { %p6277_p12 = por %p6276_p11, %p6275_p10 }
  0x76   :  { %p6278_p13 = pnand %p6277_p12, %p6271_p9 }
  0x78   :  { %6281 = shalt.err (!%p6278_p13)
}
  0x79   :  { %57 = dma.hbm_to_vmem [thread:$0]  %s7873_s2, 16, %s55_s17, [#allocation6]  }
  0x7a   :  { %s6441_s19 = smov [#allocation10]   ;;  %s6442_s5 = smov [#allocation13]  }
  0x7b   :  { %s76_s21 = sshll.u32 %s6441_s19, 4  ;;  %s98_s20 = sshll.u32 %s6442_s5, 4  ;;  %s77_s21 = int_to_ptr.vmem [resolvable:$true] %s76_s21  ;;  %s99_s20 = int_to_ptr.vmem [resolvable:$true] %s98_s20 }
  0x7c   :  { %s6282_s3 = scalar_lea.hbm %s7875_s4, 16 }
  0x7d   :  { %p6283_p0 = scmp.ne.s32.totalorder %s7875_s4, %s6282_s3  ;;  %p6286_p1 = scmp.lt.u32.totalorder %s6282_s3, %s7875_s4 }
  0x7f   :  { %p6288_p2 = pnand %p6286_p1, %p6283_p0 }
  0x81   :  { %6291 = shalt.err (!%p6288_p2)
}
  0x82   :  { %s6292_s2 = scalar_lea.vmem %s77_s21, 16  ;;  %s6296_s17 = scalar_lea.vmem %s77_s21, 32 }
  0x83   :  { %p6293_p3 = scmp.ne.s32.totalorder %s77_s21, %s6292_s2  ;;  %p6297_p4 = scmp.lt.s32.totalorder %s77_s21, %s77_s21 }
  0x84   :  { %p6298_p5 = scmp.lt.s32.totalorder %s6296_s17, %s6292_s2 }
  0x86   :  { %p6299_p6 = por %p6298_p5, %p6297_p4 }
  0x88   :  { %p6300_p7 = pnand %p6299_p6, %p6293_p3 }
  0x8a   :  { %6303 = shalt.err (!%p6300_p7)
}
  0x8b   :  { %79 = dma.hbm_to_vmem [thread:$0]  %s7875_s4, 16, %s77_s21, [#allocation9]  }
  0x8c   :  { %s6304_s7 = scalar_lea.hbm %s7877_s6, 32 }
  0x8d   :  { %p6305_p8 = scmp.ne.s32.totalorder %s7877_s6, %s6304_s7  ;;  %p6308_p9 = scmp.lt.u32.totalorder %s6304_s7, %s7877_s6 }
  0x8f   :  { %p6310_p10 = pnand %p6308_p9, %p6305_p8 }
  0x91   :  { %6313 = shalt.err (!%p6310_p10)
}
  0x92   :  { %s6314_s15 = scalar_lea.vmem %s99_s20, 32  ;;  %p6319_p12 = scmp.lt.s32.totalorder %s99_s20, %s99_s20 }
  0x93   :  { %p6315_p11 = scmp.ne.s32.totalorder %s99_s20, %s6314_s15  ;;  %p6320_p13 = scmp.lt.s32.totalorder %s6314_s15, %s6314_s15 }
  0x95   :  { %p6321_p0 = por %p6320_p13, %p6319_p12 }
  0x97   :  { %p6322_p1 = pnand %p6321_p0, %p6315_p11 }
  0x99   :  { %6325 = shalt.err (!%p6322_p1)
}
  0x9a   :  { %101 = dma.hbm_to_vmem [thread:$0]  %s7877_s6, 32, %s99_s20, [#allocation12]  }
  0x9b   :  { %s6443_s21 = smov [#allocation16]   ;;  %s6444_s23 = smov [#allocation19]  }
  0x9c   :  { %s120_s5 = sshll.u32 %s6443_s21, 4  ;;  %s142_s24 = sshll.u32 %s6444_s23, 4  ;;  %s121_s5 = int_to_ptr.vmem [resolvable:$true] %s120_s5  ;;  %s143_s24 = int_to_ptr.vmem [resolvable:$true] %s142_s24 }
  0x9d   :  { %s6326_s22 = scalar_lea.hbm %s7879_s8, 16 }
  0x9e   :  { %p6327_p2 = scmp.ne.s32.totalorder %s7879_s8, %s6326_s22  ;;  %p6330_p3 = scmp.lt.u32.totalorder %s6326_s22, %s7879_s8 }
  0xa0   :  { %p6332_p4 = pnand %p6330_p3, %p6327_p2 }
  0xa2   :  { %6335 = shalt.err (!%p6332_p4)
}
  0xa3   :  { %s6336_s6 = scalar_lea.vmem %s121_s5, 16  ;;  %s6340_s20 = scalar_lea.vmem %s121_s5, 32 }
  0xa4   :  { %p6337_p5 = scmp.ne.s32.totalorder %s121_s5, %s6336_s6  ;;  %p6341_p6 = scmp.lt.s32.totalorder %s121_s5, %s121_s5 }
  0xa5   :  { %p6342_p7 = scmp.lt.s32.totalorder %s6340_s20, %s6336_s6 }
  0xa7   :  { %p6343_p8 = por %p6342_p7, %p6341_p6 }
  0xa9   :  { %p6344_p9 = pnand %p6343_p8, %p6337_p5 }
  0xab   :  { %6347 = shalt.err (!%p6344_p9)
}
  0xac   :  { %123 = dma.hbm_to_vmem [thread:$0]  %s7879_s8, 16, %s121_s5, [#allocation15]  }
  0xad   :  { %s6348_s7 = scalar_lea.hbm %s7881_s10, 16 }
  0xae   :  { %p6349_p10 = scmp.ne.s32.totalorder %s7881_s10, %s6348_s7  ;;  %p6352_p11 = scmp.lt.u32.totalorder %s6348_s7, %s7881_s10 }
  0xb0   :  { %p6354_p12 = pnand %p6352_p11, %p6349_p10 }
  0xb2   :  { %6357 = shalt.err (!%p6354_p12)
}
  0xb3   :  { %s6358_s15 = scalar_lea.vmem %s143_s24, 16  ;;  %s6362_s4 = scalar_lea.vmem %s143_s24, 32 }
  0xb4   :  { %p6359_p13 = scmp.ne.s32.totalorder %s143_s24, %s6358_s15  ;;  %p6363_p0 = scmp.lt.s32.totalorder %s143_s24, %s143_s24 }
  0xb5   :  { %p6364_p1 = scmp.lt.s32.totalorder %s6362_s4, %s6358_s15 }
  0xb7   :  { %p6365_p2 = por %p6364_p1, %p6363_p0 }
  0xb9   :  { %p6366_p3 = pnand %p6365_p2, %p6359_p13 }
  0xbb   :  { %6369 = shalt.err (!%p6366_p3)
}
  0xbc   :  { %145 = dma.hbm_to_vmem [thread:$0]  %s7881_s10, 16, %s143_s24, [#allocation18]  }
  0xbd   :  { %6414 = dma.done.wait [#allocation3], 32  }
  0xbe   :  { %6415 = vsyncadd [#allocation3], 4294967264 }
  0xbf   :  { %6416 = dma.done.wait [#allocation6], 272  }
  0xc0   :  { %6417 = vsyncadd [#allocation6], 4294967024 }
  0xc1   :  { %6418 = dma.done.wait [#allocation9], 4112  }
  0xc2   :  { %6419 = vsyncadd [#allocation9], 4294963184 }
  0xc3   :  { %6420 = dma.done.wait [#allocation12], 12320  }
  0xc4   :  { %6421 = vsyncadd [#allocation12], 4294954976 }
  0xc5   :  { %6422 = dma.done.wait [#allocation15], 49168  }
  0xc6   :  { %6423 = vsyncadd [#allocation15], 4294918128 }
  0xc7   :  { %6424 = dma.done.wait [#allocation18], 12304  }
  0xc8   :  { %6425 = vsyncadd [#allocation18], 4294954992  ;;  %v6684_v0 = vld [vmem:[#allocation2] sm:$0x3]  ;;  %s6445_s21 = smov 116   ;;  %s6446_s5 = smov 124   ;;  %v242_v11 = vlaneseq }
  0xc9   :  { %187 = vrot.lane.b32.xlu1 %v6684_v0, %s6445_s21  ;;  %181 = vrot.lane.b32.xlu0 %v6684_v0, %s6446_s5  ;;  %s6447_s10 = smov 112   ;;  %s6448_s23 = smov 120   ;;  %v6464_v9 = vmov 1983009808   ;;  %v6465_v20 = vmov 1934713408  }
  0xca   :  { %s6449_s24 = smov 104   ;;  %s6450_s3 = smov 108   ;;  %v240_v10 = vunpack.c.l.s4 %v6464_v9  ;;  %v6706_v15 = vshrl.u32 %v242_v11, 7  ;;  %v272_v21 = vunpack.c.l.s4 %v6465_v20  ;;  %vm369_vm0 = vcmask 1046528   ;;  %v707_v20 = vld [vmem:[#allocation5] sm:$0xff] }
  0xcb   :  { %s6451_s9 = smov 96   ;;  %s6452_s22 = smov 100   ;;  %vm427_vm1 = vcmask 1044480   ;;  %vm398_vm2 = vcmask 1045504   ;;  %vm6470_vm3 = vmmov 0   ;;  %vm456_vm4 = vcmask 31744  }
  0xcc   :  { %s6453_s18 = smov 88   ;;  %s6454_s25 = smov 92   ;;  %v241_v14 = vunpack.c.0.s8 %v240_v10  ;;  %v273_v29 = vunpack.c.0.s8 %v272_v21  ;;  %v708_v21 = vld [vmem:[#allocation5 + $0x8] sm:$0xff]  ;;  %vm463_vm5 = vcmask 64512   ;;  %vm470_vm6 = vcmask 97280  }
  0xcd   :  { %190 = vrot.lane.b32.xlu1 %v6684_v0, %s6447_s10  ;;  %184 = vrot.lane.b32.xlu0 %v6684_v0, %s6448_s23  ;;  %s6455_s2 = smov 80   ;;  %s6456_s17 = smov 84   ;;  %vm927_vm7 = vcmask 130048   ;;  %vm1808_vm8 = vcmask 523264   ;;  %vm4056_vm9 = vcmask 254976  }
  0xce   :  { %s6457_s6 = smov 72   ;;  %s6458_s20 = smov 76   ;;  %v6709_v19 = vsub.s32 %v241_v14, %v6706_v15  ;;  %v276_v39 = vsub.s32 %v273_v29, %v6706_v15 }
  0xcf   :  { %s6459_s26 = smov 64   ;;  %s6460_s27 = smov 68  }
  0xd0   :  { %s6461_s1 = smov 56   ;;  %s6462_s29 = smov 60  }
  0xd1   :  { %196 = vrot.lane.b32.xlu1 %v6684_v0, %s6449_s24  ;;  %193 = vrot.lane.b32.xlu0 %v6684_v0, %s6450_s3  ;;  %s6463_s7 = smov 52   ;;  %s6466_s28 = smov 4  }
  0xd2   :  { %s6467_s30 = smov 12   ;;  %s6473_s16 = smov [#allocation20]  }
  0xd3   :  { %s4754_s0 = sshll.u32 %s6473_s16, 4  ;;  %s4755_s0 = int_to_ptr.vmem [resolvable:$true] %s4754_s0 }
  0xd4   :  { %s6370_s15 = scalar_lea.vmem %s4755_s0, 32  ;;  %p6375_p5 = scmp.lt.s32.totalorder %s4755_s0, %s4755_s0 }
  0xd5   :  { %202 = vrot.lane.b32.xlu1 %v6684_v0, %s6451_s9  ;;  %199 = vrot.lane.b32.xlu0 %v6684_v0, %s6452_s22  ;;  %p6371_p4 = scmp.ne.s32.totalorder %s4755_s0, %s6370_s15  ;;  %p6376_p6 = scmp.lt.s32.totalorder %s6370_s15, %s6370_s15 }
  0xd7   :  { %p6377_p7 = por %p6376_p6, %p6375_p5 }
  0xd9   :  { %208 = vrot.lane.b32.xlu1 %v6684_v0, %s6453_s18  ;;  %205 = vrot.lane.b32.xlu0 %v6684_v0, %s6454_s25  ;;  %p6378_p8 = pnand %p6377_p7, %p6371_p4 }
  0xdd   :  { %214 = vrot.lane.b32.xlu1 %v6684_v0, %s6455_s2  ;;  %211 = vrot.lane.b32.xlu0 %v6684_v0, %s6456_s17 }
  0xe1   :  { %220 = vrot.lane.b32.xlu1 %v6684_v0, %s6457_s6  ;;  %217 = vrot.lane.b32.xlu0 %v6684_v0, %s6458_s20 }
  0xe5   :  { %226 = vrot.lane.b32.xlu1 %v6684_v0, %s6459_s26  ;;  %223 = vrot.lane.b32.xlu0 %v6684_v0, %s6460_s27 }
  0xe9   :  { %232 = vrot.lane.b32.xlu1 %v6684_v0, %s6461_s1  ;;  %229 = vrot.lane.b32.xlu0 %v6684_v0, %s6462_s29 }
  0xed   :  { %235 = vrot.lane.b32.xlu0 %v6684_v0, %s6463_s7 }
 0x13b   :  { %v188_v1 = vpop.permute.xlu1 %187  ;;  %v182_v2 = vpop.permute.xlu0 %181 }
 0x13c   :  { %v246_v24 = vcombine.low %v182_v2, %v188_v1 }
 0x13e   :  { %v253_v33 = vrot.slane %v246_v24, %v6709_v19  ;;  %v5445_v24 = vpack.c.bf16 %v708_v21, %v707_v20 }
 0x13f   :  { %v191_v3 = vpop.permute.xlu1 %190  ;;  %v185_v4 = vpop.permute.xlu0 %184 }
 0x140   :  { %v238_v22 = vcombine.low %v6684_v0, %v185_v4 }
 0x142   :  { %v245_v30 = vrot.slane %v238_v22, %v6709_v19 }
 0x143   :  { %v197_v5 = vpop.permute.xlu1 %196  ;;  %v194_v6 = vpop.permute.xlu0 %193 }
 0x144   :  { %v254_v23 = vcombine.low %v191_v3, %v197_v5  ;;  %v270_v40 = vcombine.low %v245_v30, %v253_v33 }
 0x146   :  { %v261_v31 = vrot.slane %v254_v23, %v6709_v19  ;;  %v277_v49 = vrot.slane %v270_v40, %v276_v39 }
 0x147   :  { %v203_v7 = vpop.permute.xlu1 %202  ;;  %v200_v8 = vpop.permute.xlu0 %199 }
 0x148   :  { %v262_v16 = vcombine.low %v194_v6, %v200_v8 }
 0x14a   :  { %v269_v25 = vrot.slane %v262_v16, %v6709_v19 }
 0x14b   :  { %v209_v12 = vpop.permute.xlu1 %208  ;;  %v206_v13 = vpop.permute.xlu0 %205 }
 0x14c   :  { %v288_v32 = vcombine.low %v203_v7, %v209_v12  ;;  %v278_v34 = vcombine.low %v261_v31, %v269_v25 }
 0x14e   :  { %v295_v41 = vrot.slane %v288_v32, %v6709_v19  ;;  %v285_v43 = vrot.slane %v278_v34, %v276_v39 }
 0x14f   :  { %v215_v17 = vpop.permute.xlu1 %214  ;;  %v212_v18 = vpop.permute.xlu0 %211 }
 0x150   :  { %v296_v26 = vcombine.low %v206_v13, %v212_v18  ;;  %v6721_v51 = vcombine.low %v277_v49, %v285_v43  ;;  %v6742_v8 = vcombine.high %v277_v49, %v285_v43 }
 0x152   :  { %v303_v35 = vrot.slane %v296_v26, %v6709_v19  ;;  %v370_v60 = vrot.slane %v6721_v51, 1  ;;  %v428_v2 = vrot.slane %v6721_v51, 3  ;;  %v399_v9 = vrot.slane %v6721_v51, 2 }
 0x153   :  { %v221_v27 = vpop.permute.xlu1 %220  ;;  %v218_v28 = vpop.permute.xlu0 %217  ;;  %v375_v13 = vrot.slane %v6742_v8, 1  ;;  %v433_v25 = vrot.slane %v6742_v8, 3  ;;  %v6469_v26 = vmov 0.0|0.0   ;;  %v404_v31 = vrot.slane %v6742_v8, 2 }
 0x154   :  { %v304_v36 = vcombine.low %v215_v17, %v221_v27  ;;  %v320_v44 = vcombine.low %v295_v41, %v303_v35  ;;  %v6468_v17 = vmov 0.0   ;;  %5444 = vmatprep.subr.bf16.mxu0 %v6469_v26 }
 0x155   :  { %5446 = vmatpush3.bf16.msra.mxu0 %v5445_v24  ;;  %5429 = vmatprep.mubr.msk.f32.mxu0 %vm6470_vm3, %v6468_v17 }
 0x156   :  { %v311_v45 = vrot.slane %v304_v36, %v6709_v19  ;;  %v327_v52 = vrot.slane %v320_v44, %v276_v39 }
 0x157   :  { %v227_v37 = vpop.permute.xlu1 %226  ;;  %v224_v38 = vpop.permute.xlu0 %223 }
 0x158   :  { %v312_v42 = vcombine.low %v218_v28, %v224_v38  ;;  %v6471_v38 = vmov 1966171168  }
 0x15a   :  { %v319_v46 = vrot.slane %v312_v42, %v6709_v19 }
 0x15b   :  { %v233_v47 = vpop.permute.xlu1 %232  ;;  %v230_v48 = vpop.permute.xlu0 %229 }
 0x15c   :  { %v328_v50 = vcombine.low %v311_v45, %v319_v46  ;;  %v338_v54 = vcombine.low %v227_v37, %v233_v47 }
 0x15e   :  { %v335_v53 = vrot.slane %v328_v50, %v276_v39  ;;  %v345_v58 = vrot.slane %v338_v54, %v6709_v19 }
 0x15f   :  { %v236_v55 = vpop.permute.xlu0 %235 }
 0x160   :  { %v6723_v56 = vcombine.low %v327_v52, %v335_v53  ;;  %v346_v57 = vcombine.low %v230_v48, %v236_v55  ;;  %v6735_v3 = vcombine.high %v327_v52, %v335_v53 }
 0x162   :  { %v353_v59 = vrot.slane %v346_v57, %v6709_v19  ;;  %v371_v61 = vrot.slane %v6723_v56, 1  ;;  %v429_v0 = vrot.slane %v6723_v56, 3  ;;  %v400_v7 = vrot.slane %v6723_v56, 2 }
 0x163   :  { %v376_v11 = vrot.slane %v6735_v3, 1  ;;  %v434_v16 = vrot.slane %v6735_v3, 3  ;;  %v405_v30 = vrot.slane %v6735_v3, 2 }
 0x164   :  { %v354_v62 = vcombine.low %v345_v58, %v353_v59  ;;  %v372_v63 = vsel %vm369_vm0, %v370_v60, %v371_v61  ;;  %v430_v4 = vsel %vm427_vm1, %v428_v2, %v429_v0  ;;  %v401_v12 = vsel %vm398_vm2, %v399_v9, %v400_v7 }
 0x165   :  { %380 = vrot.lane.b32.xlu1 %v372_v63, %s6466_s28  ;;  %v377_v14 = vsel %vm369_vm0, %v375_v13, %v376_v11  ;;  %v435_v27 = vsel %vm427_vm1, %v433_v25, %v434_v16  ;;  %v406_v34 = vsel %vm398_vm2, %v404_v31, %v405_v30 }
 0x166   :  { %v6732_v1 = vrot.slane %v354_v62, %v276_v39  ;;  %v485_v39 = vunpack.c.l.s4 %v6471_v38 }
 0x168   :  { %v373_v5 = vrot.slane %v6732_v1, 1  ;;  %v402_v6 = vrot.slane %v6732_v1, 2  ;;  %v6756_v18 = vcombine.high %v6732_v1, %v6468_v17  ;;  %v431_v23 = vrot.slane %v6732_v1, 3 }
 0x169   :  { %438 = vrot.lane.b32.xlu1 %v430_v4, %s6467_s30  ;;  %v486_v41 = vunpack.c.0.s8 %v485_v39 }
 0x16a   :  { %384 = vrot.lane.b32.xlu0 %v373_v5, %s6466_s28  ;;  %v403_v10 = vsel %vm398_vm2, %v400_v7, %v402_v6  ;;  %v374_v22 = vsel %vm369_vm0, %v371_v61, %v373_v5  ;;  %v378_v28 = vrot.slane %v6756_v18, 1  ;;  %v432_v29 = vsel %vm427_vm1, %v429_v0, %v431_v23 }
 0x16b   :  { %v407_v33 = vrot.slane %v6756_v18, 2  ;;  %v436_v36 = vrot.slane %v6756_v18, 3  ;;  %v6788_v44 = vsub.s32 %v486_v41, %v6706_v15 }
 0x16c   :  { %v379_v32 = vsel %vm369_vm0, %v376_v11, %v378_v28 }
 0x16d   :  { %411 = vrot.lane.b32.xlu1 %v403_v10, %s6432_s14  ;;  %v408_v35 = vsel %vm398_vm2, %v405_v30, %v407_v33  ;;  %v437_v37 = vsel %vm427_vm1, %v434_v16, %v436_v36 }
 0x16e   :  { %409 = vrot.lane.b32.xlu0 %v401_v12, %s6432_s14 }
 0x171   :  { %386 = vrot.lane.b32.xlu1 %v377_v14, %s6466_s28 }
 0x172   :  { %382 = vrot.lane.b32.xlu0 %v374_v22, %s6466_s28 }
 0x175   :  { %444 = vrot.lane.b32.xlu1 %v435_v27, %s6467_s30 }
 0x176   :  { %440 = vrot.lane.b32.xlu0 %v432_v29, %s6467_s30 }
 0x179   :  { %388 = vrot.lane.b32.xlu1 %v379_v32, %s6466_s28 }
 0x17a   :  { %415 = vrot.lane.b32.xlu0 %v406_v34, %s6432_s14 }
 0x17d   :  { %417 = vrot.lane.b32.xlu1 %v408_v35, %s6432_s14 }
 0x17e   :  { %413 = vrot.lane.b32.xlu0 %v402_v6, %s6432_s14 }
 0x181   :  { %446 = vrot.lane.b32.xlu1 %v437_v37, %s6467_s30 }
 0x182   :  { %442 = vrot.lane.b32.xlu0 %v431_v23, %s6467_s30 }
 0x185   :  { %419 = vrot.lane.b32.xlu1 %v407_v33, %s6432_s14 }
 0x186   :  { %390 = vrot.lane.b32.xlu0 %v378_v28, %s6466_s28 }
 0x18a   :  { %448 = vrot.lane.b32.xlu0 %v436_v36, %s6467_s30 }
 0x1d7   :  { %v381_v40 = vpop.permute.xlu1 %380 }
 0x1d8   :  { %v457_v46 = vsel %vm456_vm4, %v6721_v51, %v381_v40 }
 0x1db   :  { %v439_v42 = vpop.permute.xlu1 %438 }
 0x1dc   :  { %v385_v43 = vpop.permute.xlu0 %384 }
 0x1df   :  { %v412_v45 = vpop.permute.xlu1 %411 }
 0x1e0   :  { %v410_v47 = vpop.permute.xlu0 %409 }
 0x1e1   :  { %v464_v48 = vsel %vm463_vm5, %v457_v46, %v410_v47 }
 0x1e2   :  { %v471_v49 = vsel %vm470_vm6, %v464_v48, %v439_v42 }
 0x1e3   :  { %v483_v50 = vcombine.high %v471_v49, %v471_v49  ;;  %v490_v52 = vrot.slane %v471_v49, %v6788_v44  ;;  %v387_v53 = vpop.permute.xlu1 %386 }
 0x1e4   :  { %v383_v54 = vpop.permute.xlu0 %382  ;;  %v460_v16 = vsel %vm456_vm4, %v6742_v8, %v387_v53 }
 0x1e5   :  { %v497_v55 = vrot.slane %v483_v50, %v6788_v44  ;;  %v498_v57 = vcombine.high %v490_v52, %v490_v52  ;;  %v458_v58 = vsel %vm456_vm4, %v6723_v56, %v383_v54  ;;  %v506_v60 = vrot.slane %v490_v52, %v6788_v44 }
 0x1e6   :  { %v465_v63 = vsel %vm463_vm5, %v458_v58, %v412_v45  ;;  %v459_v56 = vsel %vm456_vm4, %v6732_v1, %v385_v43 }
 0x1e7   :  { %v499_v59 = vcombine.high %v497_v55, %v497_v55  ;;  %v520_v51 = vrot.slane %v498_v57, %v6788_v44  ;;  %v445_v61 = vpop.permute.xlu1 %444  ;;  %v513_v62 = vrot.slane %v497_v55, %v6788_v44 }
 0x1e8   :  { %v441_v0 = vpop.permute.xlu0 %440 }
 0x1e9   :  { %v527_v2 = vrot.slane %v499_v59, %v6788_v44  ;;  %v716_v4 = vcombine.low %v506_v60, %v520_v51  ;;  %v4785_v5 = vcombine.high %v506_v60, %v520_v51  ;;  %v472_v6 = vsel %vm470_vm6, %v465_v63, %v441_v0 }
 0x1ea   :  { %v532_v7 = vcombine.high %v472_v6, %v472_v6  ;;  %v539_v9 = vrot.slane %v472_v6, %v6788_v44 }
 0x1eb   :  { %v718_v10 = vcombine.low %v513_v62, %v527_v2  ;;  %v4786_v11 = vcombine.high %v513_v62, %v527_v2  ;;  %v726_v12 = vrot.slane %v716_v4, %v6788_v44  ;;  %v733_v13 = vrot.slane %v4785_v5, %v6788_v44  ;;  %v389_v14 = vpop.permute.xlu1 %388 }
 0x1ec   :  { %v546_v20 = vrot.slane %v532_v7, %v6788_v44  ;;  %v547_v21 = vcombine.high %v539_v9, %v539_v9  ;;  %v555_v22 = vrot.slane %v539_v9, %v6788_v44  ;;  %v416_v23 = vpop.permute.xlu0 %415  ;;  %v461_v29 = vsel %vm456_vm4, %v6735_v3, %v389_v14 }
 0x1ed   :  { %v740_v1 = vrot.slane %v718_v10, %v6788_v44  ;;  %v747_v24 = vrot.slane %v4786_v11, %v6788_v44  ;;  %v467_v25 = vsel %vm463_vm5, %v460_v16, %v416_v23  ;;  %v748_v26 = vcombine.low %v726_v12, %v733_v13 }
 0x1ee   :  { %v548_v27 = vcombine.high %v546_v20, %v546_v20  ;;  %v569_v28 = vrot.slane %v547_v21, %v6788_v44  ;;  %v474_v8 = vsel %vm470_vm6, %v467_v25, %v445_v61  ;;  %v562_v30 = vrot.slane %v546_v20, %v6788_v44 }
 0x1ef   :  { %v595_v31 = vcombine.high %v474_v8, %v474_v8  ;;  %v602_v32 = vrot.slane %v474_v8, %v6788_v44  ;;  %v418_v33 = vpop.permute.xlu1 %417  ;;  %v749_v34 = vcombine.low %v740_v1, %v747_v24  ;;  %v756_v39 = vrot.slane %v748_v26, %v6788_v44 }
 0x1f0   :  { %v576_v35 = vrot.slane %v548_v27, %v6788_v44  ;;  %v765_v36 = vcombine.low %v555_v22, %v569_v28  ;;  %v4787_v37 = vcombine.high %v555_v22, %v569_v28  ;;  %v414_v38 = vpop.permute.xlu0 %413  ;;  %v468_v42 = vsel %vm463_vm5, %v461_v29, %v418_v33 }
 0x1f1   :  { %v609_v40 = vrot.slane %v595_v31, %v6788_v44  ;;  %v610_v3 = vcombine.high %v602_v32, %v602_v32  ;;  %v6826_v41 = vrot.slane %v602_v32, %v6788_v44  ;;  %v466_v57 = vsel %vm463_vm5, %v459_v56, %v414_v38 }
 0x1f2   :  { %v767_v43 = vcombine.low %v562_v30, %v576_v35  ;;  %v4788_v45 = vcombine.high %v562_v30, %v576_v35  ;;  %v775_v46 = vrot.slane %v765_v36, %v6788_v44  ;;  %v782_v47 = vrot.slane %v4787_v37, %v6788_v44 }
 0x1f3   :  { %v611_v48 = vcombine.high %v609_v40, %v609_v40  ;;  %v625_v49 = vrot.slane %v609_v40, %v6788_v44  ;;  %v632_v50 = vrot.slane %v610_v3, %v6788_v44  ;;  %v640_v52 = vcombine.high %v6826_v41, %v6826_v41  ;;  %v447_v53 = vpop.permute.xlu1 %446 }
 0x1f4   :  { %v789_v54 = vrot.slane %v767_v43, %v6788_v44  ;;  %v796_v55 = vrot.slane %v4788_v45, %v6788_v44  ;;  %v475_v58 = vsel %vm470_vm6, %v468_v42, %v447_v53  ;;  %v443_v59 = vpop.permute.xlu0 %442  ;;  %v763_v4 = vrot.slane %v749_v34, %v6788_v44 }
 0x1f5   :  { %v641_v60 = vcombine.high %v625_v49, %v625_v49  ;;  %v642_v51 = vcombine.high %v632_v50, %v632_v50  ;;  %v815_v61 = vcombine.low %v632_v50, %v640_v52  ;;  %v639_v62 = vrot.slane %v611_v48, %v6788_v44 }
 0x1f6   :  { %v644_v63 = vcombine.high %v475_v58, %v475_v58  ;;  %v651_v0 = vrot.slane %v475_v58, %v6788_v44  ;;  %v473_v2 = vsel %vm470_vm6, %v466_v57, %v443_v59  ;;  %v797_v5 = vcombine.low %v775_v46, %v782_v47 }
 0x1f7   :  { %v816_v6 = vcombine.low %v642_v51, %v625_v49  ;;  %v643_v7 = vcombine.high %v639_v62, %v639_v62  ;;  %v817_v9 = vcombine.low %v639_v62, %v641_v60  ;;  %v587_v12 = vrot.slane %v473_v2, %v6788_v44  ;;  %v420_v31 = vpop.permute.xlu1 %419  ;;  %v1895_v2 = vld [vmem:[#allocation8] sm:$0xff] }
 0x1f8   :  { %v658_v56 = vrot.slane %v644_v63, %v6788_v44  ;;  %v659_v10 = vcombine.high %v651_v0, %v651_v0  ;;  %v667_v11 = vrot.slane %v651_v0, %v6788_v44  ;;  %v391_v13 = vpop.permute.xlu0 %390  ;;  %v831_v14 = vrot.slane %v815_v61, %v6788_v44  ;;  %v1911_v63 = vld [vmem:[#allocation8 + $0x80] sm:$0xff]  ;;  %v1912_v0 = vld [vmem:[#allocation8 + $0x88] sm:$0xff] }
 0x1f9   :  { %v764_v16 = vcombine.low %v756_v39, %v763_v4  ;;  %v462_v20 = vsel %vm456_vm4, %v6756_v18, %v391_v13  ;;  %v798_v21 = vcombine.low %v789_v54, %v796_v55  ;;  %v594_v26 = vrot.slane %v587_v12, %v6788_v44  ;;  %v1915_v12 = vld [vmem:[#allocation8 + $0xa0] sm:$0xff]  ;;  %v1916_v13 = vld [vmem:[#allocation8 + $0xa8] sm:$0xff] }
 0x1fa   :  { %v660_v22 = vcombine.high %v658_v56, %v658_v56  ;;  %v674_v23 = vrot.slane %v658_v56, %v6788_v44  ;;  %v681_v1 = vrot.slane %v659_v10, %v6788_v44  ;;  %v689_v24 = vcombine.high %v667_v11, %v667_v11  ;;  %v1897_v10 = vld [vmem:[#allocation8 + $0x10] sm:$0xff] }
 0x1fb   :  { %v863_v25 = vcombine.low %v643_v7, %v667_v11  ;;  %5430 = vmatmul.mubr.msk.f32.vlgmr.msra.gmra.mrb[0].mxu0 %vm927_vm7, %v764_v16  ;;  %v805_v27 = vrot.slane %v797_v5, %v6788_v44  ;;  %v812_v28 = vrot.slane %v798_v21, %v6788_v44  ;;  %v838_v33 = vrot.slane %v816_v6, %v6788_v44  ;;  %v1896_v5 = vld [vmem:[#allocation8 + $0x8] sm:$0xff]  ;;  %v1913_v6 = vld [vmem:[#allocation8 + $0x90] sm:$0xff]  ;;  %v1914_v7 = vld [vmem:[#allocation8 + $0x98] sm:$0xff] }
 0x1fc   :  { %v688_v29 = vrot.slane %v660_v22, %v6788_v44  ;;  %v690_v8 = vcombine.high %v674_v23, %v674_v23  ;;  %v691_v18 = vcombine.high %v681_v1, %v681_v1  ;;  %v864_v30 = vcombine.low %v681_v1, %v689_v24  ;;  %5432 = vmatprep.mubr.msk.f32.mxu0 %vm6470_vm3, %v6468_v17  ;;  %v449_v32 = vpop.permute.xlu0 %448  ;;  %v1898_v11 = vld [vmem:[#allocation8 + $0x18] sm:$0xff]  ;;  %v1900_v21 = vld [vmem:[#allocation8 + $0x28] sm:$0xff]  ;;  %v1917_v22 = vld [vmem:[#allocation8 + $0xb0] sm:$0xff] }
 0x1fd   :  { %v814_v34 = vcombine.low %v594_v26, %v6826_v41  ;;  %v813_v35 = vcombine.low %v805_v27, %v812_v28  ;;  %v469_v36 = vsel %vm463_vm5, %v462_v20, %v420_v31  ;;  %v873_v3 = vrot.slane %v863_v25, %v6788_v44  ;;  %v1899_v20 = vld [vmem:[#allocation8 + $0x20] sm:$0xff]  ;;  %v1901_v25 = vld [vmem:[#allocation8 + $0x30] sm:$0xff]  ;;  %v1902_v26 = vld [vmem:[#allocation8 + $0x38] sm:$0xff] }
 0x1fe   :  { %v865_v37 = vcombine.low %v691_v18, %v674_v23  ;;  %v866_v38 = vcombine.low %v688_v29, %v690_v8  ;;  %v880_v39 = vrot.slane %v864_v30, %v6788_v44  ;;  %v476_v40 = vsel %vm470_vm6, %v469_v36, %v449_v32  ;;  %v1918_v23 = vld [vmem:[#allocation8 + $0xb8] sm:$0xff] }
 0x1ff   :  { %v824_v42 = vrot.slane %v814_v34, %v6788_v44  ;;  %5433 = vmatmul.mubr.msk.f32.gmra.mrb[2].mxu0 %vm927_vm7, %v813_v35  ;;  %v699_v43 = vrot.slane %v476_v40, %v6788_v44  ;;  %v845_v45 = vrot.slane %v817_v9, %v6788_v44  ;;  %v692_v53 = vcombine.high %v688_v29, %v688_v29  ;;  %v6886_v28 = vld [vmem:[#allocation7] ss:$0 sm:$0xff] }
 0x200   :  { %v887_v41 = vrot.slane %v865_v37, %v6788_v44  ;;  %v894_v46 = vrot.slane %v866_v38, %v6788_v44  ;;  %5435 = vmatprep.mubr.msk.f32.mxu0 %vm6470_vm3, %v6468_v17  ;;  %v895_v47 = vcombine.low %v873_v3, %v880_v39  ;;  %v5447_v4 = vpack.c.bf16 %v1912_v0, %v1911_v63 }
 0x201   :  { %v846_v48 = vcombine.low %v824_v42, %v831_v14  ;;  %v706_v49 = vrot.slane %v699_v43, %v6788_v44  ;;  %v847_v50 = vcombine.low %v838_v33, %v845_v45  ;;  %v5449_v9 = vpack.c.bf16 %v1896_v5, %v1895_v2 }
 0x202   :  { %v896_v52 = vcombine.low %v887_v41, %v894_v46  ;;  %v903_v60 = vrot.slane %v895_v47, %v6788_v44  ;;  %v5451_v56 = vpack.c.bf16 %v1914_v7, %v1913_v6  ;;  %5448 = vmatprep.subr.bf16.mxu1 %v5447_v4  ;;  %v5453_v14 = vpack.c.bf16 %v1898_v11, %v1897_v10 }
 0x203   :  { %v854_v54 = vrot.slane %v846_v48, %v6788_v44  ;;  %v861_v55 = vrot.slane %v847_v50, %v6788_v44  ;;  %v912_v58 = vcombine.low %v692_v53, %v706_v49  ;;  %5450 = vmatpush3.bf16.msra.mxu1 %v5449_v9  ;;  %v5455_v16 = vpack.c.bf16 %v1916_v13, %v1915_v12 }
 0x204   :  { %v910_v57 = vrot.slane %v896_v52, %v6788_v44  ;;  %5452 = vmatprep.subr.bf16.mxu1 %v5451_v56  ;;  %v5457_v1 = vpack.c.bf16 %v1900_v21, %v1899_v20  ;;  %v5459_v24 = vpack.c.bf16 %v1918_v23, %v1917_v22  ;;  %v5461_v27 = vpack.c.bf16 %v1902_v26, %v1901_v25 }
 0x205   :  { %v862_v59 = vcombine.low %v854_v54, %v861_v55  ;;  %v919_v61 = vrot.slane %v912_v58, %v6788_v44 }
 0x206   :  { %v911_v51 = vcombine.low %v903_v60, %v910_v57 }
 0x207   :  { %5436 = vmatmul.mubr.msk.f32.gmra.mrb[4].mxu0 %vm927_vm7, %v862_v59  ;;  %v926_v62 = vrot.slane %v919_v61, %v6788_v44  ;;  %5454 = vmatpush3.bf16.msra.mxu1 %v5453_v14 }
 0x208   :  { %5438 = vmatprep.mubr.msk.f32.mxu0 %vm6470_vm3, %v6468_v17  ;;  %5456 = vmatprep.subr.bf16.mxu1 %v5455_v16 }
 0x20b   :  { %5439 = vmatmul.mubr.msk.f32.gmra.mrb[6].mxu0 %vm927_vm7, %v911_v51  ;;  %5458 = vmatpush3.bf16.msra.mxu1 %v5457_v1 }
 0x20c   :  { %5441 = vmatprep.mubr.msk.f32.mxu0 %vm6470_vm3, %v6468_v17  ;;  %5460 = vmatprep.subr.bf16.mxu1 %v5459_v24 }
 0x20f   :  { %5442 = vmatmul.mubr.msk.f32.gmra.mrb[8].mxu0 %vm927_vm7, %v926_v62  ;;  %5462 = vmatpush3.bf16.msra.mxu1 %v5461_v27 }
 0x2ce   :  { %v1004_v29 = vpop.f32.mrb[0].mxu0 }
 0x2cf   :  { %v1005_v8 = vadd.f32 %v6886_v28, %v1004_v29  ;;  %v5431_v18 = vpop.f32.mrb[1].mxu0 }
 0x2d1   :  { %v1028_v30 = vmax.f32 %v1005_v8, 0.0 }
 0x2d2   :  { %v1009_v31 = vpop.f32.mrb[2].mxu0 }
 0x2d3   :  { %v1038_v32 = vcombine.high %v1028_v30, %v1028_v30  ;;  %v1045_v33 = vrot.slane %v1028_v30, %v6788_v44  ;;  %v1010_v34 = vadd.f32 %v6886_v28, %v1009_v31  ;;  %v5434_v35 = vpop.f32.mrb[3].mxu0 }
 0x2d5   :  { %v1052_v36 = vrot.slane %v1038_v32, %v6788_v44  ;;  %v1053_v37 = vcombine.high %v1045_v33, %v1045_v33  ;;  %v1061_v38 = vrot.slane %v1045_v33, %v6788_v44  ;;  %v1029_v39 = vmax.f32 %v1010_v34, 0.0 }
 0x2d7   :  { %v1054_v40 = vcombine.high %v1052_v36, %v1052_v36  ;;  %v6894_v3 = vrot.slane %v1052_v36, %v6788_v44  ;;  %v1075_v42 = vrot.slane %v1053_v37, %v6788_v44  ;;  %v1083_v43 = vcombine.high %v1061_v38, %v1061_v38 }
 0x2d8   :  { %v1087_v45 = vcombine.high %v1029_v39, %v1029_v39  ;;  %v1094_v41 = vrot.slane %v1029_v39, %v6788_v44 }
 0x2d9   :  { %v6899_v46 = vrot.slane %v1054_v40, %v6788_v44  ;;  %v1256_v47 = vcombine.low %v1061_v38, %v1075_v42  ;;  %v4794_v48 = vcombine.high %v1061_v38, %v1075_v42  ;;  %v1438_v49 = vcombine.low %v1075_v42, %v1083_v43 }
 0x2da   :  { %v1101_v50 = vrot.slane %v1087_v45, %v6788_v44  ;;  %v1102_v52 = vcombine.high %v1094_v41, %v1094_v41  ;;  %v6903_v53 = vrot.slane %v1094_v41, %v6788_v44  ;;  %v1014_v54 = vpop.f32.mrb[4].mxu0  ;;  %v1084_v55 = vcombine.high %v6894_v3, %v6894_v3 }
 0x2db   :  { %v6908_v57 = vrot.slane %v1256_v47, %v6788_v44  ;;  %v6911_v58 = vrot.slane %v4794_v48, %v6788_v44  ;;  %v1015_v59 = vadd.f32 %v6886_v28, %v1014_v54  ;;  %v5437_v60 = vpop.f32.mrb[5].mxu0  ;;  %v1085_v51 = vcombine.high %v1075_v42, %v1075_v42 }
 0x2dc   :  { %v1103_v61 = vcombine.high %v1101_v50, %v1101_v50  ;;  %v6915_v62 = vrot.slane %v1101_v50, %v6788_v44  ;;  %v6918_v63 = vrot.slane %v1102_v52, %v6788_v44  ;;  %v1132_v0 = vcombine.high %v6903_v53, %v6903_v53 }
 0x2dd   :  { %v1030_v2 = vmax.f32 %v1015_v59, 0.0  ;;  %v1086_v4 = vcombine.high %v6899_v46, %v6899_v46  ;;  %v1439_v5 = vcombine.low %v1085_v51, %v6894_v3  ;;  %v1440_v6 = vcombine.low %v6899_v46, %v1084_v55 }
 0x2de   :  { %v6927_v7 = vrot.slane %v1103_v61, %v6788_v44  ;;  %v1305_v9 = vcombine.low %v6903_v53, %v6918_v63  ;;  %v4796_v56 = vcombine.high %v6903_v53, %v6918_v63  ;;  %v1019_v10 = vpop.f32.mrb[6].mxu0  ;;  %v1448_v11 = vrot.slane %v1438_v49, %v6788_v44 }
 0x2df   :  { %v1136_v12 = vcombine.high %v1030_v2, %v1030_v2  ;;  %v1143_v13 = vrot.slane %v1030_v2, %v6788_v44  ;;  %v1020_v14 = vadd.f32 %v6886_v28, %v1019_v10  ;;  %v5440_v16 = vpop.f32.mrb[7].mxu0  ;;  %v1441_v20 = vcombine.low %v1086_v4, %v6903_v53  ;;  %v1925_v53 = vld [vmem:[#allocation8 + $0xf0] sm:$0xff] }
 0x2e0   :  { %v1135_v21 = vcombine.high %v6927_v7, %v6927_v7  ;;  %v1455_v22 = vrot.slane %v1439_v5, %v6788_v44  ;;  %v1462_v23 = vrot.slane %v1440_v6, %v6788_v44  ;;  %v1487_v1 = vcombine.low %v6918_v63, %v1132_v0 }
 0x2e1   :  { %v1150_v24 = vrot.slane %v1136_v12, %v6788_v44  ;;  %v1151_v25 = vcombine.high %v1143_v13, %v1143_v13  ;;  %v6944_v26 = vrot.slane %v1143_v13, %v6788_v44  ;;  %v1031_v27 = vmax.f32 %v1020_v14, 0.0 }
 0x2e2   :  { %v1024_v29 = vpop.f32.mrb[8].mxu0  ;;  %v1469_v8 = vrot.slane %v1441_v20, %v6788_v44  ;;  %v1470_v18 = vcombine.low %v1448_v11, %v1455_v22  ;;  %v6948_v30 = vrot.slane %v1487_v1, %v6788_v44  ;;  %v1714_v31 = vcombine.low %v1455_v22, %v1462_v23 }
 0x2e3   :  { %v1152_v32 = vcombine.high %v1150_v24, %v1150_v24  ;;  %v6951_v33 = vrot.slane %v1150_v24, %v6788_v44  ;;  %v1173_v34 = vrot.slane %v1151_v25, %v6788_v44  ;;  %v1181_v35 = vcombine.high %v6944_v26, %v6944_v26  ;;  %v5443_v36 = vpop.f32.mrb[9].mxu0 }
 0x2e4   :  { %v1731_v37 = vcombine.low %v1135_v21, %v6944_v26  ;;  %v1185_v38 = vcombine.high %v1031_v27, %v1031_v27  ;;  %v1192_v39 = vrot.slane %v1031_v27, %v6788_v44  ;;  %v1025_v40 = vadd.f32 %v6886_v28, %v1024_v29 }
 0x2e5   :  { %v6960_v42 = vrot.slane %v1152_v32, %v6788_v44  ;;  %v1182_v43 = vcombine.high %v6951_v33, %v6951_v33  ;;  %v1183_v45 = vcombine.high %v1173_v34, %v1173_v34  ;;  %v6964_v41 = vcombine.low %v1173_v34, %v1181_v35 }
 0x2e6   :  { %v4797_v47 = vcombine.high %v6944_v26, %v1173_v34  ;;  %v1199_v48 = vrot.slane %v1185_v38, %v6788_v44  ;;  %v1200_v49 = vcombine.high %v1192_v39, %v1192_v39  ;;  %v6969_v50 = vrot.slane %v1192_v39, %v6788_v44 }
 0x2e7   :  { %v6972_v52 = vcombine.low %v1183_v45, %v6951_v33  ;;  %v1184_v28 = vcombine.high %v6960_v42, %v6960_v42  ;;  %v1032_v54 = vmax.f32 %v1025_v40, 0.0  ;;  %v1471_v55 = vcombine.low %v1462_v23, %v1469_v8 }
 0x2e8   :  { %v1201_v59 = vcombine.high %v1199_v48, %v1199_v48  ;;  %v6977_v60 = vrot.slane %v1199_v48, %v6788_v44  ;;  %v6980_v51 = vrot.slane %v1200_v49, %v6788_v44  ;;  %v1230_v61 = vcombine.high %v6969_v50, %v6969_v50 }
 0x2e9   :  { %v6985_v0 = vcombine.low %v1184_v28, %v6969_v50  ;;  %v1240_v2 = vrot.slane %v1032_v54, %v6788_v44  ;;  %v1478_v4 = vrot.slane %v1470_v18, %v6788_v44  ;;  %v1485_v5 = vrot.slane %v1471_v55, %v6788_v44 }
 0x2ea   :  { %v6991_v6 = vrot.slane %v1201_v59, %v6788_v44  ;;  %v1231_v10 = vcombine.high %v6977_v60, %v6977_v60  ;;  %v1232_v11 = vcombine.high %v6980_v51, %v6980_v51  ;;  %v1715_v12 = vcombine.low %v1469_v8, %v6948_v30 }
 0x2eb   :  { %v1241_v13 = vcombine.high %v1240_v2, %v1240_v2  ;;  %v1248_v14 = vrot.slane %v1240_v2, %v6788_v44  ;;  %v1486_v16 = vcombine.low %v1478_v4, %v1485_v5  ;;  %v1722_v20 = vrot.slane %v1714_v31, %v6788_v44 }
 0x2ec   :  { %v1233_v21 = vcombine.high %v6991_v6, %v6991_v6  ;;  %v1729_v22 = vrot.slane %v1715_v12, %v6788_v44  ;;  %v1133_v23 = vcombine.high %v6915_v62, %v6915_v62  ;;  %v1134_v1 = vcombine.high %v6918_v63, %v6918_v63  ;;  %v1926_v63 = vld [vmem:[#allocation8 + $0xf8] sm:$0xff] }
 0x2ed   :  { %v1255_v24 = vrot.slane %v1241_v13, %v6788_v44  ;;  %1616 = vrot.lane.b32.xlu1 %v1486_v16, %s6459_s26  ;;  %v1738_v25 = vrot.slane %v1731_v37, %v6788_v44  ;;  %v1528_v26 = vcombine.low %v6951_v33, %v6960_v42  ;;  %v4798_v27 = vcombine.high %v6951_v33, %v6960_v42 }
 0x2ee   :  { %v7014_v29 = vcombine.low %v1233_v21, %v1248_v14  ;;  %v1730_v8 = vcombine.low %v1722_v20, %v1729_v22  ;;  %v1488_v18 = vcombine.low %v1134_v1, %v6915_v62  ;;  %v1489_v31 = vcombine.low %v6927_v7, %v1133_v23 }
 0x2ef   :  { %v1772_v32 = vcombine.low %v1248_v14, %v1255_v24  ;;  %v1753_v34 = vrot.slane %v1738_v25, %v6788_v44  ;;  %v1530_v35 = vcombine.low %v6969_v50, %v6980_v51  ;;  %v1544_v36 = vrot.slane %v1528_v26, %v6788_v44 }
 0x2f0   :  { %v1693_v37 = vrot.slane %v7014_v29, %v6788_v44  ;;  %1796 = vrot.lane.b32.xlu0 %v1730_v8, %s6459_s26  ;;  %v1503_v38 = vrot.slane %v1488_v18, %v6788_v44  ;;  %v1510_v39 = vrot.slane %v1489_v31, %v6788_v44  ;;  %v1551_v40 = vrot.slane %v4798_v27, %v6788_v44  ;;  %v1919_v27 = vld [vmem:[#allocation8 + $0xc0] sm:$0xff]  ;;  %v2296_v29 = vld [vmem:[#allocation11 + $0x48] sm:$0xff] }
 0x2f1   :  { %v1558_v45 = vrot.slane %v1530_v35, %v6788_v44  ;;  %v4799_v48 = vcombine.high %v6969_v50, %v6980_v51  ;;  %v1537_v49 = vrot.slane %v4797_v47, %v6788_v44  ;;  %v1577_v28 = vcombine.low %v6977_v60, %v6991_v6  ;;  %v2287_v50 = vld [vmem:[#allocation11] sm:$0xff] }
 0x2f2   :  { %v1511_v54 = vcombine.low %v6948_v30, %v1503_v38  ;;  %v1525_v55 = vrot.slane %v1510_v39, %v6788_v44  ;;  %v1739_v59 = vcombine.low %v1503_v38, %v1510_v39  ;;  %v1755_v2 = vcombine.low %v1544_v36, %v1551_v40  ;;  %v1903_v38 = vld [vmem:[#allocation8 + $0x40] sm:$0xff]  ;;  %v1904_v39 = vld [vmem:[#allocation8 + $0x48] sm:$0xff] }
 0x2f3   :  { %v1585_v4 = vrot.slane %v4799_v48, %v6788_v44  ;;  %v1559_v5 = vcombine.low %v1537_v49, %v1544_v36  ;;  %v1560_v12 = vcombine.low %v1551_v40, %v1558_v45  ;;  %v4800_v13 = vcombine.high %v6977_v60, %v6991_v6  ;;  %v1920_v36 = vld [vmem:[#allocation8 + $0xc8] sm:$0xff] }
 0x2f4   :  { %v1518_v14 = vrot.slane %v1511_v54, %v6788_v44  ;;  %v1746_v47 = vrot.slane %v1739_v59, %v6788_v44  ;;  %v1763_v16 = vrot.slane %v1755_v2, %v6788_v44  ;;  %v1592_v20 = vrot.slane %v1577_v28, %v6788_v44  ;;  %v1921_v54 = vld [vmem:[#allocation8 + $0xd0] sm:$0xff] }
 0x2f5   :  { %v1756_v30 = vcombine.low %v1558_v45, %v1585_v4  ;;  %v1567_v21 = vrot.slane %v1559_v5, %v6788_v44  ;;  %v1574_v22 = vrot.slane %v1560_v12, %v6788_v44  ;;  %v1599_v23 = vrot.slane %v4800_v13, %v6788_v44  ;;  %v1922_v5 = vld [vmem:[#allocation8 + $0xd8] sm:$0xff]  ;;  %v1905_v12 = vld [vmem:[#allocation8 + $0x50] sm:$0xff] }
 0x2f6   :  { %v1526_v1 = vcombine.low %v1518_v14, %v1525_v55  ;;  %v1754_v24 = vcombine.low %v1746_v47, %v1753_v34  ;;  %v1600_v25 = vcombine.low %v1585_v4, %v1592_v20  ;;  %v1779_v26 = vrot.slane %v1772_v32, %v6788_v44  ;;  %v1906_v13 = vld [vmem:[#allocation8 + $0x58] sm:$0xff] }
 0x2f7   :  { %v1770_v8 = vrot.slane %v1756_v30, %v6788_v44  ;;  %v1575_v18 = vcombine.low %v1567_v21, %v1574_v22  ;;  %v1614_v31 = vrot.slane %v1599_v23, %v6788_v44  ;;  %v1780_v35 = vcombine.low %v1592_v20, %v1599_v23  ;;  %v1924_v21 = vld [vmem:[#allocation8 + $0xe8] sm:$0xff]  ;;  %v1907_v22 = vld [vmem:[#allocation8 + $0x60] sm:$0xff] }
 0x2f8   :  { %1618 = vrot.lane.b32.xlu1 %v1526_v1, %s6459_s26  ;;  %1798 = vrot.lane.b32.xlu0 %v1754_v24, %s6459_s26  ;;  %v1607_v40 = vrot.slane %v1600_v25, %v6788_v44  ;;  %v1794_v34 = vrot.slane %v1779_v26, %v6788_v44  ;;  %v1258_v32 = vcombine.low %v6894_v3, %v6899_v46  ;;  %v1908_v23 = vld [vmem:[#allocation8 + $0x68] sm:$0xff] }
 0x2f9   :  { %v1771_v45 = vcombine.low %v1763_v16, %v1770_v8  ;;  %v1787_v48 = vrot.slane %v1780_v35, %v6788_v44  ;;  %v4795_v49 = vcombine.high %v6894_v3, %v6899_v46  ;;  %v1288_v28 = vcombine.low %v6908_v57, %v6911_v58  ;;  %v1923_v46 = vld [vmem:[#allocation8 + $0xe0] sm:$0xff] }
 0x2fa   :  { %v1615_v55 = vcombine.low %v1607_v40, %v1614_v31  ;;  %v1280_v59 = vrot.slane %v1258_v32, %v6788_v44  ;;  %v5463_v2 = vpack.c.bf16 %v1920_v36, %v1919_v27  ;;  %v5465_v4 = vpack.c.bf16 %v1904_v39, %v1903_v38  ;;  %v1909_v36 = vld [vmem:[#allocation8 + $0x70] sm:$0xff]  ;;  %v1910_v38 = vld [vmem:[#allocation8 + $0x78] sm:$0xff] }
 0x2fb   :  { %v1795_v14 = vcombine.low %v1787_v48, %v1794_v34  ;;  %v1287_v47 = vrot.slane %v4795_v49, %v6788_v44  ;;  %v7063_v16 = vrot.slane %v1288_v28, %v6788_v44  ;;  %v1314_v3 = vrot.slane %v1305_v9, %v6788_v44 }
 0x2fc   :  { %1800 = vrot.lane.b32.xlu0 %v1771_v45, %s6459_s26  ;;  %1620 = vrot.lane.b32.xlu1 %v1575_v18, %s6459_s26  ;;  %v1628_v57 = vcombine.low %v6911_v58, %v1280_v59  ;;  %v1307_v20 = vcombine.low %v6915_v62, %v6927_v7  ;;  %v1321_v30 = vrot.slane %v4796_v56, %v6788_v44 }
 0x2fd   :  { %v1289_v1 = vcombine.low %v1280_v59, %v1287_v47  ;;  %5464 = vmatprep.subr.bf16.mxu1 %v5463_v2  ;;  %v1629_v9 = vcombine.low %v1287_v47, %v1314_v3  ;;  %v5467_v24 = vpack.c.bf16 %v1922_v5, %v1921_v54  ;;  %v5469_v25 = vpack.c.bf16 %v1906_v13, %v1905_v12  ;;  %v2288_v5 = vld [vmem:[#allocation11 + $0x8] sm:$0xff]  ;;  %v2290_v12 = vld [vmem:[#allocation11 + $0x18] sm:$0xff] }
 0x2fe   :  { %5466 = vmatpush3.bf16.msra.mxu1 %v5465_v4  ;;  %v7079_v26 = vrot.slane %v1628_v57, %v6788_v44  ;;  %v1328_v58 = vrot.slane %v1307_v20, %v6788_v44  ;;  %v1329_v27 = vcombine.low %v1314_v3, %v1321_v30  ;;  %v4801_v8 = vcombine.high %v6915_v62, %v6927_v7  ;;  %v2291_v3 = vld [vmem:[#allocation11 + $0x20] sm:$0xff] }
 0x2ff   :  { %v7085_v56 = vrot.slane %v1289_v1, %v6788_v44  ;;  %v7088_v18 = vrot.slane %v1629_v9, %v6788_v44  ;;  %5468 = vmatprep.subr.bf16.mxu1 %v5467_v24  ;;  %v5471_v31 = vpack.c.bf16 %v1924_v21, %v1923_v46  ;;  %v5473_v35 = vpack.c.bf16 %v1908_v23, %v1907_v22 }
 0x300   :  { %1622 = vrot.lane.b32.xlu1 %v1615_v55, %s6459_s26  ;;  %1802 = vrot.lane.b32.xlu0 %v1795_v14, %s6459_s26  ;;  %v1336_v39 = vrot.slane %v1329_v27, %v6788_v44  ;;  %v1343_v62 = vrot.slane %v1328_v58, %v6788_v44  ;;  %v1652_v7 = vrot.slane %v4801_v8, %v6788_v44 }
 0x301   :  { %v1304_v40 = vcombine.low %v7063_v16, %v7085_v56  ;;  %v1644_v34 = vcombine.low %v7079_v26, %v7088_v18  ;;  %v1653_v32 = vcombine.low %v1321_v30, %v1328_v58  ;;  %v5475_v45 = vpack.c.bf16 %v1926_v63, %v1925_v53  ;;  %v2293_v30 = vld [vmem:[#allocation11 + $0x30] sm:$0xff] }
 0x302   :  { %v7099_v48 = vcombine.low %v1336_v39, %v1343_v62  ;;  %5470 = vmatpush3.bf16.msra.mxu1 %v5469_v25  ;;  %v1667_v49 = vrot.slane %v1652_v7, %v6788_v44  ;;  %v5477_v28 = vpack.c.bf16 %v1910_v38, %v1909_v36  ;;  %v1347_v54 = vcombine.low %v6960_v42, %v1182_v43  ;;  %v2300_v39 = vld [vmem:[#allocation11 + $0x68] sm:$0xff]  ;;  %v2302_v62 = vld [vmem:[#allocation11 + $0x78] sm:$0xff] }
 0x303   :  { %v1660_v55 = vrot.slane %v1653_v32, %v6788_v44  ;;  %5472 = vmatprep.subr.bf16.mxu1 %v5471_v31  ;;  %v1362_v59 = vrot.slane %v6972_v52, %v6788_v44  ;;  %v1376_v2 = vrot.slane %v6985_v0, %v6788_v44  ;;  %v1394_v4 = vcombine.low %v6980_v51, %v1230_v61  ;;  %v2289_v0 = vld [vmem:[#allocation11 + $0x10] sm:$0xff]  ;;  %v2295_v31 = vld [vmem:[#allocation11 + $0x40] sm:$0xff] }
 0x304   :  { %v1369_v33 = vrot.slane %v1347_v54, %v6788_v44  ;;  %v1355_v42 = vrot.slane %v6964_v41, %v6788_v44  ;;  %v1395_v43 = vcombine.low %v1232_v11, %v6977_v60  ;;  %v1396_v52 = vcombine.low %v6991_v6, %v1231_v10  ;;  %v2292_v6 = vld [vmem:[#allocation11 + $0x28] sm:$0xff]  ;;  %v2294_v10 = vld [vmem:[#allocation11 + $0x38] sm:$0xff]  ;;  %v2301_v54 = vld [vmem:[#allocation11 + $0x70] sm:$0xff] }
 0x305   :  { %v7126_v61 = vcombine.low %v1660_v55, %v1667_v49  ;;  %v1403_v13 = vrot.slane %v1394_v4, %v6788_v44  ;;  %v7133_v41 = vrot.slane %v1693_v37, %v6788_v44  ;;  %v5479_v14 = vpack.c.bf16 %v2290_v12, %v2288_v5  ;;  %v2298_v37 = vld [vmem:[#allocation11 + $0x58] sm:$0xff]  ;;  %v2304_v55 = vld [vmem:[#allocation11 + $0x88] sm:$0xff]  ;;  %v2303_v5 = vld [vmem:[#allocation11 + $0x80] sm:$0xff] }
 0x306   :  { %5474 = vmatpush3.bf16.msra.mxu1 %v5473_v35  ;;  %v1669_v51 = vcombine.low %v1362_v59, %v1369_v33  ;;  %v1377_v11 = vcombine.low %v1355_v42, %v1362_v59  ;;  %v1378_v47 = vcombine.low %v1369_v33, %v1376_v2  ;;  %v1410_v60 = vrot.slane %v1395_v43, %v6788_v44  ;;  %v2297_v35 = vld [vmem:[#allocation11 + $0x50] sm:$0xff]  ;;  %v2306_v59 = vld [vmem:[#allocation11 + $0x98] sm:$0xff]  ;;  %v2308_v33 = vld [vmem:[#allocation11 + $0xa8] sm:$0xff] }
 0x307   :  { %5476 = vmatprep.subr.bf16.mxu1 %v5475_v45  ;;  %v1670_v46 = vcombine.low %v1376_v2, %v1403_v13  ;;  %v1417_v57 = vrot.slane %v1396_v52, %v6788_v44  ;;  %5480 = vmatprep.subr.bf16.mxu0 %v5479_v14  ;;  %v5481_v20 = vpack.c.bf16 %v2289_v0, %v2287_v50  ;;  %v2305_v12 = vld [vmem:[#allocation11 + $0x90] sm:$0xff]  ;;  %v2310_v42 = vld [vmem:[#allocation11 + $0xb8] sm:$0xff]  ;;  %v2307_v50 = vld [vmem:[#allocation11 + $0xa0] sm:$0xff] }
 0x308   :  { %v7138_v21 = vrot.slane %v1669_v51, %v6788_v44  ;;  %v1385_v22 = vrot.slane %v1377_v11, %v6788_v44  ;;  %v1392_v23 = vrot.slane %v1378_v47, %v6788_v44  ;;  %v1418_v1 = vcombine.low %v1403_v13, %v1410_v60  ;;  %v2309_v0 = vld [vmem:[#allocation11 + $0xb0] sm:$0xff]  ;;  %v2312_v13 = vld [vmem:[#allocation11 + $0xc8] sm:$0xff]  ;;  %v2314_v14 = vld [vmem:[#allocation11 + $0xd8] sm:$0xff] }
 0x309   :  { %v7143_v9 = vrot.slane %v1670_v46, %v6788_v44  ;;  %v1694_v24 = vcombine.low %v1410_v60, %v1417_v57  ;;  %v1432_v25 = vrot.slane %v1417_v57, %v6788_v44  ;;  %5482 = vmatpush1.bf16.msra.mxu0 %v5481_v20  ;;  %v5483_v58 = vpack.c.bf16 %v2294_v10, %v2292_v6  ;;  %v2311_v47 = vld [vmem:[#allocation11 + $0xc0] sm:$0xff]  ;;  %v2313_v60 = vld [vmem:[#allocation11 + $0xd0] sm:$0xff]  ;;  %v2316_v6 = vld [vmem:[#allocation11 + $0xe8] sm:$0xff] }
 0x30a   :  { %5478 = vmatpush3.bf16.msra.mxu1 %v5477_v28  ;;  %v7146_v27 = vcombine.low %v1385_v22, %v1392_v23  ;;  %v1425_v8 = vrot.slane %v1418_v1, %v6788_v44  ;;  %v5485_v53 = vpack.c.bf16 %v2293_v30, %v2291_v3  ;;  %v5487_v63 = vpack.c.bf16 %v2298_v37, %v2296_v29  ;;  %v2299_v28 = vld [vmem:[#allocation11 + $0x60] sm:$0xff]  ;;  %v2318_v10 = vld [vmem:[#allocation11 + $0xf8] sm:$0xff]  ;;  %v2317_v20 = vld [vmem:[#allocation11 + $0xf0] sm:$0xff] }
 0x30b   :  { %v1685_v36 = vcombine.low %v7138_v21, %v7143_v9  ;;  %v7152_v38 = vrot.slane %v1694_v24, %v6788_v44  ;;  %5484 = vmatprep.subr.bf16.mxu0 %v5483_v58  ;;  %v5489_v45 = vpack.c.bf16 %v2297_v35, %v2295_v31  ;;  %v5491_v49 = vpack.c.bf16 %v2302_v62, %v2300_v39  ;;  %v2315_v57 = vld [vmem:[#allocation11 + $0xe0] sm:$0xff] }
 0x30c   :  { %v7154_v7 = vcombine.low %v1425_v8, %v1432_v25  ;;  %v5493_v2 = vpack.c.bf16 %v2301_v54, %v2299_v28  ;;  %v5495_v4 = vpack.c.bf16 %v2306_v59, %v2304_v55  ;;  %v5497_v43 = vpack.c.bf16 %v2305_v12, %v2303_v5 }
 0x30d   :  { %v1709_v32 = vcombine.low %v7152_v38, %v7133_v41  ;;  %5486 = vmatpush1.bf16.msra.mxu0 %v5485_v53  ;;  %v5499_v52 = vpack.c.bf16 %v2310_v42, %v2308_v33  ;;  %v5501_v51 = vpack.c.bf16 %v2309_v0, %v2307_v50  ;;  %v5503_v11 = vpack.c.bf16 %v2314_v14, %v2312_v13 }
 0x30e   :  { %5488 = vmatprep.subr.bf16.mxu0 %v5487_v63  ;;  %v5505_v3 = vpack.c.bf16 %v2313_v60, %v2311_v47  ;;  %v5507_v46 = vpack.c.bf16 %v2318_v10, %v2316_v6  ;;  %v5509_v30 = vpack.c.bf16 %v2317_v20, %v2315_v57 }
 0x311   :  { %5490 = vmatpush1.bf16.msra.mxu0 %v5489_v45 }
 0x312   :  { %5492 = vmatprep.subr.bf16.mxu0 %v5491_v49 }
 0x315   :  { %5494 = vmatpush1.bf16.msra.mxu0 %v5493_v2 }
 0x316   :  { %5496 = vmatprep.subr.bf16.mxu0 %v5495_v4 }
 0x319   :  { %5498 = vmatpush1.bf16.msra.mxu0 %v5497_v43 }
 0x31a   :  { %5500 = vmatprep.subr.bf16.mxu0 %v5499_v52 }
 0x31d   :  { %5502 = vmatpush1.bf16.msra.mxu0 %v5501_v51 }
 0x31e   :  { %5504 = vmatprep.subr.bf16.mxu0 %v5503_v11 }
 0x321   :  { %5506 = vmatpush1.bf16.msra.mxu0 %v5505_v3 }
 0x322   :  { %5508 = vmatprep.subr.bf16.mxu0 %v5507_v46 }
 0x325   :  { %5510 = vmatpush1.bf16.msra.mxu0 %v5509_v30  ;;  %v2320_v30 = vld [vmem:[#allocation11 + $0x108] sm:$0xff] }
 0x35f   :  { %v1617_v29 = vpop.permute.xlu1 %1616 }
 0x360   :  { %v1809_v22 = vsel %vm1808_vm8, %v1304_v40, %v1617_v29  ;;  %v2322_v29 = vld [vmem:[#allocation11 + $0x118] sm:$0xff] }
 0x362   :  { %v1797_v37 = vpop.permute.xlu0 %1796 }
 0x363   :  { %v1813_v23 = vsel %vm1808_vm8, %v1644_v34, %v1797_v37  ;;  %v2319_v37 = vld [vmem:[#allocation11 + $0x100] sm:$0xff] }
 0x364   :  { %v1825_v1 = vcombine.low %v1809_v22, %v1813_v23  ;;  %v1826_v24 = vcombine.high %v1809_v22, %v1813_v23  ;;  %v5511_v22 = vpack.c.bf16 %v2322_v29, %v2320_v30  ;;  %v2321_v23 = vld [vmem:[#allocation11 + $0x110] sm:$0xff]  ;;  %v2648_v30 = vld [vmem:[#allocation14 + $0x18] sm:$0xff] }
 0x366   :  { %v1833_v25 = vrot.slane %v1825_v1, %v6709_v19  ;;  %v1840_v58 = vrot.slane %v1826_v24, %v6709_v19  ;;  %v2324_v1 = vld [vmem:[#allocation11 + $0x128] sm:$0xff]  ;;  %v2326_v24 = vld [vmem:[#allocation11 + $0x138] sm:$0xff]  ;;  %5512 = vmatprep.subr.bf16.mxu0 %v5511_v22 }
 0x367   :  { %v2665_v22 = vld [vmem:[#allocation14 + $0xa0] sm:$0xff] }
 0x368   :  { %v1841_v8 = vcombine.high %v1833_v25, %v1833_v25  ;;  %v1842_v53 = vcombine.high %v1840_v58, %v1840_v58 }
 0x36a   :  { %v1619_v63 = vpop.permute.xlu1 %1618  ;;  %v1799_v31 = vpop.permute.xlu0 %1798  ;;  %v1934_v35 = vcombine.low %v1833_v25, %v1841_v8  ;;  %v1935_v39 = vcombine.low %v1840_v58, %v1842_v53  ;;  %v5513_v25 = vpack.c.bf16 %v2321_v23, %v2319_v37  ;;  %v5515_v58 = vpack.c.bf16 %v2326_v24, %v2324_v1  ;;  %v2323_v8 = vld [vmem:[#allocation11 + $0x120] sm:$0xff]  ;;  %v2325_v53 = vld [vmem:[#allocation11 + $0x130] sm:$0xff] }
 0x36b   :  { %v1810_v16 = vsel %vm1808_vm8, %v7099_v48, %v1619_v63  ;;  %v1814_v26 = vsel %vm1808_vm8, %v7126_v61, %v1799_v31  ;;  %v2328_v63 = vld [vmem:[#allocation11 + $0x148] sm:$0xff]  ;;  %v2330_v31 = vld [vmem:[#allocation11 + $0x158] sm:$0xff] }
 0x36c   :  { %v1843_v56 = vcombine.low %v1810_v16, %v1814_v26  ;;  %v1844_v18 = vcombine.high %v1810_v16, %v1814_v26  ;;  %v1942_v40 = vrot.slane %v1934_v35, %v6709_v19  ;;  %v1949_v34 = vrot.slane %v1935_v39, %v6709_v19  ;;  %5514 = vmatpush1.bf16.msra.mxu0 %v5513_v25  ;;  %v2327_v16 = vld [vmem:[#allocation11 + $0x140] sm:$0xff]  ;;  %v2329_v26 = vld [vmem:[#allocation11 + $0x150] sm:$0xff] }
 0x36d   :  { %v5517_v35 = vpack.c.bf16 %v2325_v53, %v2323_v8  ;;  %5516 = vmatprep.subr.bf16.mxu0 %v5515_v58  ;;  %v5519_v39 = vpack.c.bf16 %v2330_v31, %v2328_v63  ;;  %v2666_v23 = vld [vmem:[#allocation14 + $0xa8] sm:$0xff]  ;;  %v2649_v24 = vld [vmem:[#allocation14 + $0x20] sm:$0xff]  ;;  %v4802_v53 = vld [vmem:[#allocation10] ss:$0 sm:$0xff] }
 0x36e   :  { %v1851_v62 = vrot.slane %v1843_v56, %v6709_v19  ;;  %v1801_v45 = vpop.permute.xlu0 %1800  ;;  %v1621_v49 = vpop.permute.xlu1 %1620  ;;  %v1951_v28 = vcombine.high %v1942_v40, %v1949_v34  ;;  %v1950_v54 = vcombine.low %v1942_v40, %v1949_v34  ;;  %v1858_v4 = vrot.slane %v1844_v18, %v6709_v19  ;;  %v2332_v56 = vld [vmem:[#allocation11 + $0x168] sm:$0xff]  ;;  %v2334_v40 = vld [vmem:[#allocation11 + $0x178] sm:$0xff] }
 0x36f   :  { %v1815_v48 = vsel %vm1808_vm8, %v1685_v36, %v1801_v45  ;;  %v1811_v61 = vsel %vm1808_vm8, %v7146_v27, %v1621_v49  ;;  %v5521_v18 = vpack.c.bf16 %v2329_v26, %v2327_v16  ;;  %v5523_v34 = vpack.c.bf16 %v2334_v40, %v2332_v56  ;;  %v2333_v45 = vld [vmem:[#allocation11 + $0x170] sm:$0xff]  ;;  %v2336_v49 = vld [vmem:[#allocation11 + $0x188] sm:$0xff] }
 0x370   :  { %v1859_v55 = vcombine.high %v1851_v62, %v1851_v62  ;;  %v1860_v59 = vcombine.low %v1811_v61, %v1815_v48  ;;  %v1861_v2 = vcombine.high %v1811_v61, %v1815_v48  ;;  %2069 = vmatprep.mubr.f32.mxu1 %v1951_v28  ;;  %5518 = vmatpush1.bf16.msra.mxu0 %v5517_v35  ;;  %v2335_v61 = vld [vmem:[#allocation11 + $0x180] sm:$0xff]  ;;  %v2650_v25 = vld [vmem:[#allocation14 + $0x28] sm:$0xff] }
 0x371   :  { %2070 = vmatmul.mubr.f32.vlgmr.msra.gmra.mrb[0].mxu1 %v1950_v54  ;;  %5520 = vmatprep.subr.bf16.mxu0 %v5519_v39  ;;  %v2338_v54 = vld [vmem:[#allocation11 + $0x198] sm:$0xff]  ;;  %v5583_v1 = vpack.c.bf16 %v2666_v23, %v2665_v22  ;;  %v5585_v58 = vpack.c.bf16 %v2650_v25, %v2649_v24 }
 0x372   :  { %v1952_v5 = vcombine.low %v1851_v62, %v1859_v55  ;;  %v1868_v12 = vrot.slane %v1860_v59, %v6709_v19  ;;  %v1875_v33 = vrot.slane %v1861_v2, %v6709_v19  ;;  %v1803_v42 = vpop.permute.xlu0 %1802  ;;  %v1623_v43 = vpop.permute.xlu1 %1622  ;;  %v2331_v62 = vld [vmem:[#allocation11 + $0x160] sm:$0xff]  ;;  %v5527_v48 = vpack.c.bf16 %v2338_v54, %v2336_v49  ;;  %v2337_v55 = vld [vmem:[#allocation11 + $0x190] sm:$0xff]  ;;  %v2340_v59 = vld [vmem:[#allocation11 + $0x1a8] sm:$0xff] }
 0x373   :  { %v1816_v21 = vsel %vm1808_vm8, %v1709_v32, %v1803_v42  ;;  %v1812_v9 = vsel %vm1808_vm8, %v7154_v7, %v1623_v43  ;;  %v5525_v28 = vpack.c.bf16 %v2333_v45, %v2331_v62  ;;  %v5529_v2 = vpack.c.bf16 %v2337_v55, %v2335_v61  ;;  %v2344_v42 = vld [vmem:[#allocation11 + $0x1c8] sm:$0xff]  ;;  %v2346_v43 = vld [vmem:[#allocation11 + $0x1d8] sm:$0xff] }
 0x374   :  { %v1876_v27 = vcombine.high %v1868_v12, %v1868_v12  ;;  %v1953_v36 = vcombine.low %v1858_v4, %v1868_v12  ;;  %v1878_v52 = vcombine.low %v1812_v9, %v1816_v21  ;;  %v1877_v50 = vcombine.high %v1875_v33, %v1875_v33  ;;  %5522 = vmatpush1.bf16.msra.mxu0 %v5521_v18  ;;  %v2342_v4 = vld [vmem:[#allocation11 + $0x1b8] sm:$0xff]  ;;  %v2339_v12 = vld [vmem:[#allocation11 + $0x1a0] sm:$0xff] }
 0x375   :  { %v1879_v0 = vcombine.high %v1812_v9, %v1816_v21  ;;  %v1960_v51 = vrot.slane %v1952_v5, %v6709_v19  ;;  %5524 = vmatprep.subr.bf16.mxu0 %v5523_v34  ;;  %v5531_v5 = vpack.c.bf16 %v2342_v4, %v2340_v59  ;;  %v5535_v9 = vpack.c.bf16 %v2346_v43, %v2344_v42 }
 0x376   :  { %v1970_v13 = vcombine.low %v1876_v27, %v1875_v33  ;;  %v1886_v14 = vrot.slane %v1878_v52, %v6709_v19  ;;  %v1967_v11 = vrot.slane %v1953_v36, %v6709_v19  ;;  %v2341_v33 = vld [vmem:[#allocation11 + $0x1b0] sm:$0xff]  ;;  %v2343_v27 = vld [vmem:[#allocation11 + $0x1c0] sm:$0xff]  ;;  %v2348_v52 = vld [vmem:[#allocation11 + $0x1e8] sm:$0xff] }
 0x377   :  { %v1893_v47 = vrot.slane %v1879_v0, %v6709_v19  ;;  %v5533_v21 = vpack.c.bf16 %v2341_v33, %v2339_v12  ;;  %v2345_v36 = vld [vmem:[#allocation11 + $0x1d0] sm:$0xff] }
 0x378   :  { %v1894_v41 = vcombine.high %v1886_v14, %v1886_v14  ;;  %v1971_v38 = vcombine.low %v1877_v50, %v1886_v14  ;;  %v1969_v32 = vcombine.high %v1960_v51, %v1967_v11  ;;  %v1968_v60 = vcombine.low %v1960_v51, %v1967_v11  ;;  %5526 = vmatpush1.bf16.msra.mxu0 %v5525_v28  ;;  %v2350_v50 = vld [vmem:[#allocation11 + $0x1f8] sm:$0xff]  ;;  %v2347_v14 = vld [vmem:[#allocation11 + $0x1e0] sm:$0xff]  ;;  %v2349_v51 = vld [vmem:[#allocation11 + $0x1f0] sm:$0xff] }
 0x379   :  { %v1978_v7 = vrot.slane %v1970_v13, %v6709_v19  ;;  %5528 = vmatprep.subr.bf16.mxu0 %v5527_v48  ;;  %v5537_v0 = vpack.c.bf16 %v2345_v36, %v2343_v27  ;;  %v5539_v13 = vpack.c.bf16 %v2350_v50, %v2348_v52  ;;  %v2352_v11 = vld [vmem:[#allocation11 + $0x208] sm:$0xff] }
 0x37a   :  { %v1988_v6 = vcombine.low %v1894_v41, %v1893_v47  ;;  %2074 = vmatprep.mubr.f32.mxu1 %v1969_v32  ;;  %v1985_v10 = vrot.slane %v1971_v38, %v6709_v19  ;;  %v2354_v47 = vld [vmem:[#allocation11 + $0x218] sm:$0xff]  ;;  %v5541_v41 = vpack.c.bf16 %v2349_v51, %v2347_v14  ;;  %v2661_v32 = vld [vmem:[#allocation14 + $0x80] sm:$0xff] }
 0x37b   :  { %2075 = vmatmul.mubr.f32.gmra.mrb[2].mxu1 %v1968_v60  ;;  %v5543_v38 = vpack.c.bf16 %v2354_v47, %v2352_v11  ;;  %v2662_v60 = vld [vmem:[#allocation14 + $0x88] sm:$0xff] }
 0x37c   :  { %v1987_v3 = vcombine.high %v1978_v7, %v1985_v10  ;;  %v1986_v46 = vcombine.low %v1978_v7, %v1985_v10  ;;  %v1995_v57 = vrot.slane %v1988_v6, %v6709_v19  ;;  %5530 = vmatpush1.bf16.msra.mxu0 %v5529_v2  ;;  %v2645_v6 = vld [vmem:[#allocation14] sm:$0xff]  ;;  %v5575_v7 = vpack.c.bf16 %v2662_v60, %v2661_v32  ;;  %v2646_v10 = vld [vmem:[#allocation14 + $0x8] sm:$0xff] }
 0x37d   :  { %5532 = vmatprep.subr.bf16.mxu0 %v5531_v5 }
 0x37e   :  { %2079 = vmatprep.mubr.f32.mxu1 %v1987_v3  ;;  %v1996_v20 = vcombine.high %v1995_v57, %v1995_v57  ;;  %v5577_v3 = vpack.c.bf16 %v2646_v10, %v2645_v6  ;;  %5576 = vmatprep.subr.bf16.mxu1 %v5575_v7 }
 0x37f   :  { %2080 = vmatmul.mubr.f32.gmra.mrb[4].mxu1 %v1986_v46  ;;  %v2663_v46 = vld [vmem:[#allocation14 + $0x90] sm:$0xff] }
 0x380   :  { %2084 = vmatprep.mubr.f32.mxu1 %v1996_v20  ;;  %5534 = vmatpush1.bf16.msra.mxu0 %v5533_v21  ;;  %v2647_v20 = vld [vmem:[#allocation14 + $0x10] sm:$0xff] }
 0x381   :  { %5536 = vmatprep.subr.bf16.mxu0 %v5535_v9  ;;  %5578 = vmatpush3.bf16.msra.mxu1 %v5577_v3  ;;  %v5581_v37 = vpack.c.bf16 %v2648_v30, %v2647_v20 }
 0x383   :  { %2085 = vmatmul.mubr.f32.gmra.mrb[6].mxu1 %v1995_v57  ;;  %v2664_v57 = vld [vmem:[#allocation14 + $0x98] sm:$0xff] }
 0x384   :  { %5538 = vmatpush1.bf16.msra.mxu0 %v5537_v0  ;;  %v5579_v29 = vpack.c.bf16 %v2664_v57, %v2663_v46 }
 0x385   :  { %5540 = vmatprep.subr.bf16.mxu0 %v5539_v13 }
 0x386   :  { %5580 = vmatprep.subr.bf16.mxu1 %v5579_v29 }
 0x387   :  { %5582 = vmatpush3.bf16.msra.mxu1 %v5581_v37 }
 0x388   :  { %5542 = vmatpush1.bf16.msra.mxu0 %v5541_v41  ;;  %5584 = vmatprep.subr.bf16.mxu1 %v5583_v1 }
 0x389   :  { %5544 = vmatprep.subr.bf16.mxu0 %v5543_v38 }
 0x38b   :  { %5586 = vmatpush3.bf16.msra.mxu1 %v5585_v58 }
 0x444   :  { %v4870_v8 = vpop.f32.mrb[0].mxu1 }
 0x445   :  { %v4871_v63 = vpop.f32.mrb[1].mxu1 }
 0x446   :  { %v4872_v31 = vadd.f32 %v4871_v63, %v4870_v8  ;;  %v2353_v63 = vld [vmem:[#allocation11 + $0x210] sm:$0xff] }
 0x448   :  { %v2072_v35 = vadd.f32 %v4872_v31, %v4802_v53 }
 0x44a   :  { %v2090_v39 = vmax.f32 %v2072_v35, 0.0 }
 0x44c   :  { %v2098_v16 = vcombine.high %v2090_v39, %v2090_v39  ;;  %v2105_v26 = vrot.slane %v2090_v39, %v6709_v19  ;;  %v2356_v39 = vld [vmem:[#allocation11 + $0x228] sm:$0xff] }
 0x44e   :  { %v2112_v56 = vrot.slane %v2098_v16, %v6709_v19  ;;  %v4873_v18 = vpop.f32.mrb[2].mxu1  ;;  %v2113_v45 = vcombine.high %v2105_v26, %v2105_v26  ;;  %v2358_v16 = vld [vmem:[#allocation11 + $0x238] sm:$0xff] }
 0x44f   :  { %v4874_v40 = vpop.f32.mrb[3].mxu1 }
 0x450   :  { %v4875_v34 = vadd.f32 %v4874_v40, %v4873_v18  ;;  %v2114_v62 = vcombine.high %v2112_v56, %v2112_v56  ;;  %v2157_v59 = vcombine.low %v2105_v26, %v2113_v45  ;;  %v2229_v2 = vcombine.low %v2113_v45, %v2112_v56 }
 0x452   :  { %v2077_v49 = vadd.f32 %v4875_v34, %v4802_v53  ;;  %v4876_v28 = vpop.f32.mrb[4].mxu1  ;;  %v2158_v48 = vcombine.low %v2112_v56, %v2114_v62  ;;  %v7203_v52 = vrot.slane %v2229_v2, %v6709_v19  ;;  %v2165_v0 = vrot.slane %v2157_v59, %v6709_v19  ;;  %v2355_v59 = vld [vmem:[#allocation11 + $0x220] sm:$0xff]  ;;  %v2357_v2 = vld [vmem:[#allocation11 + $0x230] sm:$0xff] }
 0x453   :  { %v4877_v54 = vpop.f32.mrb[5].mxu1 }
 0x454   :  { %v2091_v61 = vmax.f32 %v2077_v49, 0.0  ;;  %v4878_v55 = vadd.f32 %v4877_v54, %v4876_v28  ;;  %v2172_v43 = vrot.slane %v2158_v48, %v6709_v19 }
 0x456   :  { %v2115_v4 = vcombine.high %v2091_v61, %v2091_v61  ;;  %v2122_v5 = vrot.slane %v2091_v61, %v6709_v19  ;;  %v2082_v12 = vadd.f32 %v4878_v55, %v4802_v53  ;;  %v4879_v33 = vpop.f32.mrb[6].mxu1  ;;  %v2173_v38 = vcombine.low %v2165_v0, %v2172_v43 }
 0x457   :  { %v4880_v42 = vpop.f32.mrb[7].mxu1  ;;  %v5547_v61 = vpack.c.bf16 %v2358_v16, %v2356_v39  ;;  %v2377_v39 = vld [vmem:[#allocation11 + $0x2d0] sm:$0xff]  ;;  %v2380_v16 = vld [vmem:[#allocation11 + $0x2e8] sm:$0xff] }
 0x458   :  { %v2129_v21 = vrot.slane %v2115_v4, %v6709_v19  ;;  %v2130_v9 = vcombine.high %v2122_v5, %v2122_v5  ;;  %v2230_v27 = vcombine.low %v2114_v62, %v2122_v5  ;;  %v2092_v36 = vmax.f32 %v2082_v12, 0.0  ;;  %v2360_v4 = vld [vmem:[#allocation11 + $0x248] sm:$0xff] }
 0x459   :  { %v4881_v50 = vadd.f32 %v4880_v42, %v4879_v33  ;;  %v2223_v1 = vrot.slane %v2173_v38, 1 }
 0x45a   :  { %v2174_v13 = vcombine.low %v2122_v5, %v2130_v9  ;;  %v7207_v14 = vrot.slane %v2230_v27, %v6709_v19  ;;  %v2131_v51 = vcombine.high %v2129_v21, %v2129_v21  ;;  %v2132_v11 = vcombine.high %v2092_v36, %v2092_v36  ;;  %v2362_v5 = vld [vmem:[#allocation11 + $0x258] sm:$0xff] }
 0x45b   :  { %v2139_v47 = vrot.slane %v2092_v36, %v6709_v19  ;;  %v2087_v41 = vadd.f32 %v4881_v50, %v4802_v53  ;;  %v2213_v6 = vrot.slane %v2129_v21, %v6709_v19  ;;  %v2246_v30 = vcombine.low %v2130_v9, %v2129_v21  ;;  %v2351_v53 = vld [vmem:[#allocation11 + $0x200] sm:$0xff] }
 0x45c   :  { %v2146_v32 = vrot.slane %v2132_v11, %v6709_v19  ;;  %v7212_v60 = vrot.slane %v2174_v13, %v6709_v19  ;;  %v4808_v7 = vcombine.low %v7203_v52, %v7207_v14  ;;  %v5545_v49 = vpack.c.bf16 %v2353_v63, %v2351_v53  ;;  %v2361_v13 = vld [vmem:[#allocation11 + $0x250] sm:$0xff]  ;;  %v2378_v53 = vld [vmem:[#allocation11 + $0x2d8] sm:$0xff]  ;;  %v2745_v14 = vld [vmem:[#allocation14 + $0x320] sm:$0xff] }
 0x45d   :  { %v2147_v10 = vcombine.high %v2139_v47, %v2139_v47  ;;  %v2182_v3 = vcombine.low %v2131_v51, %v2139_v47  ;;  %v2093_v46 = vmax.f32 %v2087_v41, 0.0  ;;  %v7224_v26 = vrot.slane %v2246_v30, %v6709_v19  ;;  %v2366_v41 = vld [vmem:[#allocation11 + $0x278] sm:$0xff] }
 0x45e   :  { %v2148_v57 = vcombine.high %v2146_v32, %v2146_v32  ;;  %v2214_v20 = vcombine.low %v7212_v60, %v2213_v6  ;;  %v5549_v21 = vpack.c.bf16 %v2357_v2, %v2355_v59  ;;  %v5551_v50 = vpack.c.bf16 %v2362_v5, %v2360_v4  ;;  %v2742_v59 = vld [vmem:[#allocation14 + $0x308] sm:$0xff]  ;;  %v2759_v2 = vld [vmem:[#allocation14 + $0x390] sm:$0xff]  ;;  %v2760_v4 = vld [vmem:[#allocation14 + $0x398] sm:$0xff] }
 0x45f   :  { %v2183_v29 = vcombine.low %v2147_v10, %v2146_v32  ;;  %v2190_v37 = vrot.slane %v2182_v3, %v6709_v19  ;;  %v2155_v22 = vrot.slane %v2093_v46, %v6709_v19  ;;  %v2254_v23 = vcombine.low %v2139_v47, %v2147_v10  ;;  %v2364_v47 = vld [vmem:[#allocation11 + $0x268] sm:$0xff]  ;;  %v2363_v10 = vld [vmem:[#allocation11 + $0x260] sm:$0xff]  ;;  %v2365_v3 = vld [vmem:[#allocation11 + $0x270] sm:$0xff] }
 0x460   :  { %v2224_v24 = vrot.slane %v2214_v20, 1  ;;  %v2255_v18 = vcombine.low %v2146_v32, %v2148_v57  ;;  %v5555_v6 = vpack.c.bf16 %v2366_v41, %v2364_v47  ;;  %v2368_v46 = vld [vmem:[#allocation11 + $0x288] sm:$0xff]  ;;  %v5557_v20 = vpack.c.bf16 %v2365_v3, %v2363_v10  ;;  %v2652_v47 = vld [vmem:[#allocation14 + $0x38] sm:$0xff] }
 0x461   :  { %v2197_v25 = vrot.slane %v2183_v29, %v6709_v19  ;;  %v2156_v58 = vcombine.high %v2155_v22, %v2155_v22  ;;  %v2199_v8 = vcombine.low %v2148_v57, %v2155_v22  ;;  %v4809_v31 = vcombine.low %v7212_v60, %v2190_v37  ;;  %v2370_v57 = vld [vmem:[#allocation11 + $0x298] sm:$0xff]  ;;  %v2367_v29 = vld [vmem:[#allocation11 + $0x280] sm:$0xff] }
 0x462   :  { %v2225_v35 = vsel %vm369_vm0, %v2223_v1, %v2224_v24  ;;  %v7227_v56 = vrot.slane %v2254_v23, %v6709_v19  ;;  %v7234_v12 = vrot.slane %v2255_v18, %v6709_v19  ;;  %v5559_v30 = vpack.c.bf16 %v2370_v57, %v2368_v46  ;;  %v2374_v23 = vld [vmem:[#allocation11 + $0x2b8] sm:$0xff]  ;;  %v2765_v46 = vld [vmem:[#allocation14 + $0x3c0] sm:$0xff]  ;;  %v2766_v57 = vld [vmem:[#allocation14 + $0x3c8] sm:$0xff] }
 0x463   :  { %v2206_v40 = vrot.slane %v2199_v8, %v6709_v19  ;;  %v2221_v34 = vrot.slane %v2156_v58, %v6709_v19  ;;  %v2280_v62 = vcombine.high %v2173_v38, %v2225_v35  ;;  %2477 = vmatprep.mubr.f32.mxu0 %v2225_v35  ;;  %v2198_v45 = vcombine.low %v2190_v37, %v2197_v25  ;;  %v2369_v37 = vld [vmem:[#allocation11 + $0x290] sm:$0xff]  ;;  %v2371_v25 = vld [vmem:[#allocation11 + $0x2a0] sm:$0xff]  ;;  %v2376_v8 = vld [vmem:[#allocation11 + $0x2c8] sm:$0xff] }
 0x464   :  { %v4811_v28 = vcombine.low %v7224_v26, %v7227_v56  ;;  %v2271_v54 = vcombine.low %v2155_v22, %v2156_v58  ;;  %v2372_v22 = vld [vmem:[#allocation11 + $0x2a8] sm:$0xff]  ;;  %v5561_v1 = vpack.c.bf16 %v2369_v37, %v2367_v29  ;;  %v2373_v58 = vld [vmem:[#allocation11 + $0x2b0] sm:$0xff]  ;;  %v2375_v35 = vld [vmem:[#allocation11 + $0x2c0] sm:$0xff] }
 0x465   :  { %v4807_v48 = vcombine.low %v2165_v0, %v2280_v62  ;;  %v2222_v55 = vcombine.low %v2206_v40, %v2221_v34  ;;  %v2226_v42 = vrot.slane %v2198_v45, 1  ;;  %v2359_v0 = vld [vmem:[#allocation11 + $0x240] sm:$0xff]  ;;  %v5565_v63 = vpack.c.bf16 %v2373_v58, %v2371_v25  ;;  %v2382_v18 = vld [vmem:[#allocation11 + $0x2f8] sm:$0xff]  ;;  %v2750_v29 = vld [vmem:[#allocation14 + $0x348] sm:$0xff] }
 0x466   :  { %v7237_v33 = vrot.slane %v2271_v54, %v6709_v19  ;;  %v5553_v32 = vpack.c.bf16 %v2361_v13, %v2359_v0  ;;  %v5571_v34 = vpack.c.bf16 %v2382_v18, %v2380_v16  ;;  %v2379_v62 = vld [vmem:[#allocation11 + $0x2e0] sm:$0xff]  ;;  %v2758_v54 = vld [vmem:[#allocation14 + $0x388] sm:$0xff]  ;;  %v2667_v0 = vld [vmem:[#allocation14 + $0xb0] sm:$0xff] }
 0x467   :  { %2478 = vmatmul.mubr.f32.vlgmr.msra.gmra.mrb[10].mxu0 %v4807_v48  ;;  %v2227_v43 = vrot.slane %v2222_v55, 1  ;;  %v2741_v55 = vld [vmem:[#allocation14 + $0x300] sm:$0xff]  ;;  %v2671_v37 = vld [vmem:[#allocation14 + $0xd0] sm:$0xff]  ;;  %v2674_v16 = vld [vmem:[#allocation14 + $0xe8] sm:$0xff] }
 0x468   :  { %5546 = vmatpush1.bf16.msra.mxu0 %v5545_v49  ;;  %v4814_v9 = vcombine.low %v7234_v12, %v7237_v33  ;;  %v2757_v49 = vld [vmem:[#allocation14 + $0x380] sm:$0xff]  ;;  %v5673_v5 = vpack.c.bf16 %v2742_v59, %v2741_v55  ;;  %v2747_v12 = vld [vmem:[#allocation14 + $0x330] sm:$0xff]  ;;  %v2748_v33 = vld [vmem:[#allocation14 + $0x338] sm:$0xff] }
 0x469   :  { %5548 = vmatprep.subr.bf16.mxu0 %v5547_v61  ;;  %v2228_v27 = vsel %vm369_vm0, %v2226_v42, %v2227_v43  ;;  %v2286_v36 = vcombine.low %v2206_v40, %v2227_v43  ;;  %v5671_v61 = vpack.c.bf16 %v2758_v54, %v2757_v49  ;;  %v5675_v42 = vpack.c.bf16 %v2760_v4, %v2759_v2  ;;  %v2743_v43 = vld [vmem:[#allocation14 + $0x310] sm:$0xff]  ;;  %v2770_v54 = vld [vmem:[#allocation14 + $0x3e8] sm:$0xff]  ;;  %v2676_v2 = vld [vmem:[#allocation14 + $0xf8] sm:$0xff] }
 0x46a   :  { %v4810_v51 = vcombine.low %v2224_v24, %v2228_v27  ;;  %v2284_v11 = vcombine.high %v2198_v45, %v2228_v27  ;;  %v5563_v24 = vpack.c.bf16 %v2374_v23, %v2372_v22  ;;  %v2381_v45 = vld [vmem:[#allocation11 + $0x2f0] sm:$0xff]  ;;  %v2672_v23 = vld [vmem:[#allocation14 + $0xd8] sm:$0xff] }
 0x46b   :  { %v4813_v38 = vcombine.high %v2228_v27, %v2286_v36  ;;  %v5573_v48 = vpack.c.bf16 %v2381_v45, %v2379_v62  ;;  %v2761_v36 = vld [vmem:[#allocation14 + $0x3a0] sm:$0xff]  ;;  %v5595_v25 = vpack.c.bf16 %v2672_v23, %v2671_v37  ;;  %v2658_v62 = vld [vmem:[#allocation14 + $0x68] sm:$0xff]  ;;  %v2675_v59 = vld [vmem:[#allocation14 + $0xf0] sm:$0xff] }
 0x46c   :  { %2483 = vmatprep.mubr.f32.mxu0 %v4810_v51  ;;  %5550 = vmatpush1.bf16.msra.mxu0 %v5549_v21  ;;  %v4812_v60 = vcombine.low %v2284_v11, %v2206_v40  ;;  %v5569_v40 = vpack.c.bf16 %v2377_v39, %v2375_v35  ;;  %v2744_v21 = vld [vmem:[#allocation14 + $0x318] sm:$0xff]  ;;  %v2651_v11 = vld [vmem:[#allocation14 + $0x30] sm:$0xff]  ;;  %v2673_v39 = vld [vmem:[#allocation14 + $0xe0] sm:$0xff] }
 0x46d   :  { %2484 = vmatmul.mubr.f32.gmra.mrb[12].mxu0 %v4809_v31  ;;  %5552 = vmatprep.subr.bf16.mxu0 %v5551_v50  ;;  %v5567_v31 = vpack.c.bf16 %v2378_v53, %v2376_v8  ;;  %v5677_v27 = vpack.c.bf16 %v2744_v21, %v2743_v43  ;;  %v2762_v50 = vld [vmem:[#allocation14 + $0x3a8] sm:$0xff]  ;;  %v2668_v51 = vld [vmem:[#allocation14 + $0xb8] sm:$0xff]  ;;  %v5589_v56 = vpack.c.bf16 %v2652_v47, %v2651_v11  ;;  %v2767_v8 = vld [vmem:[#allocation14 + $0x3d0] sm:$0xff] }
 0x46e   :  { %2489 = vmatprep.mubr.f32.mxu0 %v4813_v38  ;;  %v5679_v52 = vpack.c.bf16 %v2762_v50, %v2761_v36  ;;  %v5587_v26 = vpack.c.bf16 %v2668_v51, %v2667_v0  ;;  %v5685_v38 = vpack.c.bf16 %v2748_v33, %v2747_v12  ;;  %v2768_v53 = vld [vmem:[#allocation14 + $0x3d8] sm:$0xff]  ;;  %v2769_v45 = vld [vmem:[#allocation14 + $0x3e0] sm:$0xff]  ;;  %v2659_v4 = vld [vmem:[#allocation14 + $0x70] sm:$0xff] }
 0x46f   :  { %v2752_v35 = vld [vmem:[#allocation14 + $0x358] sm:$0xff]  ;;  %v5695_v55 = vpack.c.bf16 %v2770_v54, %v2769_v45  ;;  %v2771_v21 = vld [vmem:[#allocation14 + $0x3f0] sm:$0xff]  ;;  %v2694_v0 = vld [vmem:[#allocation14 + $0x188] sm:$0xff] }
 0x470   :  { %5554 = vmatpush1.bf16.msra.mxu0 %v5553_v32  ;;  %5588 = vmatprep.subr.bf16.mxu1 %v5587_v26  ;;  %v2670_v32 = vld [vmem:[#allocation14 + $0xc8] sm:$0xff]  ;;  %v2660_v43 = vld [vmem:[#allocation14 + $0x78] sm:$0xff]  ;;  %v2755_v50 = vld [vmem:[#allocation14 + $0x370] sm:$0xff] }
 0x471   :  { %2490 = vmatmul.mubr.f32.gmra.mrb[14].mxu0 %v4812_v60  ;;  %5556 = vmatprep.subr.bf16.mxu0 %v5555_v6  ;;  %v2653_v60 = vld [vmem:[#allocation14 + $0x40] sm:$0xff]  ;;  %v2654_v6 = vld [vmem:[#allocation14 + $0x48] sm:$0xff] }
 0x472   :  { %2560 = vmatprep.mubr.f32.mxu0 %v6468_v17  ;;  %5590 = vmatpush3.bf16.msra.mxu1 %v5589_v56  ;;  %v5593_v3 = vpack.c.bf16 %v2654_v6, %v2653_v60  ;;  %v2821_v51 = vld [vmem:[#allocation14 + $0x580] sm:$0xff]  ;;  %v2822_v11 = vld [vmem:[#allocation14 + $0x588] sm:$0xff]  ;;  %v2387_v56 = vsub.s32 0, %v6706_v15  ;;  %v6472_v6 = vmov 1935823168  }
 0x473   :  { %v5735_v26 = vpack.c.bf16 %v2822_v11, %v2821_v51 }
 0x474   :  { %5558 = vmatpush1.bf16.msra.mxu0 %v5557_v20  ;;  %v5687_v20 = vpack.c.bf16 %v2766_v57, %v2765_v46 }
 0x475   :  { %5560 = vmatprep.subr.bf16.mxu0 %v5559_v30  ;;  %v2749_v30 = vld [vmem:[#allocation14 + $0x340] sm:$0xff] }
 0x476   :  { %v5689_v22 = vpack.c.bf16 %v2750_v29, %v2749_v30 }
 0x478   :  { %5562 = vmatpush1.bf16.msra.mxu0 %v5561_v1  ;;  %v2655_v1 = vld [vmem:[#allocation14 + $0x50] sm:$0xff] }
 0x479   :  { %5564 = vmatprep.subr.bf16.mxu0 %v5563_v24  ;;  %v2656_v24 = vld [vmem:[#allocation14 + $0x58] sm:$0xff] }
 0x47a   :  { %v5597_v58 = vpack.c.bf16 %v2656_v24, %v2655_v1 }
 0x47c   :  { %5566 = vmatpush1.bf16.msra.mxu0 %v5565_v63  ;;  %v2751_v63 = vld [vmem:[#allocation14 + $0x350] sm:$0xff] }
 0x47d   :  { %5568 = vmatprep.subr.bf16.mxu0 %v5567_v31  ;;  %v5691_v31 = vpack.c.bf16 %v2768_v53, %v2767_v8  ;;  %v5693_v18 = vpack.c.bf16 %v2752_v35, %v2751_v63 }
 0x480   :  { %5570 = vmatpush1.bf16.msra.mxu0 %v5569_v40  ;;  %v5599_v40 = vpack.c.bf16 %v2674_v16, %v2673_v39 }
 0x481   :  { %5572 = vmatprep.subr.bf16.mxu0 %v5571_v34  ;;  %v2657_v34 = vld [vmem:[#allocation14 + $0x60] sm:$0xff] }
 0x482   :  { %v5601_v49 = vpack.c.bf16 %v2658_v62, %v2657_v34 }
 0x484   :  { %5574 = vmatpush1.bf16.msra.mxu0 %v5573_v48  ;;  %v2753_v48 = vld [vmem:[#allocation14 + $0x360] sm:$0xff] }
 0x485   :  { %5672 = vmatprep.subr.bf16.mxu0 %v5671_v61  ;;  %v2754_v61 = vld [vmem:[#allocation14 + $0x368] sm:$0xff] }
 0x487   :  { %2561 = vmatmul.mubr.f32.vlgmr.msra.gmra.mrb[10].mxu0 %v4808_v7  ;;  %v2746_v7 = vld [vmem:[#allocation14 + $0x328] sm:$0xff] }
 0x488   :  { %2566 = vmatprep.mubr.f32.mxu0 %v6468_v17  ;;  %5674 = vmatpush3.bf16.msra.mxu0 %v5673_v5  ;;  %v5681_v13 = vpack.c.bf16 %v2746_v7, %v2745_v14  ;;  %v5697_v5 = vpack.c.bf16 %v2754_v61, %v2753_v48  ;;  %v2693_v14 = vld [vmem:[#allocation14 + $0x180] sm:$0xff]  ;;  %v5605_v7 = vpack.c.bf16 %v2660_v43, %v2659_v4 }
 0x489   :  { %5676 = vmatprep.subr.bf16.mxu0 %v5675_v42  ;;  %v5603_v42 = vpack.c.bf16 %v2676_v2, %v2675_v59 }
 0x48b   :  { %2567 = vmatmul.mubr.f32.gmra.mrb[12].mxu0 %v4811_v28  ;;  %v2763_v28 = vld [vmem:[#allocation14 + $0x3b0] sm:$0xff] }
 0x48c   :  { %2572 = vmatprep.mubr.f32.mxu0 %v6468_v17  ;;  %5678 = vmatpush3.bf16.msra.mxu0 %v5677_v27  ;;  %v2764_v17 = vld [vmem:[#allocation14 + $0x3b8] sm:$0xff] }
 0x48d   :  { %5680 = vmatprep.subr.bf16.mxu0 %v5679_v52  ;;  %v5683_v41 = vpack.c.bf16 %v2764_v17, %v2763_v28  ;;  %v2772_v27 = vld [vmem:[#allocation14 + $0x3f8] sm:$0xff]  ;;  %v2391_v17 = vsub.s32 1, %v6706_v15 }
 0x48e   :  { %v5699_v36 = vpack.c.bf16 %v2772_v27, %v2771_v21  ;;  %v2756_v52 = vld [vmem:[#allocation14 + $0x378] sm:$0xff] }
 0x48f   :  { %2573 = vmatmul.mubr.f32.gmra.mrb[14].mxu0 %v4814_v9  ;;  %v2669_v9 = vld [vmem:[#allocation14 + $0xc0] sm:$0xff]  ;;  %v5701_v47 = vpack.c.bf16 %v2756_v52, %v2755_v50  ;;  %v2383_v28 = vld [vmem:[#allocation13] sm:$0x3] }
 0x490   :  { %5682 = vmatpush3.bf16.msra.mxu0 %v5681_v13  ;;  %v5591_v10 = vpack.c.bf16 %v2670_v32, %v2669_v9  ;;  %v5607_v13 = vpack.c.bf16 %v2694_v0, %v2693_v14  ;;  %v2392_v12 = vrot.slane %v2383_v28, %v2391_v17 }
 0x491   :  { %5684 = vmatprep.subr.bf16.mxu0 %v5683_v41  ;;  %v2388_v41 = vrot.slane %v2383_v28, %v2387_v56  ;;  %v2678_v56 = vld [vmem:[#allocation14 + $0x108] sm:$0xff] }
 0x492   :  { %5592 = vmatprep.subr.bf16.mxu1 %v5591_v10  ;;  %v2604_v10 = vunpack.c.l.s4 %v6472_v6  ;;  %v2679_v6 = vld [vmem:[#allocation14 + $0x110] sm:$0xff] }
 0x493   :  { %5594 = vmatpush3.bf16.msra.mxu1 %v5593_v3 }
 0x494   :  { %5686 = vmatpush3.bf16.msra.mxu0 %v5685_v38  ;;  %5596 = vmatprep.subr.bf16.mxu1 %v5595_v25  ;;  %v2605_v37 = vunpack.c.0.s8 %v2604_v10 }
 0x495   :  { %5688 = vmatprep.subr.bf16.mxu0 %v5687_v20 }
 0x496   :  { %v2608_v53 = vsub.s32 %v2605_v37, %v6706_v15 }
 0x497   :  { %5598 = vmatpush3.bf16.msra.mxu1 %v5597_v58 }
 0x498   :  { %5690 = vmatpush3.bf16.msra.mxu0 %v5689_v22  ;;  %5600 = vmatprep.subr.bf16.mxu1 %v5599_v40 }
 0x499   :  { %5692 = vmatprep.subr.bf16.mxu0 %v5691_v31 }
 0x49b   :  { %5602 = vmatpush3.bf16.msra.mxu1 %v5601_v49 }
 0x49c   :  { %5694 = vmatpush3.bf16.msra.mxu0 %v5693_v18  ;;  %5604 = vmatprep.subr.bf16.mxu1 %v5603_v42 }
 0x49d   :  { %5696 = vmatprep.subr.bf16.mxu0 %v5695_v55 }
 0x49f   :  { %5606 = vmatpush3.bf16.msra.mxu1 %v5605_v7 }
 0x4a0   :  { %5698 = vmatpush3.bf16.msra.mxu0 %v5697_v5  ;;  %5608 = vmatprep.subr.bf16.mxu1 %v5607_v13 }
 0x4a1   :  { %5700 = vmatprep.subr.bf16.mxu0 %v5699_v36 }
 0x4a4   :  { %5702 = vmatpush3.bf16.msra.mxu0 %v5701_v47 }
 0x4a5   :  { %5736 = vmatprep.subr.bf16.mxu0 %v5735_v26  ;;  %v2677_v26 = vld [vmem:[#allocation14 + $0x100] sm:$0xff] }
 0x55a   :  { %v2562_v33 = vpop.f32.mrb[10].mxu0 }
 0x55b   :  { %v6071_v9 = vadd.f32 %v2562_v33, %v2388_v41  ;;  %v2564_v38 = vpop.f32.mrb[11].mxu0 }
 0x55c   :  { %v6072_v32 = vadd.f32 %v2564_v38, %v2392_v12  ;;  %v2805_v38 = vld [vmem:[#allocation14 + $0x500] sm:$0xff] }
 0x55d   :  { %v7256_v60 = vmax.f32 %v6071_v9, 0.0 }
 0x55e   :  { %v7258_v3 = vmax.f32 %v6072_v32, 0.0  ;;  %v2568_v46 = vpop.f32.mrb[12].mxu0  ;;  %v2806_v32 = vld [vmem:[#allocation14 + $0x508] sm:$0xff] }
 0x55f   :  { %v6073_v57 = vadd.f32 %v2568_v46, %v2388_v41  ;;  %v2570_v20 = vpop.f32.mrb[13].mxu0 }
 0x560   :  { %v7262_v30 = vcombine.low %v7256_v60, %v7258_v3  ;;  %v7266_v29 = vcombine.high %v7256_v60, %v7258_v3  ;;  %v6074_v23 = vadd.f32 %v2570_v20, %v2392_v12  ;;  %v5609_v20 = vpack.c.bf16 %v2678_v56, %v2677_v26  ;;  %v7367_v56 = vld [vmem:[#allocation14 + $0x520] sm:$0xff] }
 0x561   :  { %v2581_v22 = vmax.f32 %v6073_v57, 0.0 }
 0x562   :  { %v2574_v1 = vpop.f32.mrb[14].mxu0  ;;  %v7268_v24 = vmax.f32 %v6074_v23, 0.0  ;;  %v2609_v15 = vrot.slane %v7262_v30, %v2608_v53  ;;  %v7300_v59 = vrot.slane %v7266_v29, %v2608_v53  ;;  %v2823_v23 = vld [vmem:[#allocation14 + $0x590] sm:$0xff] }
 0x563   :  { %v6075_v25 = vadd.f32 %v2574_v1, %v2388_v41  ;;  %v2576_v58 = vpop.f32.mrb[15].mxu0  ;;  %v2695_v41 = vld [vmem:[#allocation14 + $0x190] sm:$0xff]  ;;  %v2824_v1 = vld [vmem:[#allocation14 + $0x598] sm:$0xff] }
 0x564   :  { %v6076_v8 = vadd.f32 %v2576_v58, %v2392_v12  ;;  %v7272_v63 = vcombine.low %v2581_v22, %v7268_v24  ;;  %v7275_v31 = vcombine.high %v2581_v22, %v7268_v24  ;;  %v2696_v12 = vld [vmem:[#allocation14 + $0x198] sm:$0xff] }
 0x565   :  { %v2583_v35 = vmax.f32 %v6075_v25, 0.0  ;;  %v2680_v22 = vld [vmem:[#allocation14 + $0x118] sm:$0xff] }
 0x566   :  { %v2584_v39 = vmax.f32 %v6076_v8, 0.0  ;;  %v2630_v62 = vrot.slane %v7275_v31, %v2608_v53  ;;  %v7288_v49 = vrot.slane %v7272_v63, %v2608_v53 }
 0x567   :  { %v7278_v16 = vcombine.low %v7275_v31, %v2583_v35 }
 0x568   :  { %v7280_v18 = vcombine.low %v2583_v35, %v2584_v39  ;;  %v7282_v40 = vcombine.high %v2583_v35, %v2584_v39  ;;  %v4819_v34 = vcombine.high %v2584_v39, %v2584_v39  ;;  %v3042_v27 = vcombine.low %v2609_v15, %v2630_v62 }
 0x569   :  { %v4070_v45 = vrot.slane %v7278_v16, 1  ;;  %v3043_v52 = vcombine.high %v2609_v15, %v2630_v62  ;;  %v7352_v62 = vld [vmem:[#allocation14 + $0x518] sm:$0xff]  ;;  %v2697_v15 = vld [vmem:[#allocation14 + $0x1a0] sm:$0xff] }
 0x56a   :  { %v7291_v54 = vrot.slane %v7280_v18, %v2608_v53  ;;  %v7294_v48 = vrot.slane %v7282_v40, %v2608_v53  ;;  %v4818_v61 = vcombine.high %v7268_v24, %v7280_v18  ;;  %v4071_v55 = vrot.slane %v7282_v40, 1 }
 0x56b   :  { %v4074_v2 = vrot.slane %v4819_v34, 1  ;;  %v7884_v4 = vrot.slane %v7282_v40, 2  ;;  %v4086_v5 = vrot.slane %v4819_v34, 2  ;;  %v3050_v13 = vrot.slane %v3042_v27, %v6788_v44  ;;  %v7350_v34 = vld [vmem:[#allocation14 + $0x510] sm:$0xff]  ;;  %v2825_v27 = vld [vmem:[#allocation14 + $0x5a0] sm:$0xff] }
 0x56c   :  { %v7304_v42 = vsel %vm369_vm0, %v4070_v45, %v4071_v55  ;;  %v4073_v43 = vrot.slane %v4818_v61, 1  ;;  %v4085_v21 = vrot.slane %v4818_v61, 2  ;;  %v3092_v14 = vcombine.low %v7300_v59, %v7291_v54  ;;  %v2698_v45 = vld [vmem:[#allocation14 + $0x1a8] sm:$0xff] }
 0x56d   :  { %v7306_v36 = vcombine.low %v4071_v55, %v4074_v2  ;;  %v7310_v50 = vcombine.low %v7884_v4, %v4086_v5  ;;  %v3093_v51 = vcombine.high %v7300_v59, %v7291_v54  ;;  %v3057_v28 = vrot.slane %v3043_v52, %v6788_v44  ;;  %v2826_v52 = vld [vmem:[#allocation14 + $0x5a8] sm:$0xff] }
 0x56e   :  { %v7315_v7 = vsel %vm369_vm0, %v4073_v43, %v4074_v2  ;;  %v7318_v0 = vsel %vm398_vm2, %v4085_v21, %v4086_v5  ;;  %v3058_v17 = vcombine.high %v3050_v13, %v3050_v13  ;;  %v7329_v33 = vrot.slane %v3092_v14, %v6788_v44  ;;  %v7357_v43 = vld [vmem:[#allocation14 + $0x120] sm:$0xff]  ;;  %v2682_v21 = vld [vmem:[#allocation14 + $0x128] sm:$0xff] }
 0x56f   :  { %v4169_v11 = vcombine.low %v7304_v42, %v7315_v7  ;;  %v4170_v47 = vcombine.high %v7304_v42, %v7315_v7  ;;  %v3059_v9 = vcombine.high %v3057_v28, %v3057_v28  ;;  %v7337_v37 = vrot.slane %v3057_v28, %v6788_v44  ;;  %v7369_v28 = vld [vmem:[#allocation14 + $0x528] sm:$0xff] }
 0x570   :  { %v3080_v57 = vrot.slane %v3058_v17, %v6788_v44  ;;  %v3108_v25 = vcombine.high %v7329_v33, %v7329_v33  ;;  %v7342_v58 = vrot.slane %v3050_v13, %v6788_v44  ;;  %v5611_v53 = vpack.c.bf16 %v2696_v12, %v2695_v41  ;;  %v2699_v17 = vld [vmem:[#allocation14 + $0x1b0] sm:$0xff]  ;;  %v2700_v41 = vld [vmem:[#allocation14 + $0x1b8] sm:$0xff] }
 0x571   :  { %v7345_v8 = vrot.slane %v3059_v9, %v6788_v44  ;;  %v5737_v55 = vpack.c.bf16 %v2806_v32, %v2805_v38  ;;  %v5613_v2 = vpack.c.bf16 %v2680_v22, %v2679_v6  ;;  %v5739_v5 = vpack.c.bf16 %v2824_v1, %v2823_v23  ;;  %v7371_v12 = vld [vmem:[#allocation14 + $0x130] sm:$0xff]  ;;  %v7373_v9 = vld [vmem:[#allocation14 + $0x138] sm:$0xff]  ;;  %v7385_v22 = vld [vmem:[#allocation14 + $0x1c8] sm:$0xff] }
 0x572   :  { %3280 = vmatprep.mubr.f32.mxu1 %v3080_v57  ;;  %v3090_v35 = vcombine.high %v3080_v57, %v3080_v57  ;;  %v7348_v39 = vrot.slane %v3108_v25, %v6788_v44  ;;  %v7361_v14 = vcombine.low %v7268_v24, %v7268_v24  ;;  %v3089_v13 = vcombine.high %v7337_v37, %v7337_v37  ;;  %v7375_v38 = vld [vmem:[#allocation14 + $0x5b0] sm:$0xff]  ;;  %v7377_v32 = vld [vmem:[#allocation14 + $0x5b8] sm:$0xff]  ;;  %v7387_v23 = vld [vmem:[#allocation14 + $0x140] sm:$0xff] }
 0x573   :  { %3281 = vmatmul.mubr.f32.vlgmr.msra.gmra.mrb[8].mxu1 %v7342_v58  ;;  %v3091_v61 = vcombine.high %v7345_v8, %v7345_v8  ;;  %v5615_v24 = vpack.c.bf16 %v2698_v45, %v2697_v15  ;;  %v7379_v6 = vld [vmem:[#allocation14 + $0x530] sm:$0xff]  ;;  %v7381_v57 = vld [vmem:[#allocation14 + $0x538] sm:$0xff]  ;;  %v5741_v1 = vpack.c.bf16 %v7352_v62, %v7350_v34  ;;  %v7391_v25 = vld [vmem:[#allocation14 + $0x148] sm:$0xff]  ;;  %v5617_v45 = vpack.c.bf16 %v2682_v21, %v7357_v43 }
 0x574   :  { %5610 = vmatpush3.bf16.msra.mxu1 %v5609_v20  ;;  %3350 = vmatprep.mubr.f32.mxu1 %v3090_v35  ;;  %v3140_v26 = vcombine.high %v7348_v39, %v7348_v39  ;;  %v7383_v20 = vld [vmem:[#allocation14 + $0x1c0] sm:$0xff]  ;;  %v7395_v35 = vld [vmem:[#allocation14 + $0x5c8] sm:$0xff]  ;;  %v4068_v15 = vrot.slane %v7361_v14, 1  ;;  %v4065_v34 = vrot.slane %v7272_v63, 1  ;;  %v5745_v62 = vpack.c.bf16 %v7369_v28, %v7367_v56  ;;  %v7412_v43 = vld [vmem:[#allocation14 + $0x150] sm:$0xff] }
 0x575   :  { %3490 = vmatprep.mubr.f32.mxu0 %v3091_v61  ;;  %5612 = vmatprep.subr.bf16.mxu1 %v5611_v53  ;;  %v7393_v53 = vld [vmem:[#allocation14 + $0x5c0] sm:$0xff]  ;;  %v5743_v61 = vpack.c.bf16 %v2826_v52, %v2825_v27  ;;  %v5619_v46 = vpack.c.bf16 %v2700_v41, %v2699_v17  ;;  %v7414_v21 = vld [vmem:[#allocation14 + $0x158] sm:$0xff]  ;;  %v4064_v27 = vrot.slane %v7256_v60, 1  ;;  %v4067_v52 = vrot.slane %v7258_v3, 1  ;;  %v7422_v28 = vld [vmem:[#allocation14 + $0x5d0] sm:$0xff] }
 0x576   :  { %3491 = vmatmul.mubr.f32.vlgmr.msra.gmra.mrb[16].mxu0 %v3089_v13  ;;  %v7399_v13 = vld [vmem:[#allocation14 + $0x540] sm:$0xff]  ;;  %v5749_v56 = vpack.c.bf16 %v7381_v57, %v7379_v6  ;;  %v7424_v17 = vld [vmem:[#allocation14 + $0x5d8] sm:$0xff]  ;;  %v7426_v41 = vld [vmem:[#allocation14 + $0x550] sm:$0xff]  ;;  %v5751_v10 = vpack.c.bf16 %v7395_v35, %v7393_v53  ;;  %v4098_v57 = vrot.slane %v7262_v30, %v6709_v19  ;;  %v5629_v30 = vpack.c.bf16 %v7414_v21, %v7412_v43 }
 0x577   :  { %5738 = vmatpush3.bf16.msra.mxu0 %v5737_v55  ;;  %3630 = vmatprep.mubr.f32.mxu0 %v3140_v26  ;;  %v7401_v55 = vld [vmem:[#allocation14 + $0x548] sm:$0xff]  ;;  %v7403_v26 = vld [vmem:[#allocation14 + $0x1d0] sm:$0xff]  ;;  %v7513_v4 = vrot.slane %v7282_v40, %v6709_v19 }
 0x578   :  { %5614 = vmatpush3.bf16.msra.mxu1 %v5613_v2  ;;  %5740 = vmatprep.subr.bf16.mxu0 %v5739_v5  ;;  %v5621_v2 = vpack.c.bf16 %v7373_v9, %v7371_v12  ;;  %v7410_v5 = vld [vmem:[#allocation14 + $0x1d8] sm:$0xff]  ;;  %v5623_v12 = vpack.c.bf16 %v7385_v22, %v7383_v20  ;;  %v5625_v9 = vpack.c.bf16 %v7391_v25, %v7387_v23  ;;  %v7438_v6 = vld [vmem:[#allocation14 + $0x1e8] sm:$0xff] }
 0x579   :  { %5616 = vmatprep.subr.bf16.mxu1 %v5615_v24  ;;  %v5747_v24 = vpack.c.bf16 %v7377_v32, %v7375_v38  ;;  %v7434_v38 = vld [vmem:[#allocation14 + $0x558] sm:$0xff]  ;;  %v7436_v32 = vld [vmem:[#allocation14 + $0x1e0] sm:$0xff]  ;;  %v4069_v20 = vsel %vm369_vm0, %v4067_v52, %v4068_v15  ;;  %v4105_v22 = vrot.slane %v7266_v29, %v6709_v19  ;;  %v5753_v23 = vpack.c.bf16 %v7401_v55, %v7399_v13 }
 0x57a   :  { %v5627_v25 = vpack.c.bf16 %v7410_v5, %v7403_v26  ;;  %v5631_v29 = vpack.c.bf16 %v7438_v6, %v7436_v32  ;;  %v7885_v13 = vrot.slane %v7272_v63, 2  ;;  %v4079_v5 = vrot.slane %v7258_v3, 2  ;;  %v7476_v3 = vld [vmem:[#allocation14 + $0x5e0] sm:$0xff]  ;;  %v7591_v32 = vld [vmem:[#allocation14 + $0x788] sm:$0xff] }
 0x57b   :  { %5742 = vmatpush3.bf16.msra.mxu0 %v5741_v1  ;;  %v4066_v1 = vsel %vm369_vm0, %v4064_v27, %v4065_v34  ;;  %v4143_v27 = vcombine.low %v4065_v34, %v4068_v15  ;;  %v7464_v52 = vrot.slane %v4098_v57, %v6709_v19 }
 0x57c   :  { %5618 = vmatpush3.bf16.msra.mxu1 %v5617_v45  ;;  %5744 = vmatprep.subr.bf16.mxu0 %v5743_v61  ;;  %v4090_v53 = vcombine.low %v4066_v1, %v4069_v20  ;;  %v4091_v35 = vcombine.high %v4066_v1, %v4069_v20  ;;  %v5755_v45 = vpack.c.bf16 %v7424_v17, %v7422_v28  ;;  %v7472_v20 = vld [vmem:[#allocation14 + $0x160] sm:$0xff] }
 0x57d   :  { %5620 = vmatprep.subr.bf16.mxu1 %v5619_v46  ;;  %v5757_v61 = vpack.c.bf16 %v7434_v38, %v7426_v41  ;;  %v4076_v46 = vrot.slane %v7256_v60, 2  ;;  %v7467_v1 = vrot.slane %v4105_v22, %v6709_v19  ;;  %v7886_v60 = vrot.slane %v7361_v14, 2  ;;  %v7584_v17 = vld [vmem:[#allocation14 + $0x200] sm:$0xff] }
 0x57e   :  { %v4112_v55 = vrot.slane %v4090_v53, %v6709_v19  ;;  %v4119_v26 = vrot.slane %v4091_v35, %v6709_v19  ;;  %v7474_v53 = vld [vmem:[#allocation14 + $0x168] sm:$0xff]  ;;  %v4157_v57 = vrot.slane %v4143_v27, %v6709_v19  ;;  %v7499_v22 = vrot.slane %v4169_v11, %v6709_v19  ;;  %v2707_v35 = vld [vmem:[#allocation14 + $0x1f0] sm:$0xff]  ;;  %v7552_v27 = vld [vmem:[#allocation14 + $0x280] sm:$0xff] }
 0x57f   :  { %5746 = vmatpush3.bf16.msra.mxu0 %v5745_v62  ;;  %v4236_v62 = vrot.slane %v7306_v36, %v6709_v19  ;;  %v7490_v36 = vld [vmem:[#allocation14 + $0x560] sm:$0xff]  ;;  %v4078_v11 = vsel %vm398_vm2, %v4076_v46, %v7885_v13  ;;  %v5633_v42 = vpack.c.bf16 %v7474_v53, %v7472_v20  ;;  %v7529_v46 = vld [vmem:[#allocation14 + $0x178] sm:$0xff]  ;;  %v4081_v20 = vsel %vm398_vm2, %v4079_v5, %v7886_v60  ;;  %v7554_v5 = vld [vmem:[#allocation14 + $0x288] sm:$0xff] }
 0x580   :  { %5622 = vmatpush3.bf16.msra.mxu1 %v5621_v2  ;;  %5748 = vmatprep.subr.bf16.mxu0 %v5747_v24  ;;  %v7479_v15 = vrot.slane %v4112_v55, %v6709_v19  ;;  %v7482_v34 = vrot.slane %v4119_v26, %v6709_v19  ;;  %v7486_v2 = vrot.slane %v7280_v18, %v6709_v19  ;;  %v7488_v24 = vld [vmem:[#allocation14 + $0x5e8] sm:$0xff]  ;;  %v2708_v55 = vld [vmem:[#allocation14 + $0x1f8] sm:$0xff]  ;;  %v7527_v26 = vld [vmem:[#allocation14 + $0x170] sm:$0xff] }
 0x581   :  { %5624 = vmatprep.subr.bf16.mxu1 %v5623_v12  ;;  %v7492_v12 = vld [vmem:[#allocation14 + $0x568] sm:$0xff]  ;;  %v7505_v18 = vrot.slane %v4170_v47, %v6709_v19  ;;  %v4826_v47 = vcombine.low %v4157_v57, %v7499_v22  ;;  %v7539_v53 = vld [vmem:[#allocation14 + $0x5f8] sm:$0xff]  ;;  %v7549_v57 = vrot.slane %v3093_v51, %v6788_v44  ;;  %v4124_v13 = vcombine.low %v4078_v11, %v4081_v20 }
 0x582   :  { %v4382_v60 = vcombine.high %v7464_v52, %v7467_v1  ;;  %v4381_v54 = vcombine.low %v7464_v52, %v7467_v1  ;;  %v5637_v43 = vpack.c.bf16 %v7529_v46, %v7527_v26  ;;  %v4177_v46 = vrot.slane %v7275_v31, %v6709_v19  ;;  %v2728_v31 = vld [vmem:[#allocation14 + $0x298] sm:$0xff]  ;;  %v4815_v52 = vld [vmem:[#allocation16] ss:$0 sm:$0xff] }
 0x583   :  { %5750 = vmatpush3.bf16.msra.mxu0 %v5749_v56  ;;  %v4201_v7 = vcombine.low %v7486_v2, %v7505_v18  ;;  %v5759_v56 = vpack.c.bf16 %v7488_v24, %v7476_v3  ;;  %v7541_v3 = vld [vmem:[#allocation14 + $0x570] sm:$0xff]  ;;  %v7543_v24 = vld [vmem:[#allocation14 + $0x578] sm:$0xff]  ;;  %v7569_v59 = vrot.slane %v4826_v47, %v6709_v19 }
 0x584   :  { %5626 = vmatpush3.bf16.msra.mxu1 %v5625_v9  ;;  %5752 = vmatprep.subr.bf16.mxu0 %v5751_v10  ;;  %v7531_v10 = vld [vmem:[#allocation14 + $0x5f0] sm:$0xff]  ;;  %v7534_v9 = vcombine.low %v7513_v4, %v4236_v62  ;;  %v5765_v28 = vpack.c.bf16 %v7543_v24, %v7541_v3  ;;  %v7617_v24 = vrot.slane %v7329_v33, %v6788_v44 }
 0x585   :  { %5628 = vmatprep.subr.bf16.mxu1 %v5627_v25  ;;  %v5635_v25 = vpack.c.bf16 %v2708_v55, %v2707_v35  ;;  %v4828_v62 = vcombine.high %v7499_v22, %v4201_v7  ;;  %v4125_v55 = vcombine.high %v4078_v11, %v4081_v20  ;;  %v5763_v21 = vpack.c.bf16 %v7539_v53, %v7531_v10  ;;  %v7589_v11 = vld [vmem:[#allocation14 + $0x780] sm:$0xff]  ;;  %v2727_v3 = vld [vmem:[#allocation14 + $0x290] sm:$0xff] }
 0x586   :  { %v4830_v35 = vcombine.high %v7505_v18, %v7534_v9  ;;  %v4082_v7 = vrot.slane %v7278_v16, 2  ;;  %v7605_v10 = vld [vmem:[#allocation14 + $0x700] sm:$0xff]  ;;  %v3109_v20 = vcombine.high %v7549_v57, %v7549_v57  ;;  %v4202_v16 = vcombine.high %v7486_v2, %v7505_v18 }
 0x587   :  { %5754 = vmatpush3.bf16.msra.mxu0 %v5753_v23  ;;  %v7572_v51 = vrot.slane %v4828_v62, %v6709_v19  ;;  %v4132_v23 = vrot.slane %v4124_v13, %v6709_v19  ;;  %v2710_v13 = vld [vmem:[#allocation14 + $0x208] sm:$0xff]  ;;  %v5799_v38 = vpack.c.bf16 %v7591_v32, %v7589_v11  ;;  %v2711_v62 = vld [vmem:[#allocation14 + $0x210] sm:$0xff] }
 0x588   :  { %5630 = vmatpush3.bf16.msra.mxu1 %v5629_v30  ;;  %5756 = vmatprep.subr.bf16.mxu0 %v5755_v45  ;;  %v4139_v30 = vrot.slane %v4125_v55, %v6709_v19  ;;  %v5639_v45 = vpack.c.bf16 %v7554_v5, %v7552_v27  ;;  %v4150_v27 = vrot.slane %v7272_v63, %v6709_v19  ;;  %v2712_v5 = vld [vmem:[#allocation14 + $0x218] sm:$0xff]  ;;  %v2887_v55 = vld [vmem:[#allocation14 + $0x790] sm:$0xff]  ;;  %v2730_v11 = vld [vmem:[#allocation14 + $0x2a8] sm:$0xff] }
 0x589   :  { %5632 = vmatprep.subr.bf16.mxu1 %v5631_v29  ;;  %v4438_v6 = vcombine.high %v7569_v59, %v7572_v51  ;;  %v4437_v29 = vcombine.low %v7569_v59, %v7572_v51  ;;  %v4140_v26 = vcombine.high %v4132_v23, %v4132_v23  ;;  %v5641_v41 = vpack.c.bf16 %v2710_v13, %v7584_v17  ;;  %v2974_v59 = vld [vmem:[#allocation14 + $0xa48] sm:$0xff] }
 0x58a   :  { %v4141_v47 = vcombine.high %v4139_v30, %v4139_v30  ;;  %v7623_v17 = vcombine.low %v4202_v16, %v7513_v4  ;;  %v7887_v13 = vpack.c.bf16 %v7492_v12, %v7490_v36  ;;  %v7890_v4 = vrot.slane %v7272_v63, 2  ;;  %v4334_v51 = vld [vmem:[#allocation17 + $0x2c0] sm:$0xff] }
 0x58b   :  { %5758 = vmatpush3.bf16.msra.mxu0 %v5757_v61  ;;  %v4385_v53 = vcombine.low %v4132_v23, %v4140_v26  ;;  %v2870_v61 = vld [vmem:[#allocation14 + $0x708] sm:$0xff]  ;;  %v4825_v23 = vcombine.low %v4150_v27, %v4177_v46  ;;  %v7888_v26 = vrot.slane %v7282_v40, 2  ;;  %v7889_v27 = vrot.slane %v7361_v14, 2 }
 0x58c   :  { %5634 = vmatpush3.bf16.msra.mxu1 %v5633_v42  ;;  %5760 = vmatprep.subr.bf16.mxu0 %v5759_v56  ;;  %v4386_v42 = vcombine.low %v4139_v30, %v4141_v47  ;;  %v4200_v56 = vcombine.high %v4177_v46, %v7499_v22  ;;  %v2888_v30 = vld [vmem:[#allocation14 + $0x798] sm:$0xff]  ;;  %v2729_v22 = vld [vmem:[#allocation14 + $0x2a0] sm:$0xff]  ;;  %v5801_v36 = vpack.c.bf16 %v2870_v61, %v7605_v10 }
 0x58d   :  { %5636 = vmatprep.subr.bf16.mxu1 %v5635_v25  ;;  %v7620_v25 = vrot.slane %v4385_v53, %v6709_v19  ;;  %v4084_v47 = vsel %vm398_vm2, %v4082_v7, %v7888_v26  ;;  %v4159_v46 = vcombine.low %v7890_v4, %v7889_v27  ;;  %v7641_v12 = vrot.slane %v3109_v20, %v6788_v44  ;;  %v2872_v20 = vld [vmem:[#allocation14 + $0x718] sm:$0xff]  ;;  %v2874_v26 = vld [vmem:[#allocation14 + $0x728] sm:$0xff] }
 0x58e   :  { %v7629_v33 = vrot.slane %v4386_v42, %v6709_v19  ;;  %v4827_v32 = vcombine.low %v4200_v56, %v7486_v2  ;;  %v5643_v53 = vpack.c.bf16 %v2728_v31, %v2727_v3  ;;  %v3088_v2 = vcombine.high %v7342_v58, %v7342_v58  ;;  %v2713_v31 = vld [vmem:[#allocation14 + $0x220] sm:$0xff]  ;;  %v2714_v42 = vld [vmem:[#allocation14 + $0x228] sm:$0xff] }
 0x58f   :  { %5762 = vmatpush3.bf16.msra.mxu0 %v7887_v13  ;;  %v5645_v40 = vpack.c.bf16 %v2712_v5, %v2711_v62  ;;  %v5803_v14 = vpack.c.bf16 %v2888_v30, %v2887_v55  ;;  %v3138_v58 = vcombine.high %v7617_v24, %v7617_v24  ;;  %v4203_v16 = vcombine.low %v4084_v47, %v7318_v0  ;;  %v2889_v62 = vld [vmem:[#allocation14 + $0x7a0] sm:$0xff]  ;;  %v2890_v5 = vld [vmem:[#allocation14 + $0x7a8] sm:$0xff]  ;;  %v2732_v13 = vld [vmem:[#allocation14 + $0x2b8] sm:$0xff] }
 0x590   :  { %5638 = vmatpush3.bf16.msra.mxu1 %v5637_v43  ;;  %5764 = vmatprep.subr.bf16.mxu0 %v5763_v21  ;;  %v4401_v7 = vcombine.low %v7620_v25, %v7629_v33  ;;  %v4402_v63 = vcombine.high %v7620_v25, %v7629_v33  ;;  %v5647_v43 = vpack.c.bf16 %v2730_v11, %v2729_v22 }
 0x591   :  { %5640 = vmatprep.subr.bf16.mxu1 %v5639_v45  ;;  %v7650_v21 = vrot.slane %v4825_v23, %v6709_v19  ;;  %v7653_v10 = vrot.slane %v4827_v32, %v6709_v19  ;;  %v2871_v45 = vld [vmem:[#allocation14 + $0x710] sm:$0xff]  ;;  %v4204_v61 = vcombine.high %v4084_v47, %v7318_v0  ;;  %v3141_v3 = vcombine.high %v7641_v12, %v7641_v12  ;;  %v2873_v32 = vld [vmem:[#allocation14 + $0x720] sm:$0xff] }
 0x592   :  { %v4166_v0 = vrot.slane %v4159_v46, %v6709_v19  ;;  %v5805_v55 = vpack.c.bf16 %v2872_v20, %v2871_v45  ;;  %v2731_v23 = vld [vmem:[#allocation14 + $0x2b0] sm:$0xff]  ;;  %v5649_v30 = vpack.c.bf16 %v2714_v42, %v2713_v31  ;;  %v4245_v4 = vrot.slane %v7310_v50, %v6709_v19  ;;  %v2733_v45 = vld [vmem:[#allocation14 + $0x2c0] sm:$0xff]  ;;  %v2734_v20 = vld [vmem:[#allocation14 + $0x2c8] sm:$0xff] }
 0x593   :  { %5766 = vmatpush3.bf16.msra.mxu0 %v5765_v28  ;;  %3351 = vmatmul.mubr.f32.vlgmr.msra.gmra.mrb[10].mxu1 %v3088_v2  ;;  %v4436_v28 = vcombine.high %v7650_v21, %v7653_v10  ;;  %v4435_v56 = vcombine.low %v7650_v21, %v7653_v10  ;;  %v2715_v47 = vld [vmem:[#allocation14 + $0x230] sm:$0xff]  ;;  %v5651_v46 = vpack.c.bf16 %v2732_v13, %v2731_v23  ;;  %v2876_v31 = vld [vmem:[#allocation14 + $0x738] sm:$0xff]  ;;  %v2717_v42 = vld [vmem:[#allocation14 + $0x240] sm:$0xff] }
 0x594   :  { %5642 = vmatpush3.bf16.msra.mxu1 %v5641_v41  ;;  %3420 = vmatprep.mubr.f32.mxu1 %v7345_v8  ;;  %v4211_v41 = vrot.slane %v4203_v16, %v6709_v19  ;;  %v4218_v8 = vrot.slane %v4204_v61, %v6709_v19  ;;  %v2891_v2 = vld [vmem:[#allocation14 + $0x7b0] sm:$0xff]  ;;  %v2736_v13 = vld [vmem:[#allocation14 + $0x2d8] sm:$0xff] }
 0x595   :  { %5800 = vmatprep.subr.bf16.mxu0 %v5799_v38  ;;  %5644 = vmatprep.subr.bf16.mxu1 %v5643_v53  ;;  %v5807_v38 = vpack.c.bf16 %v2890_v5, %v2889_v62  ;;  %v2716_v53 = vld [vmem:[#allocation14 + $0x238] sm:$0xff]  ;;  %v5655_v62 = vpack.c.bf16 %v2734_v20, %v2733_v45  ;;  %v2718_v5 = vld [vmem:[#allocation14 + $0x248] sm:$0xff]  ;;  %v2735_v23 = vld [vmem:[#allocation14 + $0x2d0] sm:$0xff] }
 0x596   :  { %3631 = vmatmul.mubr.f32.vlgmr.msra.gmra.mrb[18].mxu0 %v3138_v58  ;;  %v4219_v22 = vcombine.high %v4211_v41, %v4211_v41  ;;  %v4439_v11 = vcombine.low %v4166_v0, %v4211_v41  ;;  %v4220_v27 = vcombine.high %v4218_v8, %v4218_v8  ;;  %v2892_v58 = vld [vmem:[#allocation14 + $0x7b8] sm:$0xff]  ;;  %v5653_v50 = vpack.c.bf16 %v2716_v53, %v2715_v47  ;;  %v2893_v0 = vld [vmem:[#allocation14 + $0x7c0] sm:$0xff]  ;;  %v2894_v41 = vld [vmem:[#allocation14 + $0x7c8] sm:$0xff] }
 0x597   :  { %5802 = vmatpush3.bf16.msra.mxu0 %v5801_v36  ;;  %3770 = vmatprep.mubr.f32.mxu0 %v3141_v3  ;;  %v2875_v3 = vld [vmem:[#allocation14 + $0x730] sm:$0xff]  ;;  %v5659_v47 = vpack.c.bf16 %v2736_v13, %v2735_v23  ;;  %v2737_v53 = vld [vmem:[#allocation14 + $0x2e0] sm:$0xff] }
 0x598   :  { %5646 = vmatpush3.bf16.msra.mxu1 %v5645_v40  ;;  %5804 = vmatprep.subr.bf16.mxu0 %v5803_v14  ;;  %v4440_v36 = vcombine.low %v4219_v22, %v4218_v8  ;;  %v7671_v16 = vcombine.low %v4220_v27, %v4245_v4  ;;  %v5809_v40 = vpack.c.bf16 %v2874_v26, %v2873_v32  ;;  %v2878_v32 = vld [vmem:[#allocation14 + $0x748] sm:$0xff]  ;;  %v2719_v26 = vld [vmem:[#allocation14 + $0x250] sm:$0xff]  ;;  %v2720_v27 = vld [vmem:[#allocation14 + $0x258] sm:$0xff] }
 0x599   :  { %5648 = vmatprep.subr.bf16.mxu1 %v5647_v43  ;;  %v7674_v14 = vrot.slane %v4439_v11, %v6709_v19  ;;  %v5811_v43 = vpack.c.bf16 %v2892_v58, %v2891_v2  ;;  %v5657_v22 = vpack.c.bf16 %v2718_v5, %v2717_v42  ;;  %v5815_v11 = vpack.c.bf16 %v2894_v41, %v2893_v0  ;;  %v2895_v4 = vld [vmem:[#allocation14 + $0x7d0] sm:$0xff]  ;;  %v2738_v2 = vld [vmem:[#allocation14 + $0x2e8] sm:$0xff]  ;;  %v2740_v5 = vld [vmem:[#allocation14 + $0x2f8] sm:$0xff] }
 0x59a   :  { %v7677_v61 = vrot.slane %v4440_v36, %v6709_v19  ;;  %v5661_v36 = vpack.c.bf16 %v2720_v27, %v2719_v26  ;;  %v2879_v20 = vld [vmem:[#allocation14 + $0x750] sm:$0xff]  ;;  %v2898_v42 = vld [vmem:[#allocation14 + $0x7e8] sm:$0xff]  ;;  %v2881_v13 = vld [vmem:[#allocation14 + $0x760] sm:$0xff] }
 0x59b   :  { %5806 = vmatpush3.bf16.msra.mxu0 %v5805_v55  ;;  %v2900_v26 = vld [vmem:[#allocation14 + $0x7f8] sm:$0xff] }
 0x59c   :  { %5650 = vmatpush3.bf16.msra.mxu1 %v5649_v30  ;;  %5808 = vmatprep.subr.bf16.mxu0 %v5807_v38  ;;  %v4455_v8 = vcombine.low %v7674_v14, %v7677_v61  ;;  %v4456_v55 = vcombine.high %v7674_v14, %v7677_v61  ;;  %v5813_v30 = vpack.c.bf16 %v2876_v31, %v2875_v3  ;;  %v2877_v38 = vld [vmem:[#allocation14 + $0x740] sm:$0xff]  ;;  %v2722_v3 = vld [vmem:[#allocation14 + $0x268] sm:$0xff] }
 0x59d   :  { %5652 = vmatprep.subr.bf16.mxu1 %v5651_v46  ;;  %v2896_v46 = vld [vmem:[#allocation14 + $0x7d8] sm:$0xff]  ;;  %v5817_v58 = vpack.c.bf16 %v2878_v32, %v2877_v38  ;;  %v2897_v31 = vld [vmem:[#allocation14 + $0x7e0] sm:$0xff]  ;;  %v2899_v32 = vld [vmem:[#allocation14 + $0x7f0] sm:$0xff] }
 0x59e   :  { %v5819_v45 = vpack.c.bf16 %v2896_v46, %v2895_v4  ;;  %v5823_v23 = vpack.c.bf16 %v2898_v42, %v2897_v31  ;;  %v2724_v38 = vld [vmem:[#allocation14 + $0x278] sm:$0xff]  ;;  %v2789_v4 = vld [vmem:[#allocation14 + $0x480] sm:$0xff]  ;;  %v2790_v46 = vld [vmem:[#allocation14 + $0x488] sm:$0xff] }
 0x59f   :  { %5810 = vmatpush3.bf16.msra.mxu0 %v5809_v40  ;;  %v2880_v40 = vld [vmem:[#allocation14 + $0x758] sm:$0xff]  ;;  %v2950_v31 = vld [vmem:[#allocation14 + $0x988] sm:$0xff]  ;;  %v2791_v42 = vld [vmem:[#allocation14 + $0x490] sm:$0xff] }
 0x5a0   :  { %5654 = vmatpush3.bf16.msra.mxu1 %v5653_v50  ;;  %5812 = vmatprep.subr.bf16.mxu0 %v5811_v43  ;;  %v2721_v50 = vld [vmem:[#allocation14 + $0x260] sm:$0xff]  ;;  %v5663_v43 = vpack.c.bf16 %v2738_v2, %v2737_v53  ;;  %v5821_v0 = vpack.c.bf16 %v2880_v40, %v2879_v20  ;;  %v5703_v20 = vpack.c.bf16 %v2790_v46, %v2789_v4  ;;  %v2794_v46 = vld [vmem:[#allocation14 + $0x4a8] sm:$0xff] }
 0x5a1   :  { %5656 = vmatprep.subr.bf16.mxu1 %v5655_v62  ;;  %v2739_v62 = vld [vmem:[#allocation14 + $0x2f0] sm:$0xff]  ;;  %v5665_v41 = vpack.c.bf16 %v2722_v3, %v2721_v50  ;;  %v2773_v40 = vld [vmem:[#allocation14 + $0x400] sm:$0xff]  ;;  %v2774_v50 = vld [vmem:[#allocation14 + $0x408] sm:$0xff] }
 0x5a2   :  { %v2793_v4 = vld [vmem:[#allocation14 + $0x4a0] sm:$0xff] }
 0x5a3   :  { %5814 = vmatpush3.bf16.msra.mxu0 %v5813_v30  ;;  %v2882_v30 = vld [vmem:[#allocation14 + $0x768] sm:$0xff] }
 0x5a4   :  { %5658 = vmatpush3.bf16.msra.mxu1 %v5657_v22  ;;  %5816 = vmatprep.subr.bf16.mxu0 %v5815_v11  ;;  %v2723_v22 = vld [vmem:[#allocation14 + $0x270] sm:$0xff]  ;;  %v5667_v11 = vpack.c.bf16 %v2740_v5, %v2739_v62  ;;  %v5825_v53 = vpack.c.bf16 %v2882_v30, %v2881_v13  ;;  %v2792_v62 = vld [vmem:[#allocation14 + $0x498] sm:$0xff]  ;;  %v2934_v13 = vld [vmem:[#allocation14 + $0x908] sm:$0xff] }
 0x5a5   :  { %5660 = vmatprep.subr.bf16.mxu1 %v5659_v47  ;;  %v7891_v47 = vcombine.low %v7288_v49, %v7294_v48  ;;  %v5669_v2 = vpack.c.bf16 %v2724_v38, %v2723_v22  ;;  %v2775_v30 = vld [vmem:[#allocation14 + $0x410] sm:$0xff]  ;;  %v5707_v38 = vpack.c.bf16 %v2792_v62, %v2791_v42 }
 0x5a7   :  { %5818 = vmatpush3.bf16.msra.mxu0 %v5817_v58  ;;  %v7687_v27 = vrot.slane %v7891_v47, %v6788_v44  ;;  %v5827_v58 = vpack.c.bf16 %v2900_v26, %v2899_v32  ;;  %v2776_v32 = vld [vmem:[#allocation14 + $0x418] sm:$0xff]  ;;  %v2951_v26 = vld [vmem:[#allocation14 + $0x990] sm:$0xff] }
 0x5a8   :  { %5662 = vmatpush3.bf16.msra.mxu1 %v5661_v36  ;;  %5820 = vmatprep.subr.bf16.mxu0 %v5819_v45  ;;  %v2883_v36 = vld [vmem:[#allocation14 + $0x770] sm:$0xff]  ;;  %v2884_v45 = vld [vmem:[#allocation14 + $0x778] sm:$0xff] }
 0x5a9   :  { %5664 = vmatprep.subr.bf16.mxu1 %v5663_v43  ;;  %v2949_v43 = vld [vmem:[#allocation14 + $0x980] sm:$0xff]  ;;  %v3158_v3 = vcombine.high %v7687_v27, %v7687_v27  ;;  %v5829_v5 = vpack.c.bf16 %v2884_v45, %v2883_v36  ;;  %v2952_v47 = vld [vmem:[#allocation14 + $0x998] sm:$0xff]  ;;  %v2935_v36 = vld [vmem:[#allocation14 + $0x910] sm:$0xff] }
 0x5aa   :  { %v5863_v22 = vpack.c.bf16 %v2950_v31, %v2949_v43  ;;  %v2936_v45 = vld [vmem:[#allocation14 + $0x918] sm:$0xff]  ;;  %v2778_v43 = vld [vmem:[#allocation14 + $0x428] sm:$0xff]  ;;  %v2795_v31 = vld [vmem:[#allocation14 + $0x4b0] sm:$0xff] }
 0x5ab   :  { %5822 = vmatpush3.bf16.msra.mxu0 %v5821_v0  ;;  %v5705_v0 = vpack.c.bf16 %v2774_v50, %v2773_v40  ;;  %v5711_v50 = vpack.c.bf16 %v2794_v46, %v2793_v4  ;;  %v5869_v42 = vpack.c.bf16 %v2936_v45, %v2935_v36  ;;  %v2782_v45 = vld [vmem:[#allocation14 + $0x448] sm:$0xff] }
 0x5ac   :  { %5666 = vmatpush3.bf16.msra.mxu1 %v5665_v41  ;;  %5824 = vmatprep.subr.bf16.mxu0 %v5823_v23  ;;  %v7693_v41 = vrot.slane %v7549_v57, %v6788_v44  ;;  %v2933_v23 = vld [vmem:[#allocation14 + $0x900] sm:$0xff] }
 0x5ad   :  { %5668 = vmatprep.subr.bf16.mxu1 %v5667_v11  ;;  %v7696_v11 = vrot.slane %v3158_v3, %v6788_v44  ;;  %v2954_v3 = vld [vmem:[#allocation14 + $0x9a8] sm:$0xff] }
 0x5ae   :  { %v3139_v57 = vcombine.high %v7693_v41, %v7693_v41 }
 0x5af   :  { %5826 = vmatpush3.bf16.msra.mxu0 %v5825_v53  ;;  %v5865_v53 = vpack.c.bf16 %v2934_v13, %v2933_v23  ;;  %v3190_v40 = vcombine.high %v7696_v11, %v7696_v11  ;;  %v2938_v23 = vld [vmem:[#allocation14 + $0x928] sm:$0xff]  ;;  %v2779_v13 = vld [vmem:[#allocation14 + $0x430] sm:$0xff] }
 0x5b0   :  { %5670 = vmatpush3.bf16.msra.mxu1 %v5669_v2  ;;  %5828 = vmatprep.subr.bf16.mxu0 %v5827_v58  ;;  %v5709_v2 = vpack.c.bf16 %v2776_v32, %v2775_v30  ;;  %v5867_v58 = vpack.c.bf16 %v2952_v47, %v2951_v26  ;;  %v2956_v32 = vld [vmem:[#allocation14 + $0x9b8] sm:$0xff]  ;;  %v2797_v26 = vld [vmem:[#allocation14 + $0x4c0] sm:$0xff]  ;;  %v2798_v47 = vld [vmem:[#allocation14 + $0x4c8] sm:$0xff] }
 0x5b1   :  { %5704 = vmatprep.subr.bf16.mxu1 %v5703_v20  ;;  %v2777_v20 = vld [vmem:[#allocation14 + $0x420] sm:$0xff]  ;;  %v5719_v36 = vpack.c.bf16 %v2798_v47, %v2797_v26  ;;  %v2943_v47 = vld [vmem:[#allocation14 + $0x950] sm:$0xff] }
 0x5b2   :  { %v5713_v62 = vpack.c.bf16 %v2778_v43, %v2777_v20  ;;  %v2957_v20 = vld [vmem:[#allocation14 + $0x9c0] sm:$0xff]  ;;  %v2800_v43 = vld [vmem:[#allocation14 + $0x4d8] sm:$0xff] }
 0x5b3   :  { %5830 = vmatpush3.bf16.msra.mxu0 %v5829_v5  ;;  %3421 = vmatmul.mubr.f32.vlgmr.msra.gmra.mrb[12].mxu1 %v7337_v37  ;;  %v2953_v37 = vld [vmem:[#allocation14 + $0x9a0] sm:$0xff] }
 0x5b4   :  { %5706 = vmatpush3.bf16.msra.mxu1 %v5705_v0  ;;  %3560 = vmatprep.mubr.f32.mxu1 %v7348_v39  ;;  %v2796_v39 = vld [vmem:[#allocation14 + $0x4b8] sm:$0xff]  ;;  %v5871_v5 = vpack.c.bf16 %v2954_v3, %v2953_v37  ;;  %v2937_v0 = vld [vmem:[#allocation14 + $0x920] sm:$0xff] }
 0x5b5   :  { %5864 = vmatprep.subr.bf16.mxu0 %v5863_v22  ;;  %5708 = vmatprep.subr.bf16.mxu1 %v5707_v38  ;;  %v5715_v30 = vpack.c.bf16 %v2796_v39, %v2795_v31  ;;  %v2780_v22 = vld [vmem:[#allocation14 + $0x438] sm:$0xff]  ;;  %v2955_v38 = vld [vmem:[#allocation14 + $0x9b0] sm:$0xff]  ;;  %v5873_v4 = vpack.c.bf16 %v2938_v23, %v2937_v0  ;;  %v2941_v39 = vld [vmem:[#allocation14 + $0x940] sm:$0xff] }
 0x5b6   :  { %3771 = vmatmul.mubr.f32.vlgmr.msra.gmra.mrb[20].mxu0 %v3139_v57  ;;  %v5717_v46 = vpack.c.bf16 %v2780_v22, %v2779_v13  ;;  %v2939_v57 = vld [vmem:[#allocation14 + $0x930] sm:$0xff]  ;;  %v2784_v0 = vld [vmem:[#allocation14 + $0x458] sm:$0xff]  ;;  %v2802_v22 = vld [vmem:[#allocation14 + $0x4e8] sm:$0xff] }
 0x5b7   :  { %5866 = vmatpush3.bf16.msra.mxu0 %v5865_v53  ;;  %3910 = vmatprep.mubr.f32.mxu0 %v3190_v40  ;;  %v5875_v53 = vpack.c.bf16 %v2956_v32, %v2955_v38  ;;  %v2958_v40 = vld [vmem:[#allocation14 + $0x9c8] sm:$0xff]  ;;  %v2959_v23 = vld [vmem:[#allocation14 + $0x9d0] sm:$0xff]  ;;  %v2960_v13 = vld [vmem:[#allocation14 + $0x9d8] sm:$0xff] }
 0x5b8   :  { %5710 = vmatpush3.bf16.msra.mxu1 %v5709_v2  ;;  %5868 = vmatprep.subr.bf16.mxu0 %v5867_v58  ;;  %v2940_v2 = vld [vmem:[#allocation14 + $0x938] sm:$0xff]  ;;  %v2781_v58 = vld [vmem:[#allocation14 + $0x440] sm:$0xff]  ;;  %v5879_v31 = vpack.c.bf16 %v2958_v40, %v2957_v20  ;;  %v5883_v26 = vpack.c.bf16 %v2960_v13, %v2959_v23  ;;  %v2854_v13 = vld [vmem:[#allocation14 + $0x688] sm:$0xff] }
 0x5b9   :  { %5712 = vmatprep.subr.bf16.mxu1 %v5711_v50  ;;  %v2799_v50 = vld [vmem:[#allocation14 + $0x4d0] sm:$0xff]  ;;  %v5877_v37 = vpack.c.bf16 %v2940_v2, %v2939_v57  ;;  %v5721_v3 = vpack.c.bf16 %v2782_v45, %v2781_v58  ;;  %v2786_v57 = vld [vmem:[#allocation14 + $0x468] sm:$0xff]  ;;  %v2961_v2 = vld [vmem:[#allocation14 + $0x9e0] sm:$0xff] }
 0x5ba   :  { %v2962_v58 = vld [vmem:[#allocation14 + $0x9e8] sm:$0xff]  ;;  %v2804_v45 = vld [vmem:[#allocation14 + $0x4f8] sm:$0xff]  ;;  %v2853_v23 = vld [vmem:[#allocation14 + $0x680] sm:$0xff] }
 0x5bb   :  { %5870 = vmatpush3.bf16.msra.mxu0 %v5869_v42  ;;  %v2942_v42 = vld [vmem:[#allocation14 + $0x948] sm:$0xff] }
 0x5bc   :  { %5714 = vmatpush3.bf16.msra.mxu1 %v5713_v62  ;;  %5872 = vmatprep.subr.bf16.mxu0 %v5871_v5  ;;  %v2783_v62 = vld [vmem:[#allocation14 + $0x450] sm:$0xff]  ;;  %v5723_v5 = vpack.c.bf16 %v2800_v43, %v2799_v50  ;;  %v5881_v38 = vpack.c.bf16 %v2942_v42, %v2941_v39  ;;  %v5887_v50 = vpack.c.bf16 %v2962_v58, %v2961_v2  ;;  %v2945_v43 = vld [vmem:[#allocation14 + $0x960] sm:$0xff]  ;;  %v2788_v39 = vld [vmem:[#allocation14 + $0x478] sm:$0xff] }
 0x5bd   :  { %5716 = vmatprep.subr.bf16.mxu1 %v5715_v30  ;;  %v2801_v30 = vld [vmem:[#allocation14 + $0x4e0] sm:$0xff]  ;;  %v5725_v32 = vpack.c.bf16 %v2784_v0, %v2783_v62  ;;  %v2963_v42 = vld [vmem:[#allocation14 + $0x9f0] sm:$0xff]  ;;  %v2964_v62 = vld [vmem:[#allocation14 + $0x9f8] sm:$0xff] }
 0x5be   :  { %v2856_v2 = vld [vmem:[#allocation14 + $0x698] sm:$0xff] }
 0x5bf   :  { %5874 = vmatpush3.bf16.msra.mxu0 %v5873_v4  ;;  %v2944_v4 = vld [vmem:[#allocation14 + $0x958] sm:$0xff] }
 0x5c0   :  { %5718 = vmatpush3.bf16.msra.mxu1 %v5717_v46  ;;  %5876 = vmatprep.subr.bf16.mxu0 %v5875_v53  ;;  %v2785_v46 = vld [vmem:[#allocation14 + $0x460] sm:$0xff]  ;;  %v5727_v53 = vpack.c.bf16 %v2802_v22, %v2801_v30  ;;  %v5885_v20 = vpack.c.bf16 %v2944_v4, %v2943_v47  ;;  %v5767_v47 = vpack.c.bf16 %v2854_v13, %v2853_v23 }
 0x5c1   :  { %5720 = vmatprep.subr.bf16.mxu1 %v5719_v36  ;;  %v2803_v36 = vld [vmem:[#allocation14 + $0x4f0] sm:$0xff]  ;;  %v5729_v40 = vpack.c.bf16 %v2786_v57, %v2785_v46  ;;  %v2837_v4 = vld [vmem:[#allocation14 + $0x600] sm:$0xff]  ;;  %v2838_v46 = vld [vmem:[#allocation14 + $0x608] sm:$0xff] }
 0x5c2   :  { %v2855_v57 = vld [vmem:[#allocation14 + $0x690] sm:$0xff] }
 0x5c3   :  { %5878 = vmatpush3.bf16.msra.mxu0 %v5877_v37  ;;  %v2946_v37 = vld [vmem:[#allocation14 + $0x968] sm:$0xff] }
 0x5c4   :  { %5722 = vmatpush3.bf16.msra.mxu1 %v5721_v3  ;;  %5880 = vmatprep.subr.bf16.mxu0 %v5879_v31  ;;  %v2787_v3 = vld [vmem:[#allocation14 + $0x470] sm:$0xff]  ;;  %v5731_v31 = vpack.c.bf16 %v2804_v45, %v2803_v36  ;;  %v5889_v30 = vpack.c.bf16 %v2946_v37, %v2945_v43  ;;  %v5769_v36 = vpack.c.bf16 %v2838_v46, %v2837_v4  ;;  %v2842_v4 = vld [vmem:[#allocation14 + $0x628] sm:$0xff] }
 0x5c5   :  { %5724 = vmatprep.subr.bf16.mxu1 %v5723_v5  ;;  %v7892_v5 = vcombine.high %v7288_v49, %v7294_v48  ;;  %v5733_v22 = vpack.c.bf16 %v2788_v39, %v2787_v3  ;;  %v3014_v48 = vld [vmem:[#allocation14 + $0xb88] sm:$0xff]  ;;  %v7714_v45 = vrot.slane %v7687_v27, %v6788_v44  ;;  %v5771_v3 = vpack.c.bf16 %v2856_v2, %v2855_v57  ;;  %v3015_v39 = vld [vmem:[#allocation14 + $0xb90] sm:$0xff]  ;;  %v3001_v2 = vld [vmem:[#allocation14 + $0xb20] sm:$0xff] }
 0x5c6   :  { %v3018_v46 = vld [vmem:[#allocation14 + $0xba8] sm:$0xff] }
 0x5c7   :  { %5882 = vmatpush3.bf16.msra.mxu0 %v5881_v38  ;;  %v7708_v0 = vrot.slane %v7892_v5, %v6788_v44  ;;  %v5891_v38 = vpack.c.bf16 %v2964_v62, %v2963_v42  ;;  %v3016_v42 = vld [vmem:[#allocation14 + $0xb98] sm:$0xff]  ;;  %v2857_v62 = vld [vmem:[#allocation14 + $0x6a0] sm:$0xff]  ;;  %v2858_v5 = vld [vmem:[#allocation14 + $0x6a8] sm:$0xff]  ;;  %v3188_v27 = vcombine.high %v7714_v45, %v7714_v45 }
 0x5c8   :  { %5726 = vmatpush3.bf16.msra.mxu1 %v5725_v32  ;;  %5884 = vmatprep.subr.bf16.mxu0 %v5883_v26  ;;  %v2947_v32 = vld [vmem:[#allocation14 + $0x970] sm:$0xff]  ;;  %v2948_v26 = vld [vmem:[#allocation14 + $0x978] sm:$0xff] }
 0x5c9   :  { %5728 = vmatprep.subr.bf16.mxu1 %v5727_v53  ;;  %v3013_v53 = vld [vmem:[#allocation14 + $0xb80] sm:$0xff]  ;;  %v3159_v49 = vcombine.high %v7708_v0, %v7708_v0  ;;  %v5893_v58 = vpack.c.bf16 %v2948_v26, %v2947_v32 }
 0x5ca   :  { %v5927_v43 = vpack.c.bf16 %v3014_v48, %v3013_v53  ;;  %v2841_v32 = vld [vmem:[#allocation14 + $0x620] sm:$0xff]  ;;  %v2859_v53 = vld [vmem:[#allocation14 + $0x6b0] sm:$0xff] }
 0x5cb   :  { %5886 = vmatpush3.bf16.msra.mxu0 %v5885_v20  ;;  %v2997_v20 = vld [vmem:[#allocation14 + $0xb00] sm:$0xff]  ;;  %v7717_v37 = vrot.slane %v3159_v49, %v6788_v44  ;;  %v5777_v48 = vpack.c.bf16 %v2842_v4, %v2841_v32  ;;  %v2863_v32 = vld [vmem:[#allocation14 + $0x6d0] sm:$0xff] }
 0x5cc   :  { %5730 = vmatpush3.bf16.msra.mxu1 %v5729_v40  ;;  %5888 = vmatprep.subr.bf16.mxu0 %v5887_v50  ;;  %v2998_v40 = vld [vmem:[#allocation14 + $0xb08] sm:$0xff]  ;;  %v2839_v50 = vld [vmem:[#allocation14 + $0x610] sm:$0xff] }
 0x5cd   :  { %5732 = vmatprep.subr.bf16.mxu1 %v5731_v31  ;;  %v2840_v31 = vld [vmem:[#allocation14 + $0x618] sm:$0xff]  ;;  %v5929_v23 = vpack.c.bf16 %v2998_v40, %v2997_v20  ;;  %v3191_v26 = vcombine.high %v7717_v37, %v7717_v37 }
 0x5ce   :  { %v5773_v13 = vpack.c.bf16 %v2840_v31, %v2839_v50  ;;  %v2844_v40 = vld [vmem:[#allocation14 + $0x638] sm:$0xff]  ;;  %v3019_v50 = vld [vmem:[#allocation14 + $0xbb0] sm:$0xff]  ;;  %v2862_v31 = vld [vmem:[#allocation14 + $0x6c8] sm:$0xff] }
 0x5cf   :  { %5890 = vmatpush3.bf16.msra.mxu0 %v5889_v30  ;;  %v5931_v30 = vpack.c.bf16 %v3016_v42, %v3015_v39 }
 0x5d0   :  { %5734 = vmatpush3.bf16.msra.mxu1 %v5733_v22  ;;  %5892 = vmatprep.subr.bf16.mxu0 %v5891_v38  ;;  %v2999_v22 = vld [vmem:[#allocation14 + $0xb10] sm:$0xff]  ;;  %v3000_v38 = vld [vmem:[#allocation14 + $0xb18] sm:$0xff] }
 0x5d1   :  { %5768 = vmatprep.subr.bf16.mxu1 %v5767_v47  ;;  %v5775_v47 = vpack.c.bf16 %v2858_v5, %v2857_v62  ;;  %v5933_v49 = vpack.c.bf16 %v3000_v38, %v2999_v22  ;;  %v3003_v5 = vld [vmem:[#allocation14 + $0xb30] sm:$0xff]  ;;  %v3021_v22 = vld [vmem:[#allocation14 + $0xbc0] sm:$0xff]  ;;  %v3022_v38 = vld [vmem:[#allocation14 + $0xbc8] sm:$0xff] }
 0x5d3   :  { %5894 = vmatpush3.bf16.msra.mxu0 %v5893_v58  ;;  %3561 = vmatmul.mubr.f32.vlgmr.msra.gmra.mrb[14].mxu1 %v7617_v24  ;;  %v3017_v24 = vld [vmem:[#allocation14 + $0xba0] sm:$0xff]  ;;  %v3002_v58 = vld [vmem:[#allocation14 + $0xb28] sm:$0xff] }
 0x5d4   :  { %5770 = vmatpush3.bf16.msra.mxu1 %v5769_v36  ;;  %3700 = vmatprep.mubr.f32.mxu1 %v7641_v12  ;;  %v2860_v12 = vld [vmem:[#allocation14 + $0x6b8] sm:$0xff]  ;;  %v5935_v57 = vpack.c.bf16 %v3018_v46, %v3017_v24  ;;  %v2843_v36 = vld [vmem:[#allocation14 + $0x630] sm:$0xff]  ;;  %v5937_v39 = vpack.c.bf16 %v3002_v58, %v3001_v2  ;;  %v5943_v24 = vpack.c.bf16 %v3022_v38, %v3021_v22  ;;  %v3005_v46 = vld [vmem:[#allocation14 + $0xb40] sm:$0xff] }
 0x5d5   :  { %5928 = vmatprep.subr.bf16.mxu0 %v5927_v43  ;;  %5772 = vmatprep.subr.bf16.mxu1 %v5771_v3  ;;  %v5779_v20 = vpack.c.bf16 %v2860_v12, %v2859_v53  ;;  %v3020_v43 = vld [vmem:[#allocation14 + $0xbb8] sm:$0xff]  ;;  %v2861_v3 = vld [vmem:[#allocation14 + $0x6c0] sm:$0xff]  ;;  %v5781_v42 = vpack.c.bf16 %v2844_v40, %v2843_v36  ;;  %v3006_v53 = vld [vmem:[#allocation14 + $0xb48] sm:$0xff] }
 0x5d6   :  { %3911 = vmatmul.mubr.f32.vlgmr.msra.gmra.mrb[22].mxu0 %v3188_v27  ;;  %v5939_v62 = vpack.c.bf16 %v3020_v43, %v3019_v50  ;;  %v2845_v27 = vld [vmem:[#allocation14 + $0x640] sm:$0xff]  ;;  %v2847_v12 = vld [vmem:[#allocation14 + $0x650] sm:$0xff]  ;;  %v3024_v2 = vld [vmem:[#allocation14 + $0xbd8] sm:$0xff] }
 0x5d7   :  { %5930 = vmatpush3.bf16.msra.mxu0 %v5929_v23  ;;  %4050 = vmatprep.mubr.f32.mxu0 %v3191_v26  ;;  %v3004_v23 = vld [vmem:[#allocation14 + $0xb38] sm:$0xff]  ;;  %v2865_v58 = vld [vmem:[#allocation14 + $0x6e0] sm:$0xff]  ;;  %v2866_v36 = vld [vmem:[#allocation14 + $0x6e8] sm:$0xff] }
 0x5d8   :  { %5774 = vmatpush3.bf16.msra.mxu1 %v5773_v13  ;;  %5932 = vmatprep.subr.bf16.mxu0 %v5931_v30  ;;  %v5783_v13 = vpack.c.bf16 %v2862_v31, %v2861_v3  ;;  %v2846_v30 = vld [vmem:[#allocation14 + $0x648] sm:$0xff]  ;;  %v2864_v26 = vld [vmem:[#allocation14 + $0x6d8] sm:$0xff]  ;;  %v3007_v43 = vld [vmem:[#allocation14 + $0xb50] sm:$0xff] }
 0x5d9   :  { %5776 = vmatprep.subr.bf16.mxu1 %v5775_v47  ;;  %v5941_v47 = vpack.c.bf16 %v3004_v23, %v3003_v5  ;;  %v5785_v4 = vpack.c.bf16 %v2846_v30, %v2845_v27  ;;  %v3008_v3 = vld [vmem:[#allocation14 + $0xb58] sm:$0xff]  ;;  %v2849_v31 = vld [vmem:[#allocation14 + $0x660] sm:$0xff]  ;;  %v3026_v5 = vld [vmem:[#allocation14 + $0xbe8] sm:$0xff] }
 0x5da   :  { %v2867_v23 = vld [vmem:[#allocation14 + $0x6f0] sm:$0xff]  ;;  %v2868_v27 = vld [vmem:[#allocation14 + $0x6f8] sm:$0xff]  ;;  %v3009_v38 = vld [vmem:[#allocation14 + $0xb60] sm:$0xff] }
 0x5db   :  { %5934 = vmatpush3.bf16.msra.mxu0 %v5933_v49  ;;  %v5787_v49 = vpack.c.bf16 %v2864_v26, %v2863_v32  ;;  %v3010_v32 = vld [vmem:[#allocation14 + $0xb68] sm:$0xff]  ;;  %v2851_v26 = vld [vmem:[#allocation14 + $0x670] sm:$0xff] }
 0x5dc   :  { %5778 = vmatpush3.bf16.msra.mxu1 %v5777_v48  ;;  %5936 = vmatprep.subr.bf16.mxu0 %v5935_v57  ;;  %v2848_v48 = vld [vmem:[#allocation14 + $0x658] sm:$0xff]  ;;  %v3023_v57 = vld [vmem:[#allocation14 + $0xbd0] sm:$0xff] }
 0x5dd   :  { %5780 = vmatprep.subr.bf16.mxu1 %v5779_v20  ;;  %v5945_v20 = vpack.c.bf16 %v3006_v53, %v3005_v46  ;;  %v5789_v40 = vpack.c.bf16 %v2848_v48, %v2847_v12  ;;  %v5947_v50 = vpack.c.bf16 %v3024_v2, %v3023_v57  ;;  %v3028_v46 = vld [vmem:[#allocation14 + $0xbf8] sm:$0xff]  ;;  %v2917_v53 = vld [vmem:[#allocation14 + $0x880] sm:$0xff]  ;;  %v2918_v12 = vld [vmem:[#allocation14 + $0x888] sm:$0xff] }
 0x5de   :  { %v3011_v2 = vld [vmem:[#allocation14 + $0xb70] sm:$0xff] }
 0x5df   :  { %5938 = vmatpush3.bf16.msra.mxu0 %v5937_v39  ;;  %v5791_v39 = vpack.c.bf16 %v2866_v36, %v2865_v58  ;;  %v3012_v58 = vld [vmem:[#allocation14 + $0xb78] sm:$0xff]  ;;  %v5831_v36 = vpack.c.bf16 %v2918_v12, %v2917_v53  ;;  %v2905_v12 = vld [vmem:[#allocation14 + $0x820] sm:$0xff] }
 0x5e0   :  { %5782 = vmatpush3.bf16.msra.mxu1 %v5781_v42  ;;  %5940 = vmatprep.subr.bf16.mxu0 %v5939_v62  ;;  %v2850_v42 = vld [vmem:[#allocation14 + $0x668] sm:$0xff]  ;;  %v3025_v62 = vld [vmem:[#allocation14 + $0xbe0] sm:$0xff] }
 0x5e1   :  { %5784 = vmatprep.subr.bf16.mxu1 %v5783_v13  ;;  %v5949_v13 = vpack.c.bf16 %v3008_v3, %v3007_v43  ;;  %v5793_v30 = vpack.c.bf16 %v2850_v42, %v2849_v31  ;;  %v5951_v22 = vpack.c.bf16 %v3026_v5, %v3025_v62  ;;  %v4295_v43 = vld [vmem:[#allocation17 + $0x188] sm:$0xff]  ;;  %v2920_v31 = vld [vmem:[#allocation14 + $0x898] sm:$0xff]  ;;  %v7727_v62 = vrot.slane %v7708_v0, %v6788_v44  ;;  %v4278_v5 = vld [vmem:[#allocation17 + $0x100] sm:$0xff] }
 0x5e2   :  { %v2919_v3 = vld [vmem:[#allocation14 + $0x890] sm:$0xff]  ;;  %v4281_v53 = vld [vmem:[#allocation17 + $0x118] sm:$0xff] }
 0x5e3   :  { %5942 = vmatpush3.bf16.msra.mxu0 %v5941_v47  ;;  %v5795_v47 = vpack.c.bf16 %v2868_v27, %v2867_v23  ;;  %v4279_v23 = vld [vmem:[#allocation17 + $0x108] sm:$0xff]  ;;  %v3189_v44 = vcombine.high %v7727_v62, %v7727_v62 }
 0x5e4   :  { %5786 = vmatpush3.bf16.msra.mxu1 %v5785_v4  ;;  %5944 = vmatprep.subr.bf16.mxu0 %v5943_v24  ;;  %v2852_v4 = vld [vmem:[#allocation14 + $0x678] sm:$0xff]  ;;  %v3027_v24 = vld [vmem:[#allocation14 + $0xbf0] sm:$0xff] }
 0x5e5   :  { %5788 = vmatprep.subr.bf16.mxu1 %v5787_v49  ;;  %v5953_v49 = vpack.c.bf16 %v3010_v32, %v3009_v38  ;;  %v5797_v48 = vpack.c.bf16 %v2852_v4, %v2851_v26  ;;  %v5955_v57 = vpack.c.bf16 %v3028_v46, %v3027_v24  ;;  %v2903_v27 = vld [vmem:[#allocation14 + $0x810] sm:$0xff]  ;;  %v4297_v32 = vld [vmem:[#allocation17 + $0x198] sm:$0xff]  ;;  %v5993_v4 = vpack.c.bf16 %v4279_v23, %v4278_v5 }
 0x5e6   :  { %v4296_v38 = vld [vmem:[#allocation17 + $0x190] sm:$0xff]  ;;  %v2921_v26 = vld [vmem:[#allocation14 + $0x8a0] sm:$0xff] }
 0x5e7   :  { %5946 = vmatpush3.bf16.msra.mxu0 %v5945_v20  ;;  %v2901_v20 = vld [vmem:[#allocation14 + $0x800] sm:$0xff]  ;;  %v5995_v24 = vpack.c.bf16 %v4297_v32, %v4296_v38  ;;  %v4280_v46 = vld [vmem:[#allocation17 + $0x110] sm:$0xff] }
 0x5e8   :  { %5790 = vmatpush3.bf16.msra.mxu1 %v5789_v40  ;;  %5948 = vmatprep.subr.bf16.mxu0 %v5947_v50  ;;  %v2902_v40 = vld [vmem:[#allocation14 + $0x808] sm:$0xff]  ;;  %v4301_v5 = vld [vmem:[#allocation17 + $0x1b8] sm:$0xff]  ;;  %v4284_v38 = vld [vmem:[#allocation17 + $0x130] sm:$0xff] }
 0x5e9   :  { %5792 = vmatprep.subr.bf16.mxu1 %v5791_v39  ;;  %v4294_v50 = vld [vmem:[#allocation17 + $0x180] sm:$0xff]  ;;  %v5957_v39 = vpack.c.bf16 %v3012_v58, %v3011_v2  ;;  %v5833_v42 = vpack.c.bf16 %v2902_v40, %v2901_v20  ;;  %v4299_v2 = vld [vmem:[#allocation17 + $0x1a8] sm:$0xff]  ;;  %v2924_v58 = vld [vmem:[#allocation14 + $0x8b8] sm:$0xff] }
 0x5ea   :  { %v2925_v23 = vld [vmem:[#allocation14 + $0x8c0] sm:$0xff] }
 0x5eb   :  { %5950 = vmatpush3.bf16.msra.mxu0 %v5949_v13  ;;  %v5991_v13 = vpack.c.bf16 %v4295_v43, %v4294_v50  ;;  %v4282_v50 = vld [vmem:[#allocation17 + $0x120] sm:$0xff]  ;;  %v4283_v43 = vld [vmem:[#allocation17 + $0x128] sm:$0xff]  ;;  %v4285_v32 = vld [vmem:[#allocation17 + $0x138] sm:$0xff] }
 0x5ec   :  { %5794 = vmatpush3.bf16.msra.mxu1 %v5793_v30  ;;  %5952 = vmatprep.subr.bf16.mxu0 %v5951_v22  ;;  %v5835_v30 = vpack.c.bf16 %v2920_v31, %v2919_v3  ;;  %v2904_v22 = vld [vmem:[#allocation14 + $0x818] sm:$0xff]  ;;  %v2907_v3 = vld [vmem:[#allocation14 + $0x830] sm:$0xff] }
 0x5ed   :  { %5796 = vmatprep.subr.bf16.mxu1 %v5795_v47  ;;  %v2922_v47 = vld [vmem:[#allocation14 + $0x8a8] sm:$0xff]  ;;  %v5837_v0 = vpack.c.bf16 %v2904_v22, %v2903_v27 }
 0x5ee   :  { %v2926_v27 = vld [vmem:[#allocation14 + $0x8c8] sm:$0xff] }
 0x5ef   :  { %5954 = vmatpush3.bf16.msra.mxu0 %v5953_v49  ;;  %v5839_v49 = vpack.c.bf16 %v2922_v47, %v2921_v26  ;;  %v2909_v26 = vld [vmem:[#allocation14 + $0x840] sm:$0xff]  ;;  %v5847_v47 = vpack.c.bf16 %v2926_v27, %v2925_v23  ;;  %v2914_v23 = vld [vmem:[#allocation14 + $0x868] sm:$0xff] }
 0x5f0   :  { %5798 = vmatpush3.bf16.msra.mxu1 %v5797_v48  ;;  %5956 = vmatprep.subr.bf16.mxu0 %v5955_v57  ;;  %v2906_v48 = vld [vmem:[#allocation14 + $0x828] sm:$0xff] }
 0x5f1   :  { %5832 = vmatprep.subr.bf16.mxu1 %v5831_v36  ;;  %v4298_v57 = vld [vmem:[#allocation17 + $0x1a0] sm:$0xff]  ;;  %v5997_v36 = vpack.c.bf16 %v4281_v53, %v4280_v46  ;;  %v5841_v20 = vpack.c.bf16 %v2906_v48, %v2905_v12  ;;  %v2928_v46 = vld [vmem:[#allocation14 + $0x8d8] sm:$0xff]  ;;  %v6005_v53 = vpack.c.bf16 %v4285_v32, %v4284_v38 }
 0x5f2   :  { %v5999_v40 = vpack.c.bf16 %v4299_v2, %v4298_v57  ;;  %v4286_v48 = vld [vmem:[#allocation17 + $0x140] sm:$0xff]  ;;  %v4287_v57 = vld [vmem:[#allocation17 + $0x148] sm:$0xff] }
 0x5f3   :  { %5958 = vmatpush3.bf16.msra.mxu0 %v5957_v39  ;;  %3701 = vmatmul.mubr.f32.vlgmr.msra.gmra.mrb[16].mxu1 %v7693_v41  ;;  %v2923_v41 = vld [vmem:[#allocation14 + $0x8b0] sm:$0xff]  ;;  %v2908_v39 = vld [vmem:[#allocation14 + $0x838] sm:$0xff]  ;;  %v4306_v27 = vld [vmem:[#allocation17 + $0x1e0] sm:$0xff] }
 0x5f4   :  { %5834 = vmatpush3.bf16.msra.mxu1 %v5833_v42  ;;  %3840 = vmatprep.mubr.f32.mxu1 %v7696_v11  ;;  %v7893_v11 = vcombine.high %v7479_v15, %v7482_v34  ;;  %v5843_v31 = vpack.c.bf16 %v2924_v58, %v2923_v41  ;;  %v4300_v42 = vld [vmem:[#allocation17 + $0x1b0] sm:$0xff] }
 0x5f5   :  { %5992 = vmatprep.subr.bf16.mxu0 %v5991_v13  ;;  %5836 = vmatprep.subr.bf16.mxu1 %v5835_v30  ;;  %v6001_v13 = vpack.c.bf16 %v4283_v43, %v4282_v50  ;;  %v5845_v30 = vpack.c.bf16 %v2908_v39, %v2907_v3  ;;  %v6003_v22 = vpack.c.bf16 %v4301_v5, %v4300_v42  ;;  %v2911_v2 = vld [vmem:[#allocation14 + $0x850] sm:$0xff]  ;;  %v2912_v58 = vld [vmem:[#allocation14 + $0x858] sm:$0xff]  ;;  %v2913_v42 = vld [vmem:[#allocation14 + $0x860] sm:$0xff] }
 0x5f6   :  { %4051 = vmatmul.mubr.f32.vlgmr.msra.gmra.mrb[24].mxu0 %v3189_v44  ;;  %v4302_v44 = vld [vmem:[#allocation17 + $0x1c0] sm:$0xff]  ;;  %v6009_v50 = vpack.c.bf16 %v4287_v57, %v4286_v48  ;;  %v5853_v43 = vpack.c.bf16 %v2912_v58, %v2911_v2  ;;  %v4289_v39 = vld [vmem:[#allocation17 + $0x158] sm:$0xff]  ;;  %v5857_v32 = vpack.c.bf16 %v2914_v23, %v2913_v42  ;;  %v2967_v23 = vld [vmem:[#allocation14 + $0xa10] sm:$0xff] }
 0x5f7   :  { %5994 = vmatpush3.bf16.msra.mxu0 %v5993_v4  ;;  %4646 = vmatprep.mubr.f32.mxu0 %v7893_v11  ;;  %v2910_v4 = vld [vmem:[#allocation14 + $0x848] sm:$0xff]  ;;  %v4304_v11 = vld [vmem:[#allocation17 + $0x1d0] sm:$0xff]  ;;  %v4293_v58 = vld [vmem:[#allocation17 + $0x178] sm:$0xff] }
 0x5f8   :  { %5838 = vmatpush3.bf16.msra.mxu1 %v5837_v0  ;;  %5996 = vmatprep.subr.bf16.mxu0 %v5995_v24  ;;  %v4303_v0 = vld [vmem:[#allocation17 + $0x1c8] sm:$0xff]  ;;  %v5849_v12 = vpack.c.bf16 %v2910_v4, %v2909_v26  ;;  %v4310_v42 = vld [vmem:[#allocation17 + $0x200] sm:$0xff] }
 0x5f9   :  { %5840 = vmatprep.subr.bf16.mxu1 %v5839_v49  ;;  %v2927_v24 = vld [vmem:[#allocation14 + $0x8d0] sm:$0xff]  ;;  %v6007_v49 = vpack.c.bf16 %v4303_v0, %v4302_v44 }
 0x5fa   :  { %v5851_v41 = vpack.c.bf16 %v2928_v46, %v2927_v24  ;;  %v4291_v4 = vld [vmem:[#allocation17 + $0x168] sm:$0xff]  ;;  %v2916_v24 = vld [vmem:[#allocation14 + $0x878] sm:$0xff] }
 0x5fb   :  { %5998 = vmatpush3.bf16.msra.mxu0 %v5997_v36  ;;  %v4305_v36 = vld [vmem:[#allocation17 + $0x1d8] sm:$0xff]  ;;  %v2915_v44 = vld [vmem:[#allocation14 + $0x870] sm:$0xff] }
 0x5fc   :  { %5842 = vmatpush3.bf16.msra.mxu1 %v5841_v20  ;;  %6000 = vmatprep.subr.bf16.mxu0 %v5999_v40  ;;  %v2929_v20 = vld [vmem:[#allocation14 + $0x8e0] sm:$0xff]  ;;  %v2930_v40 = vld [vmem:[#allocation14 + $0x8e8] sm:$0xff]  ;;  %v6011_v3 = vpack.c.bf16 %v4305_v36, %v4304_v11  ;;  %v4308_v46 = vld [vmem:[#allocation17 + $0x1f0] sm:$0xff]  ;;  %v5861_v57 = vpack.c.bf16 %v2916_v24, %v2915_v44 }
 0x5fd   :  { %5844 = vmatprep.subr.bf16.mxu1 %v5843_v31  ;;  %v4288_v31 = vld [vmem:[#allocation17 + $0x150] sm:$0xff]  ;;  %v5855_v5 = vpack.c.bf16 %v2930_v40, %v2929_v20  ;;  %v2965_v36 = vld [vmem:[#allocation14 + $0xa00] sm:$0xff]  ;;  %v2966_v20 = vld [vmem:[#allocation14 + $0xa08] sm:$0xff] }
 0x5fe   :  { %v6013_v38 = vpack.c.bf16 %v4289_v39, %v4288_v31  ;;  %v4326_v40 = vld [vmem:[#allocation17 + $0x280] sm:$0xff]  ;;  %v5897_v39 = vpack.c.bf16 %v2966_v20, %v2965_v36  ;;  %v4313_v24 = vld [vmem:[#allocation17 + $0x218] sm:$0xff]  ;;  %v4332_v20 = vld [vmem:[#allocation17 + $0x2b0] sm:$0xff] }
 0x5ff   :  { %6002 = vmatpush3.bf16.msra.mxu0 %v6001_v13  ;;  %v4307_v13 = vld [vmem:[#allocation17 + $0x1e8] sm:$0xff]  ;;  %v2972_v36 = vld [vmem:[#allocation14 + $0xa38] sm:$0xff] }
 0x600   :  { %5846 = vmatpush3.bf16.msra.mxu1 %v5845_v30  ;;  %6004 = vmatprep.subr.bf16.mxu0 %v6003_v22  ;;  %v2931_v30 = vld [vmem:[#allocation14 + $0x8f0] sm:$0xff]  ;;  %v2932_v22 = vld [vmem:[#allocation14 + $0x8f8] sm:$0xff]  ;;  %v6015_v26 = vpack.c.bf16 %v4307_v13, %v4306_v27 }
 0x601   :  { %5848 = vmatprep.subr.bf16.mxu1 %v5847_v47  ;;  %v4290_v47 = vld [vmem:[#allocation17 + $0x160] sm:$0xff]  ;;  %v5859_v0 = vpack.c.bf16 %v2932_v22, %v2931_v30  ;;  %v2968_v30 = vld [vmem:[#allocation14 + $0xa18] sm:$0xff] }
 0x602   :  { %v6017_v48 = vpack.c.bf16 %v4291_v4, %v4290_v47  ;;  %v4328_v22 = vld [vmem:[#allocation17 + $0x290] sm:$0xff]  ;;  %v5901_v4 = vpack.c.bf16 %v2968_v30, %v2967_v23 }
 0x603   :  { %6006 = vmatpush3.bf16.msra.mxu0 %v6005_v53  ;;  %v4309_v53 = vld [vmem:[#allocation17 + $0x1f8] sm:$0xff] }
 0x604   :  { %5850 = vmatpush3.bf16.msra.mxu1 %v5849_v12  ;;  %6008 = vmatprep.subr.bf16.mxu0 %v6007_v49  ;;  %v2981_v12 = vld [vmem:[#allocation14 + $0xa80] sm:$0xff]  ;;  %v2982_v49 = vld [vmem:[#allocation14 + $0xa88] sm:$0xff]  ;;  %v6019_v2 = vpack.c.bf16 %v4309_v53, %v4308_v46  ;;  %v4472_v53 = vrot.slane %v4830_v35, %v6709_v19  ;;  %v2992_v30 = vld [vmem:[#allocation14 + $0xad8] sm:$0xff] }
 0x605   :  { %5852 = vmatprep.subr.bf16.mxu1 %v5851_v41  ;;  %v4292_v41 = vld [vmem:[#allocation17 + $0x170] sm:$0xff]  ;;  %v5895_v11 = vpack.c.bf16 %v2982_v49, %v2981_v12  ;;  %v2969_v46 = vld [vmem:[#allocation14 + $0xa20] sm:$0xff]  ;;  %v2970_v12 = vld [vmem:[#allocation14 + $0xa28] sm:$0xff] }
 0x606   :  { %v6021_v31 = vpack.c.bf16 %v4293_v58, %v4292_v41  ;;  %v4330_v49 = vld [vmem:[#allocation17 + $0x2a0] sm:$0xff]  ;;  %v5905_v18 = vpack.c.bf16 %v2970_v12, %v2969_v46  ;;  %v4315_v58 = vld [vmem:[#allocation17 + $0x228] sm:$0xff]  ;;  %v2976_v46 = vld [vmem:[#allocation14 + $0xa58] sm:$0xff] }
 0x607   :  { %6010 = vmatpush3.bf16.msra.mxu0 %v6009_v50  ;;  %v4327_v50 = vld [vmem:[#allocation17 + $0x288] sm:$0xff]  ;;  %v4314_v35 = vld [vmem:[#allocation17 + $0x220] sm:$0xff] }
 0x608   :  { %5854 = vmatpush3.bf16.msra.mxu1 %v5853_v43  ;;  %6012 = vmatprep.subr.bf16.mxu0 %v6011_v3  ;;  %v2983_v43 = vld [vmem:[#allocation14 + $0xa90] sm:$0xff]  ;;  %v2984_v3 = vld [vmem:[#allocation14 + $0xa98] sm:$0xff]  ;;  %v7736_v27 = vpack.c.bf16 %v4327_v50, %v4326_v40  ;;  %v2990_v50 = vld [vmem:[#allocation14 + $0xac8] sm:$0xff] }
 0x609   :  { %5856 = vmatprep.subr.bf16.mxu1 %v5855_v5  ;;  %v4311_v5 = vld [vmem:[#allocation17 + $0x208] sm:$0xff]  ;;  %v5899_v13 = vpack.c.bf16 %v2984_v3, %v2983_v43  ;;  %v4333_v40 = vld [vmem:[#allocation17 + $0x2b8] sm:$0xff]  ;;  %v7765_v43 = vpack.c.bf16 %v4315_v58, %v4314_v35 }
 0x60a   :  { %v7739_v47 = vpack.c.bf16 %v4311_v5, %v4310_v42  ;;  %v4317_v42 = vld [vmem:[#allocation17 + $0x238] sm:$0xff]  ;;  %v2978_v58 = vld [vmem:[#allocation14 + $0xa68] sm:$0xff] }
 0x60b   :  { %6014 = vmatpush3.bf16.msra.mxu0 %v6013_v38  ;;  %v4329_v38 = vld [vmem:[#allocation17 + $0x298] sm:$0xff] }
 0x60c   :  { %5858 = vmatpush3.bf16.msra.mxu1 %v5857_v32  ;;  %6016 = vmatprep.subr.bf16.mxu0 %v6015_v26  ;;  %v2985_v32 = vld [vmem:[#allocation14 + $0xaa0] sm:$0xff]  ;;  %v2986_v26 = vld [vmem:[#allocation14 + $0xaa8] sm:$0xff]  ;;  %v7742_v44 = vpack.c.bf16 %v4329_v38, %v4328_v22 }
 0x60d   :  { %5860 = vmatprep.subr.bf16.mxu1 %v5859_v0  ;;  %v4312_v0 = vld [vmem:[#allocation17 + $0x210] sm:$0xff]  ;;  %v2973_v5 = vld [vmem:[#allocation14 + $0xa40] sm:$0xff] }
 0x60e   :  { %v7756_v41 = vpack.c.bf16 %v4313_v24, %v4312_v0  ;;  %v5913_v38 = vpack.c.bf16 %v2974_v59, %v2973_v5  ;;  %v2975_v0 = vld [vmem:[#allocation14 + $0xa50] sm:$0xff]  ;;  %v2993_v12 = vld [vmem:[#allocation14 + $0xae0] sm:$0xff]  ;;  %v2980_v5 = vld [vmem:[#allocation14 + $0xa78] sm:$0xff] }
 0x60f   :  { %6018 = vmatpush3.bf16.msra.mxu0 %v6017_v48  ;;  %v4331_v48 = vld [vmem:[#allocation17 + $0x2a8] sm:$0xff]  ;;  %v4341_v59 = vld [vmem:[#allocation17 + $0x2f8] sm:$0xff] }
 0x610   :  { %5862 = vmatpush3.bf16.msra.mxu1 %v5861_v57  ;;  %6020 = vmatprep.subr.bf16.mxu0 %v6019_v2  ;;  %v2987_v57 = vld [vmem:[#allocation14 + $0xab0] sm:$0xff]  ;;  %v2988_v2 = vld [vmem:[#allocation14 + $0xab8] sm:$0xff]  ;;  %v7759_v9 = vpack.c.bf16 %v4331_v48, %v4330_v49  ;;  %v2994_v49 = vld [vmem:[#allocation14 + $0xae8] sm:$0xff]  ;;  %v5917_v48 = vpack.c.bf16 %v2976_v46, %v2975_v0 }
 0x611   :  { %5896 = vmatprep.subr.bf16.mxu1 %v5895_v11  ;;  %v5907_v11 = vpack.c.bf16 %v2988_v2, %v2987_v57  ;;  %v4320_v57 = vld [vmem:[#allocation17 + $0x250] sm:$0xff]  ;;  %v4321_v2 = vld [vmem:[#allocation17 + $0x258] sm:$0xff]  ;;  %v5919_v35 = vpack.c.bf16 %v2994_v49, %v2993_v12  ;;  %v4247_v46 = vld [vmem:[#allocation17 + $0x8] sm:$0xff] }
 0x613   :  { %6022 = vmatpush3.bf16.msra.mxu0 %v6021_v31  ;;  %3841 = vmatmul.mubr.f32.vlgmr.msra.gmra.mrb[18].mxu1 %v7714_v45  ;;  %v5903_v45 = vpack.c.bf16 %v2986_v26, %v2985_v32  ;;  %v7768_v31 = vpack.c.bf16 %v4333_v40, %v4332_v20  ;;  %v4318_v26 = vld [vmem:[#allocation17 + $0x240] sm:$0xff]  ;;  %v7786_v20 = vpack.c.bf16 %v4321_v2, %v4320_v57  ;;  %v4248_v57 = vld [vmem:[#allocation17 + $0x10] sm:$0xff]  ;;  %v4249_v2 = vld [vmem:[#allocation17 + $0x18] sm:$0xff] }
 0x614   :  { %5898 = vmatpush3.bf16.msra.mxu1 %v5897_v39  ;;  %3980 = vmatprep.mubr.f32.mxu1 %v7717_v37  ;;  %v7894_v37 = vcombine.low %v7479_v15, %v7482_v34  ;;  %v2971_v15 = vld [vmem:[#allocation14 + $0xa30] sm:$0xff]  ;;  %v4474_v34 = vcombine.high %v4472_v53, %v4472_v53 }
 0x615   :  { %6024 = vmatprep.subr.bf16.mxu0 %v7736_v27  ;;  %5900 = vmatprep.subr.bf16.mxu1 %v5899_v13  ;;  %v5909_v3 = vpack.c.bf16 %v2972_v36, %v2971_v15  ;;  %v4316_v39 = vld [vmem:[#allocation17 + $0x230] sm:$0xff]  ;;  %v4338_v15 = vld [vmem:[#allocation17 + $0x2e0] sm:$0xff] }
 0x616   :  { %4647 = vmatmul.mubr.f32.vlgmr.msra.gmra.mrb[26].mxu0 %v7894_v37  ;;  %v2991_v13 = vld [vmem:[#allocation14 + $0xad0] sm:$0xff]  ;;  %v7774_v22 = vpack.c.bf16 %v4317_v42, %v4316_v39  ;;  %v2996_v36 = vld [vmem:[#allocation14 + $0xaf8] sm:$0xff] }
 0x617   :  { %4651 = vmatprep.mubr.f32.mxu0 %v4438_v6  ;;  %6026 = vmatpush3.bf16.msra.mxu0 %v7739_v47  ;;  %v2989_v6 = vld [vmem:[#allocation14 + $0xac0] sm:$0xff]  ;;  %v5915_v24 = vpack.c.bf16 %v2992_v30, %v2991_v13  ;;  %v2979_v39 = vld [vmem:[#allocation14 + $0xa70] sm:$0xff] }
 0x618   :  { %5902 = vmatpush3.bf16.msra.mxu1 %v5901_v4  ;;  %6028 = vmatprep.subr.bf16.mxu0 %v7742_v44  ;;  %v5911_v23 = vpack.c.bf16 %v2990_v50, %v2989_v6  ;;  %v4319_v4 = vld [vmem:[#allocation17 + $0x248] sm:$0xff]  ;;  %v4322_v50 = vld [vmem:[#allocation17 + $0x260] sm:$0xff]  ;;  %v5925_v30 = vpack.c.bf16 %v2980_v5, %v2979_v39  ;;  %v4253_v39 = vld [vmem:[#allocation17 + $0x38] sm:$0xff] }
 0x619   :  { %5904 = vmatprep.subr.bf16.mxu1 %v5903_v45  ;;  %v4337_v45 = vld [vmem:[#allocation17 + $0x2d8] sm:$0xff]  ;;  %v4271_v5 = vld [vmem:[#allocation17 + $0xc8] sm:$0xff] }
 0x61a   :  { %4652 = vmatmul.mubr.f32.gmra.mrb[28].mxu0 %v4437_v29  ;;  %v4335_v29 = vld [vmem:[#allocation17 + $0x2c8] sm:$0xff] }
 0x61b   :  { %4656 = vmatprep.mubr.f32.mxu0 %v4474_v34  ;;  %6030 = vmatpush3.bf16.msra.mxu0 %v7756_v41  ;;  %v7777_v32 = vpack.c.bf16 %v4335_v29, %v4334_v51  ;;  %v4339_v34 = vld [vmem:[#allocation17 + $0x2e8] sm:$0xff]  ;;  %v4262_v51 = vld [vmem:[#allocation17 + $0x80] sm:$0xff] }
 0x61c   :  { %5906 = vmatpush3.bf16.msra.mxu1 %v5905_v18  ;;  %6032 = vmatprep.subr.bf16.mxu0 %v7759_v9  ;;  %v2977_v18 = vld [vmem:[#allocation14 + $0xa60] sm:$0xff]  ;;  %v7789_v6 = vpack.c.bf16 %v4339_v34, %v4338_v15  ;;  %v4263_v29 = vld [vmem:[#allocation17 + $0x88] sm:$0xff] }
 0x61d   :  { %5908 = vmatprep.subr.bf16.mxu1 %v5907_v11  ;;  %v2995_v11 = vld [vmem:[#allocation14 + $0xaf0] sm:$0xff]  ;;  %v5921_v40 = vpack.c.bf16 %v2978_v58, %v2977_v18  ;;  %v5959_v0 = vpack.c.bf16 %v4263_v29, %v4262_v51  ;;  %v4266_v18 = vld [vmem:[#allocation17 + $0xa0] sm:$0xff]  ;;  %v5965_v58 = vpack.c.bf16 %v4249_v2, %v4248_v57  ;;  %v4277_v57 = vld [vmem:[#allocation17 + $0xf8] sm:$0xff] }
 0x61e   :  { %4657 = vmatmul.mubr.f32.gmra.mrb[30].mxu0 %v4472_v53  ;;  %v4336_v53 = vld [vmem:[#allocation17 + $0x2d0] sm:$0xff]  ;;  %v5923_v42 = vpack.c.bf16 %v2996_v36, %v2995_v11  ;;  %v4250_v34 = vld [vmem:[#allocation17 + $0x20] sm:$0xff]  ;;  %v4251_v11 = vld [vmem:[#allocation17 + $0x28] sm:$0xff] }
 0x61f   :  { %6034 = vmatpush3.bf16.msra.mxu0 %v7765_v43  ;;  %4726 = vmatprep.mubr.f32.mxu0 %v4402_v63  ;;  %v7780_v63 = vpack.c.bf16 %v4319_v4, %v4318_v26  ;;  %v7783_v37 = vpack.c.bf16 %v4337_v45, %v4336_v53  ;;  %v4324_v26 = vld [vmem:[#allocation17 + $0x270] sm:$0xff]  ;;  %v4325_v4 = vld [vmem:[#allocation17 + $0x278] sm:$0xff]  ;;  %v4255_v51 = vld [vmem:[#allocation17 + $0x48] sm:$0xff] }
 0x620   :  { %5910 = vmatpush3.bf16.msra.mxu1 %v5909_v3  ;;  %6036 = vmatprep.subr.bf16.mxu0 %v7768_v31  ;;  %v4323_v3 = vld [vmem:[#allocation17 + $0x268] sm:$0xff]  ;;  %v4264_v53 = vld [vmem:[#allocation17 + $0x90] sm:$0xff]  ;;  %v4265_v45 = vld [vmem:[#allocation17 + $0x98] sm:$0xff]  ;;  %v7798_v12 = vpack.c.bf16 %v4325_v4, %v4324_v26 }
 0x621   :  { %5912 = vmatprep.subr.bf16.mxu1 %v5911_v23  ;;  %v4340_v23 = vld [vmem:[#allocation17 + $0x2f0] sm:$0xff]  ;;  %v7792_v13 = vpack.c.bf16 %v4323_v3, %v4322_v50  ;;  %v5969_v50 = vpack.c.bf16 %v4251_v11, %v4250_v34  ;;  %v4257_v26 = vld [vmem:[#allocation17 + $0x58] sm:$0xff]  ;;  %v4274_v4 = vld [vmem:[#allocation17 + $0xe0] sm:$0xff] }
 0x622   :  { %v4268_v36 = vld [vmem:[#allocation17 + $0xb0] sm:$0xff]  ;;  %v4261_v11 = vld [vmem:[#allocation17 + $0x78] sm:$0xff] }
 0x623   :  { %6038 = vmatpush3.bf16.msra.mxu0 %v7774_v22  ;;  %v4252_v3 = vld [vmem:[#allocation17 + $0x30] sm:$0xff] }
 0x624   :  { %5914 = vmatpush3.bf16.msra.mxu1 %v5913_v38  ;;  %6040 = vmatprep.subr.bf16.mxu0 %v7777_v32  ;;  %v7795_v38 = vpack.c.bf16 %v4341_v59, %v4340_v23  ;;  %v4254_v59 = vld [vmem:[#allocation17 + $0x40] sm:$0xff]  ;;  %v4272_v29 = vld [vmem:[#allocation17 + $0xd0] sm:$0xff] }
 0x625   :  { %5916 = vmatprep.subr.bf16.mxu1 %v5915_v24  ;;  %v4246_v24 = vld [vmem:[#allocation17] sm:$0xff]  ;;  %v5977_v25 = vpack.c.bf16 %v4255_v51, %v4254_v59  ;;  %v4260_v34 = vld [vmem:[#allocation17 + $0x70] sm:$0xff] }
 0x626   :  { %v5961_v49 = vpack.c.bf16 %v4247_v46, %v4246_v24 }
 0x627   :  { %6042 = vmatpush3.bf16.msra.mxu0 %v7780_v63 }
 0x628   :  { %5918 = vmatpush3.bf16.msra.mxu1 %v5917_v48  ;;  %6044 = vmatprep.subr.bf16.mxu0 %v7783_v37  ;;  %v5963_v48 = vpack.c.bf16 %v4265_v45, %v4264_v53  ;;  %v4258_v53 = vld [vmem:[#allocation17 + $0x60] sm:$0xff]  ;;  %v4259_v45 = vld [vmem:[#allocation17 + $0x68] sm:$0xff] }
 0x629   :  { %5920 = vmatprep.subr.bf16.mxu1 %v5919_v35  ;;  %v4267_v35 = vld [vmem:[#allocation17 + $0xa8] sm:$0xff] }
 0x62a   :  { %v5967_v15 = vpack.c.bf16 %v4267_v35, %v4266_v18  ;;  %v5985_v35 = vpack.c.bf16 %v4259_v45, %v4258_v53 }
 0x62b   :  { %6046 = vmatpush3.bf16.msra.mxu0 %v7786_v20 }
 0x62c   :  { %5922 = vmatpush3.bf16.msra.mxu1 %v5921_v40  ;;  %6048 = vmatprep.subr.bf16.mxu0 %v7789_v6  ;;  %v4269_v40 = vld [vmem:[#allocation17 + $0xb8] sm:$0xff] }
 0x62d   :  { %5924 = vmatprep.subr.bf16.mxu1 %v5923_v42  ;;  %v4270_v42 = vld [vmem:[#allocation17 + $0xc0] sm:$0xff] }
 0x62e   :  { %v5975_v23 = vpack.c.bf16 %v4271_v5, %v4270_v42 }
 0x62f   :  { %6050 = vmatpush3.bf16.msra.mxu0 %v7792_v13 }
 0x630   :  { %5926 = vmatpush3.bf16.msra.mxu1 %v5925_v30  ;;  %6052 = vmatprep.subr.bf16.mxu0 %v7795_v38  ;;  %v4273_v30 = vld [vmem:[#allocation17 + $0xd8] sm:$0xff] }
 0x631   :  { %5960 = vmatprep.subr.bf16.mxu1 %v5959_v0  ;;  %v5979_v33 = vpack.c.bf16 %v4273_v30, %v4272_v29  ;;  %v4275_v0 = vld [vmem:[#allocation17 + $0xe8] sm:$0xff] }
 0x632   :  { %v5983_v46 = vpack.c.bf16 %v4275_v0, %v4274_v4 }
 0x633   :  { %6054 = vmatpush3.bf16.msra.mxu0 %v7798_v12  ;;  %3981 = vmatmul.mubr.f32.vlgmr.msra.gmra.mrb[20].mxu1 %v7727_v62  ;;  %v5971_v62 = vpack.c.bf16 %v4269_v40, %v4268_v36 }
 0x634   :  { %5962 = vmatpush3.bf16.msra.mxu1 %v5961_v49  ;;  %4566 = vmatprep.mubr.f32.mxu1 %v4382_v60  ;;  %v5973_v60 = vpack.c.bf16 %v4253_v39, %v4252_v3 }
 0x635   :  { %5964 = vmatprep.subr.bf16.mxu1 %v5963_v48  ;;  %v4276_v48 = vld [vmem:[#allocation17 + $0xf0] sm:$0xff] }
 0x636   :  { %4727 = vmatmul.mubr.f32.vlgmr.msra.gmra.mrb[32].mxu0 %v4401_v7  ;;  %v4256_v7 = vld [vmem:[#allocation17 + $0x50] sm:$0xff] }
 0x637   :  { %v5981_v24 = vpack.c.bf16 %v4257_v26, %v4256_v7 }
 0x638   :  { %5966 = vmatpush3.bf16.msra.mxu1 %v5965_v58 }
 0x639   :  { %5968 = vmatprep.subr.bf16.mxu1 %v5967_v15  ;;  %v5987_v15 = vpack.c.bf16 %v4277_v57, %v4276_v48 }
 0x63c   :  { %5970 = vmatpush3.bf16.msra.mxu1 %v5969_v50  ;;  %v5989_v50 = vpack.c.bf16 %v4261_v11, %v4260_v34 }
 0x63d   :  { %5972 = vmatprep.subr.bf16.mxu1 %v5971_v62  ;;  %v4465_v62 = vrot.slane %v7623_v17, %v6709_v19 }
 0x63f   :  { %v4473_v3 = vcombine.high %v4465_v62, %v4465_v62 }
 0x640   :  { %5974 = vmatpush3.bf16.msra.mxu1 %v5973_v60 }
 0x641   :  { %5976 = vmatprep.subr.bf16.mxu1 %v5975_v23 }
 0x644   :  { %5978 = vmatpush3.bf16.msra.mxu1 %v5977_v25 }
 0x645   :  { %5980 = vmatprep.subr.bf16.mxu1 %v5979_v33 }
 0x646   :  { %v4914_v49 = vpop.f32.mrb[8].mxu1 }
 0x647   :  { %v4915_v2 = vpop.f32.mrb[9].mxu1 }
 0x648   :  { %v4916_v18 = vadd.f32 %v4915_v2, %v4914_v49  ;;  %5982 = vmatpush3.bf16.msra.mxu1 %v5981_v24 }
 0x649   :  { %v5019_v58 = vpop.f32.mrb[16].mxu0  ;;  %5984 = vmatprep.subr.bf16.mxu1 %v5983_v46 }
 0x64a   :  { %v5020_v36 = vpop.f32.mrb[17].mxu0  ;;  %v3283_v17 = vadd.f32 %v4916_v18, %v4815_v52 }
 0x64b   :  { %v5021_v40 = vadd.f32 %v5020_v36, %v5019_v58 }
 0x64c   :  { %5986 = vmatpush3.bf16.msra.mxu1 %v5985_v35 }
 0x64d   :  { %5988 = vmatprep.subr.bf16.mxu1 %v5987_v15 }
 0x650   :  { %5990 = vmatpush3.bf16.msra.mxu1 %v5989_v50 }
 0x651   :  { %6055 = vmatprep.subr.bf16.mxu1 %v7736_v27  ;;  %v4482_v27 = vrot.slane %v7671_v16, %v6709_v19 }
 0x653   :  { %4567 = vmatmul.mubr.f32.vlgmr.msra.gmra.mrb[22].mxu1 %v4381_v54 }
 0x654   :  { %4571 = vmatprep.mubr.f32.mxu1 %v4436_v28  ;;  %6063 = vmatpush3.bf16.msra.mxu1 %v7739_v47  ;;  %v4483_v47 = vcombine.high %v4482_v27, %v4482_v27 }
 0x655   :  { %6056 = vmatprep.subr.bf16.mxu1 %v7742_v44 }
 0x657   :  { %4572 = vmatmul.mubr.f32.gmra.mrb[24].mxu1 %v4435_v56 }
 0x658   :  { %4576 = vmatprep.mubr.f32.mxu1 %v4473_v3  ;;  %6064 = vmatpush3.bf16.msra.mxu1 %v7756_v41 }
 0x659   :  { %6057 = vmatprep.subr.bf16.mxu1 %v7759_v9 }
 0x65b   :  { %4577 = vmatmul.mubr.f32.gmra.mrb[26].mxu1 %v4465_v62 }
 0x65c   :  { %6065 = vmatpush3.bf16.msra.mxu1 %v7765_v43  ;;  %4731 = vmatprep.mubr.f32.mxu1 %v4456_v55 }
 0x65d   :  { %6058 = vmatprep.subr.bf16.mxu1 %v7768_v31 }
 0x660   :  { %6066 = vmatpush3.bf16.msra.mxu1 %v7774_v22 }
 0x661   :  { %6059 = vmatprep.subr.bf16.mxu1 %v7777_v32 }
 0x664   :  { %6067 = vmatpush3.bf16.msra.mxu1 %v7780_v63 }
 0x665   :  { %6060 = vmatprep.subr.bf16.mxu1 %v7783_v37 }
 0x666   :  { %v4949_v1 = vpop.f32.mrb[10].mxu1 }
 0x667   :  { %v4950_v54 = vpop.f32.mrb[11].mxu1 }
 0x668   :  { %v4951_v21 = vadd.f32 %v4950_v54, %v4949_v1  ;;  %6068 = vmatpush3.bf16.msra.mxu1 %v7786_v20 }
 0x669   :  { %v5089_v10 = vpop.f32.mrb[18].mxu0  ;;  %6061 = vmatprep.subr.bf16.mxu1 %v7789_v6 }
 0x66a   :  { %v3353_v28 = vadd.f32 %v4951_v21, %v3283_v17  ;;  %v5090_v56 = vpop.f32.mrb[19].mxu0 }
 0x66b   :  { %v5091_v55 = vadd.f32 %v5090_v56, %v5089_v10 }
 0x66c   :  { %6069 = vmatpush3.bf16.msra.mxu1 %v7792_v13 }
 0x66d   :  { %6062 = vmatprep.subr.bf16.mxu1 %v7795_v38 }
 0x670   :  { %6070 = vmatpush3.bf16.msra.mxu1 %v7798_v12 }
 0x673   :  { %4732 = vmatmul.mubr.f32.vlgmr.msra.gmra.mrb[28].mxu1 %v4455_v8 }
 0x674   :  { %4736 = vmatprep.mubr.f32.mxu1 %v4483_v47 }
 0x677   :  { %4737 = vmatmul.mubr.f32.gmra.mrb[30].mxu1 %v4482_v27 }
 0x686   :  { %v4984_v44 = vpop.f32.mrb[12].mxu1 }
 0x687   :  { %v4985_v41 = vpop.f32.mrb[13].mxu1 }
 0x688   :  { %v4986_v9 = vadd.f32 %v4985_v41, %v4984_v44 }
 0x689   :  { %v5159_v43 = vpop.f32.mrb[20].mxu0 }
 0x68a   :  { %v3423_v31 = vadd.f32 %v4986_v9, %v3353_v28  ;;  %v5160_v22 = vpop.f32.mrb[21].mxu0 }
 0x68b   :  { %v5161_v32 = vadd.f32 %v5160_v22, %v5159_v43 }
 0x68c   :  { %v3493_v63 = vadd.f32 %v5021_v40, %v3423_v31 }
 0x6a6   :  { %v5054_v37 = vpop.f32.mrb[14].mxu1 }
 0x6a7   :  { %v5055_v20 = vpop.f32.mrb[15].mxu1 }
 0x6a8   :  { %v5056_v19 = vadd.f32 %v5055_v20, %v5054_v37 }
 0x6a9   :  { %v5229_v16 = vpop.f32.mrb[22].mxu0 }
 0x6aa   :  { %v3563_v6 = vadd.f32 %v5056_v19, %v3493_v63  ;;  %v5230_v13 = vpop.f32.mrb[23].mxu0 }
 0x6ab   :  { %v5231_v38 = vadd.f32 %v5230_v13, %v5229_v16 }
 0x6ac   :  { %v3633_v12 = vadd.f32 %v5091_v55, %v3563_v6 }
 0x6c6   :  { %v5124_v14 = vpop.f32.mrb[16].mxu1 }
 0x6c7   :  { %v5125_v61 = vpop.f32.mrb[17].mxu1 }
 0x6c8   :  { %v5126_v8 = vadd.f32 %v5125_v61, %v5124_v14 }
 0x6c9   :  { %v5299_v39 = vpop.f32.mrb[24].mxu0 }
 0x6ca   :  { %v3703_v42 = vadd.f32 %v5126_v8, %v3633_v12  ;;  %v5300_v5 = vpop.f32.mrb[25].mxu0 }
 0x6cb   :  { %v5301_v60 = vadd.f32 %v5300_v5, %v5299_v39 }
 0x6cc   :  { %v3773_v23 = vadd.f32 %v5161_v32, %v3703_v42 }
 0x6e6   :  { %v5194_v59 = vpop.f32.mrb[18].mxu1 }
 0x6e7   :  { %v5195_v51 = vpop.f32.mrb[19].mxu1 }
 0x6e8   :  { %v5196_v29 = vadd.f32 %v5195_v51, %v5194_v59 }
 0x6e9   :  { %v5375_v30 = vpop.f32.mrb[26].mxu0 }
 0x6ea   :  { %v3843_v25 = vadd.f32 %v5196_v29, %v3773_v23  ;;  %v5376_v33 = vpop.f32.mrb[27].mxu0 }
 0x6eb   :  { %v5377_v7 = vadd.f32 %v5376_v33, %v5375_v30 }
 0x6ec   :  { %v3913_v26 = vadd.f32 %v5231_v38, %v3843_v25 }
 0x6ed   :  { %v5378_v4 = vpop.f32.mrb[28].mxu0 }
 0x6ee   :  { %v5379_v0 = vpop.f32.mrb[29].mxu0 }
 0x6ef   :  { %v5380_v24 = vadd.f32 %v5379_v0, %v5378_v4 }
 0x6f1   :  { %v5381_v46 = vpop.f32.mrb[30].mxu0 }
 0x6f2   :  { %v5382_v53 = vpop.f32.mrb[31].mxu0 }
 0x6f3   :  { %v5383_v45 = vadd.f32 %v5382_v53, %v5381_v46 }
 0x706   :  { %v5264_v49 = vpop.f32.mrb[20].mxu1 }
 0x707   :  { %v5265_v48 = vpop.f32.mrb[21].mxu1 }
 0x708   :  { %v5266_v57 = vadd.f32 %v5265_v48, %v5264_v49 }
 0x709   :  { %v5416_v2 = vpop.f32.mrb[32].mxu0 }
 0x70a   :  { %v3983_v18 = vadd.f32 %v5266_v57, %v3913_v26  ;;  %v5417_v35 = vpop.f32.mrb[33].mxu0 }
 0x70b   :  { %v5418_v58 = vadd.f32 %v5417_v35, %v5416_v2 }
 0x70c   :  { %v4053_v15 = vadd.f32 %v5301_v60, %v3983_v18 }
 0x70e   :  { %4057 = vst.msk [vmem:[#allocation20] sm:$0x3] %vm4056_vm9, %v4053_v15 }
 0x70f   :  { %6381 = shalt.err (!%p6378_p8)
}
 0x710   :  { %s6382_s19 = scalar_lea.hbm %s7882_s11, 32 }
 0x711   :  { %p6383_p9 = scmp.ne.s32.totalorder %s7882_s11, %s6382_s19  ;;  %p6386_p10 = scmp.lt.u32.totalorder %s6382_s19, %s7882_s11 }
 0x713   :  { %p6388_p11 = pnand %p6386_p10, %p6383_p9 }
 0x715   :  { %6391 = shalt.err (!%p6388_p11)
}
 0x716   :  { %4757 = dma.vmem_to_hbm [thread:$0]  %s4755_s0, 32, %s7882_s11, [#allocation4]   ;;  %v4824_v11 = vld [vmem:[#allocation19] ss:$0 sm:$0xff] }
 0x717   :  { %s6474_s11 = smov [#allocation21]  }
 0x718   :  { %s4763_s9 = sshll.u32 %s6474_s11, 4  ;;  %s4764_s9 = int_to_ptr.vmem [resolvable:$true] %s4763_s9 }
 0x719   :  { %s6392_s22 = scalar_lea.vmem %s4764_s9, 384  ;;  %p6397_p13 = scmp.lt.s32.totalorder %s4764_s9, %s4764_s9 }
 0x71a   :  { %p6393_p12 = scmp.ne.s32.totalorder %s4764_s9, %s6392_s22  ;;  %p6398_p0 = scmp.lt.s32.totalorder %s6392_s22, %s6392_s22 }
 0x71c   :  { %p6399_p1 = por %p6398_p0, %p6397_p13 }
 0x71e   :  { %p6400_p2 = pnand %p6399_p1, %p6393_p12 }
 0x726   :  { %v5334_v34 = vpop.f32.mrb[22].mxu1 }
 0x727   :  { %v5335_v36 = vpop.f32.mrb[23].mxu1 }
 0x728   :  { %v5336_v40 = vadd.f32 %v5335_v36, %v5334_v34 }
 0x72a   :  { %v4569_v50 = vadd.f32 %v5336_v40, %v4824_v11  ;;  %v5337_v62 = vpop.f32.mrb[24].mxu1 }
 0x72b   :  { %v5338_v3 = vpop.f32.mrb[25].mxu1 }
 0x72c   :  { %v4649_v52 = vadd.f32 %v5377_v7, %v4569_v50  ;;  %v5339_v1 = vadd.f32 %v5338_v3, %v5337_v62 }
 0x72e   :  { %v4729_v54 = vadd.f32 %v5418_v58, %v4649_v52  ;;  %v4574_v17 = vadd.f32 %v5339_v1, %v4824_v11  ;;  %v5340_v21 = vpop.f32.mrb[26].mxu1 }
 0x72f   :  { %v5341_v10 = vpop.f32.mrb[27].mxu1 }
 0x730   :  { %v4742_v28 = vmax.f32 %v4729_v54, 0.0  ;;  %v5342_v56 = vadd.f32 %v5341_v10, %v5340_v21  ;;  %v4654_v55 = vadd.f32 %v5380_v24, %v4574_v17 }
 0x732   :  { %4745 = vst [vmem:[#allocation21] sm:$0xff] %v4742_v28  ;;  %v4579_v27 = vadd.f32 %v5342_v56, %v4824_v11 }
 0x734   :  { %v4659_v47 = vadd.f32 %v5383_v45, %v4579_v27 }
 0x746   :  { %v5419_v44 = vpop.f32.mrb[28].mxu1 }
 0x747   :  { %v5420_v41 = vpop.f32.mrb[29].mxu1 }
 0x748   :  { %v5421_v9 = vadd.f32 %v5420_v41, %v5419_v44 }
 0x74a   :  { %v4734_v43 = vadd.f32 %v5421_v9, %v4654_v55  ;;  %v5422_v31 = vpop.f32.mrb[30].mxu1 }
 0x74b   :  { %v5423_v22 = vpop.f32.mrb[31].mxu1 }
 0x74c   :  { %v4743_v32 = vmax.f32 %v4734_v43, 0.0  ;;  %v5424_v63 = vadd.f32 %v5423_v22, %v5422_v31 }
 0x74e   :  { %4746 = vst [vmem:[#allocation21 + $0x8] sm:$0xff] %v4743_v32  ;;  %v4739_v37 = vadd.f32 %v5424_v63, %v4659_v47 }
 0x750   :  { %v4744_v20 = vmax.f32 %v4739_v37, 0.0 }
 0x752   :  { %4747 = vst [vmem:[#allocation21 + $0x10] sm:$0xf] %v4744_v20 }
 0x753   :  { %6403 = shalt.err (!%p6400_p2)
}
 0x754   :  { %s6404_s2 = scalar_lea.hbm %s7883_s12, 384 }
 0x755   :  { %p6405_p3 = scmp.ne.s32.totalorder %s7883_s12, %s6404_s2  ;;  %p6408_p4 = scmp.lt.u32.totalorder %s6404_s2, %s7883_s12 }
 0x757   :  { %p6410_p5 = pnand %p6408_p4, %p6405_p3 }
 0x759   :  { %6413 = shalt.err (!%p6410_p5)
}
 0x75a   :  { %4769 = dma.vmem_to_hbm [thread:$0]  %s4764_s9, 384, %s7883_s12, [#allocation22], %s6431_s13, %s6431_s13, %s6432_s14  }
 0x75b   :  { %6426 = dma.done.wait [#allocation4], 32  }
 0x75c   :  { %6427 = vsyncadd [#allocation4], 4294967264 }
 0x75d   :  { %6428 = dma.done.wait [#allocation22], 384  }
 0x75e   :  { %6429 = vsyncadd [#allocation22], 4294966912 }
 0x75f   :  { %4776 = vsyncpa [#allocation3], 1 }
 0x760   :  { %4777 = vsyncpa [#allocation6], 1 }
 0x761   :  { %4778 = vsyncpa [#allocation9], 1 }
 0x762   :  { %4779 = vsyncpa [#allocation12], 1 }
 0x763   :  { %4780 = vsyncpa [#allocation15], 1 }
 0x764   :  { %4781 = vsyncpa [#allocation18], 1 }
 0x765   :  { %4782 = vsyncpa [#allocation4], 1 }
 0x766   :  { %4783 = vsyncpa [#allocation22], 1 }

</bundles_post_ra>
